<compile_context>
chip_gen: v6e
topology: v6e:2x2x1
jax: 0.10.0
libtpu: 0.0.40
codegen_flags: <defaults>
</compile_context>

<pallas_src>
import jax
import jax.numpy as jnp
from jax import lax
from jax.experimental import pallas as pl
from jax.experimental.pallas import tpu as pltpu


def _num_subchains(bb):
    # Independent batch sub-chains interleaved in the recurrence loop body.
    if bb % 4 == 0:
        return 4
    if bb % 2 == 0:
        return 2
    return 1


def base_rnn_kernel(x_ref, len_ref, wih_ref, whh_ref, b_ref, wa_ref, q_ref,
                    out_ref, y_ref):
    # x_ref   : (T, Bb, E) f32   time-major inputs (padded steps are zero)
    # len_ref : (Bb, 1)    i32   sequence lengths
    # wih_ref : (E, H), whh_ref : (H, H), b_ref : (1, H)
    # wa_ref  : (H, A), q_ref : (1, A)
    # out_ref : (Bb, 4*H) f32    lane-dense [last | mean | max | attn]
    # y_ref   : VMEM scratch (T, Bb, H); holds only the input projection.
    T, Bb, _ = x_ref.shape
    H = whh_ref.shape[0]

    wih = wih_ref[...]
    whh = whh_ref[...]
    wa = wa_ref[...]
    q_row = q_ref[...]                       # (1, A)
    b_row = b_ref[...]                       # (1, H)

    # ---- Phase 1: input projection, hoisted off the serial chain ----
    if Bb % 8 == 0:
        # Single big matmul: amortises MXU fill/drain over T*Bb rows; the
        # (T,Bb,E)->(T*Bb,E) reshape is sublane-aligned and free.
        xf = x_ref[...].reshape(T * Bb, E := x_ref.shape[2])
        proj = jnp.dot(xf, wih, preferred_element_type=jnp.float32) + b_row
        y_ref[...] = proj.reshape(T, Bb, H)
    else:
        b_bc = jnp.broadcast_to(b_row, (Bb, H))   # hoisted bias broadcast
        unroll_p1 = True if T <= 16 else 4

        def proj_step(t, c):
            y_ref[t] = jnp.dot(x_ref[t], wih,
                               preferred_element_type=jnp.float32) + b_bc
            return c

        lax.fori_loop(0, T, proj_step, 0, unroll=unroll_p1)

    # ---- Phase 2: serial recurrence + fused online pooling ----
    L = len_ref[...]                          # (Bb, 1) i32
    G = _num_subchains(Bb)
    sub = Bb // G
    L_parts = [L[g * sub:(g + 1) * sub, :] for g in range(G)]
    neg_inf = jnp.float32(-jnp.inf)

    def chain_init():
        return (jnp.zeros((sub, H), jnp.float32),            # h
                jnp.zeros((sub, H), jnp.float32),            # last
                jnp.zeros((sub, H), jnp.float32),            # sum (mean)
                jnp.full((sub, H), neg_inf, jnp.float32),    # running max
                jnp.zeros((sub, H), jnp.float32),            # attn accumulator
                jnp.full((sub, 1), neg_inf, jnp.float32),    # softmax running max
                jnp.zeros((sub, 1), jnp.float32))            # softmax denom

    init = tuple(chain_init() for _ in range(G))
    unroll_p2 = True if T <= 16 else 2

    def rnn_step(t, carry):
        proj_all = y_ref[t]                   # (Bb, H): one load per step
        new = []
        for g in range(G):                    # independent chains -> ILP
            h, last, ssum, mx, acc, m, den = carry[g]
            pg = proj_all[g * sub:(g + 1) * sub, :]
            h_new = jnp.tanh(
                pg + jnp.dot(h, whh, preferred_element_type=jnp.float32))
            Lg = L_parts[g]
            vf = (t < Lg).astype(jnp.float32)            # (sub,1) valid mask
            ym = h_new * vf                              # padded rows -> 0
            # last / mean / max pooling (streamed)
            last = jnp.where(t == Lg - 1, h_new, last)
            ssum = ssum + ym
            mx = jnp.maximum(mx, ym)
            # attention logits + online masked softmax (flash-style)
            k = jnp.maximum(
                jnp.dot(ym, wa, preferred_element_type=jnp.float32), 0.0)
            beta = jnp.tanh(jnp.sum(k * q_row, axis=-1, keepdims=True))
            m_new = jnp.maximum(m, beta)       # includes padded beta==0 (torch)
            sc = jnp.exp(m - m_new)
            p = jnp.exp(beta - m_new) * vf
            den = den * sc + p
            acc = acc * sc + p * ym
            new.append((h_new, last, ssum, mx, acc, m_new, den))
        return tuple(new)

    final = lax.fori_loop(0, T, rnn_step, init, unroll=unroll_p2)

    # ---- Finalize: direct lane-dense slab stores into (Bb, 4*H) ----
    for g in range(G):
        _, last, ssum, mx, acc, _, den = final[g]
        Lg_f = L_parts[g].astype(jnp.float32)   # precondition: L >= 1
        mean = ssum * pl.reciprocal(Lg_f, approx=False)
        attn = acc * pl.reciprocal(den + 1e-14, approx=True)
        rows = slice(g * sub, (g + 1) * sub)
        out_ref[rows, 0:H] = last
        out_ref[rows, H:2 * H] = mean
        out_ref[rows, 2 * H:3 * H] = mx
        out_ref[rows, 3 * H:4 * H] = attn


def base_rnn_forward(x_bte, lengths, wih, whh, b, wattn, q, *, block_b=None):
    """x_bte: (B, T, E) f32 (batch_first, like torch). lengths: (B,) i32."""
    B, T, E = x_bte.shape
    H = whh.shape[0]
    A = wattn.shape[1]

    if block_b is None:
        block_b = B
        # v7x: 2 TensorCores -> split the (independent) batch when an
        # 8-aligned split exists; v5e/v6e: single TC -> one big block.
        try:
            kind = jax.devices()[0].device_kind.lower()
        except Exception:
            kind = ""
        if "v7" in kind and B % 16 == 0:
            block_b = B // 2
    assert B % block_b == 0, "batch must divide evenly into batch blocks"
    assert block_b == B or block_b % 8 == 0, (
        "block_b must be a multiple of 8 (sublane tiling) unless it spans B")
    n_blocks = B // block_b

    # TODO(synk): avoid this transpose by taking batch-major x and relayouting
    #             in-kernel (pltpu.einshape) once x-DMA becomes the bottleneck.
    x_tbe = jnp.transpose(x_bte, (1, 0, 2))         # time-major for the kernel
    len2d = lengths.reshape(B, 1).astype(jnp.int32)
    b2d = b.reshape(1, H)
    q_row = q.reshape(1, A)

    # VMEM budget: projection scratch + double-buffered x block + output.
    need = 4 * (T * block_b * H + 2 * T * block_b * E + 2 * block_b * 4 * H
                + E * H + H * H + H + H * A + A)
    vmem_limit = int(min(100 * 2**20, max(32 * 2**20, 2 * need)))

    out = pl.pallas_call(
        base_rnn_kernel,
        out_shape=jax.ShapeDtypeStruct((B, 4 * H), jnp.float32),
        grid_spec=pltpu.PrefetchScalarGridSpec(
            num_scalar_prefetch=0,
            grid=(n_blocks,),
            in_specs=[
                pl.BlockSpec((T, block_b, E), lambda i: (0, i, 0)),
                pl.BlockSpec((block_b, 1), lambda i: (i, 0)),
                pl.BlockSpec((E, H), lambda i: (0, 0)),
                pl.BlockSpec((H, H), lambda i: (0, 0)),
                pl.BlockSpec((1, H), lambda i: (0, 0)),
                pl.BlockSpec((H, A), lambda i: (0, 0)),
                pl.BlockSpec((1, A), lambda i: (0, 0)),
            ],
            out_specs=pl.BlockSpec((block_b, 4 * H), lambda i: (i, 0)),
            scratch_shapes=[pltpu.VMEM((T, block_b, H), jnp.float32)],
        ),
        compiler_params=pltpu.CompilerParams(
            dimension_semantics=("parallel",),
            vmem_limit_bytes=vmem_limit),
    )(x_tbe, len2d, wih, whh, b2d, wattn, q_row)

    # Already in the PyTorch concat layout: [last | mean | max | attn].
    return out


def base_rnn_reference(x_bte, lengths, wih, whh, b, wattn, q):
    """Pure-JAX reference mirroring the PyTorch forward."""
    B, T, E = x_bte.shape
    H = whh.shape[0]

    def scan_fn(h, x_t):
        h_new = jnp.tanh(x_t @ wih + h @ whh + b.reshape(1, H))
        return h_new, h_new

    xs = jnp.transpose(x_bte, (1, 0, 2))
    _, ys = lax.scan(scan_fn, jnp.zeros((B, H), jnp.float32), xs)
    Y = jnp.transpose(ys, (1, 0, 2))                       # (B, T, H)

    t_idx = jnp.arange(T)[None, :]
    valid = t_idx < lengths[:, None]
    Ym = jnp.where(valid[:, :, None], Y, 0.0)

    last = Ym[jnp.arange(B), lengths - 1, :]
    mean = jnp.sum(Ym, axis=1) / lengths[:, None].astype(jnp.float32)
    mx = jnp.max(Ym, axis=1)

    K = jax.nn.relu(Ym @ wattn)
    beta = jnp.tanh((K @ q)[..., 0])                       # (B, T)
    mask = (jnp.sum(jnp.abs(Ym), axis=2) > 0).astype(jnp.float32)
    exps = jnp.exp(beta - jnp.max(beta, axis=1, keepdims=True))
    mexps = exps * mask
    alpha = mexps / (jnp.sum(mexps, axis=1, keepdims=True) + 1e-14)
    attn = jnp.sum(Ym * alpha[:, :, None], axis=1)

    return jnp.concatenate([last, mean, mx, attn], axis=1)


if __name__ == "__main__":
    # p.embedding_dim=16, p.hidden_size=32, p.nb_layers=1, p.directions=1,
    # p.hinit=0, p.out=[-1, 0, 1, 32]  (so attn_size = 32, output_size = 128)
    B, T, E, H, A = 2, 8, 16, 32, 32

    key = jax.random.PRNGKey(0)
    k_x, k_wih, k_whh, k_b, k_wa, k_q = jax.random.split(key, 6)

    lengths = jnp.array([T, 5], dtype=jnp.int32)
    x = jax.random.normal(k_x, (B, T, E), dtype=jnp.float32)
    # zero out padded timesteps of the input (padded-sequence convention)
    x = x * (jnp.arange(T)[None, :, None] < lengths[:, None, None])

    # deterministic "xavier-ish" parameter init (shapes match nn.RNN / Attention)
    wih = jax.random.normal(k_wih, (E, H), dtype=jnp.float32) * 0.1   # W_ih^T
    whh = jax.random.normal(k_whh, (H, H), dtype=jnp.float32) * 0.1   # W_hh^T
    b = jax.random.normal(k_b, (H,), dtype=jnp.float32) * 0.1         # b_ih+b_hh
    wattn = jax.random.normal(k_wa, (H, A), dtype=jnp.float32) * 0.1  # linear.W^T
    q = jax.random.normal(k_q, (A, 1), dtype=jnp.float32) * 0.1       # attn query

    out = base_rnn_forward(x, lengths, wih, whh, b, wattn, q)
    out = jax.block_until_ready(out)

    ref = base_rnn_reference(x, lengths, wih, whh, b, wattn, q)
    assert out.shape == (B, 4 * H)
    assert jnp.allclose(out, ref, rtol=1e-3, atol=1e-3)

    print("KERNEL_OK")
</pallas_src>

<mosaic_0001>
module attributes {stable_mosaic.version = 11 : i64} {
  func.func @base_rnn_kernel(%arg0: i32, %arg1: memref<8x2x16xf32, #tpu.memory_space<vmem>>, %arg2: memref<2x1xi32, #tpu.memory_space<vmem>>, %arg3: memref<16x32xf32, #tpu.memory_space<vmem>>, %arg4: memref<32x32xf32, #tpu.memory_space<vmem>>, %arg5: memref<1x32xf32, #tpu.memory_space<vmem>>, %arg6: memref<32x32xf32, #tpu.memory_space<vmem>>, %arg7: memref<1x32xf32, #tpu.memory_space<vmem>>, %arg8: memref<2x128xf32, #tpu.memory_space<vmem>>, %arg9: memref<8x2x32xf32, #tpu.memory_space<vmem>>) attributes {dimension_semantics = [#tpu.dimension_semantics<parallel>], iteration_bounds = array<i64: 1>, scalar_prefetch = 0 : i64, scratch_operands = 1 : i64, tpu.core_type = #tpu.core_type<tc>, window_params = [{transform_indices = @transform_0, window_bounds = array<i64: 8, 2, 16>}, {transform_indices = @transform_1, window_bounds = array<i64: 2, 1>}, {pipeline_mode = #tpu.pipeline_mode<synchronous>, transform_indices = @transform_2, window_bounds = array<i64: 16, 32>}, {pipeline_mode = #tpu.pipeline_mode<synchronous>, transform_indices = @transform_3, window_bounds = array<i64: 32, 32>}, {pipeline_mode = #tpu.pipeline_mode<synchronous>, transform_indices = @transform_4, window_bounds = array<i64: 1, 32>}, {pipeline_mode = #tpu.pipeline_mode<synchronous>, transform_indices = @transform_5, window_bounds = array<i64: 32, 32>}, {pipeline_mode = #tpu.pipeline_mode<synchronous>, transform_indices = @transform_6, window_bounds = array<i64: 1, 32>}, {transform_indices = @transform_7, window_bounds = array<i64: 2, 128>}]} {
    %c0 = arith.constant 0 : index
    %c0_0 = arith.constant 0 : index
    %0 = vector.load %arg3[%c0, %c0_0] : memref<16x32xf32, #tpu.memory_space<vmem>>, vector<16x32xf32>
    %c0_1 = arith.constant 0 : index
    %c0_2 = arith.constant 0 : index
    %1 = vector.load %arg4[%c0_1, %c0_2] : memref<32x32xf32, #tpu.memory_space<vmem>>, vector<32x32xf32>
    %c0_3 = arith.constant 0 : index
    %c0_4 = arith.constant 0 : index
    %2 = vector.load %arg6[%c0_3, %c0_4] : memref<32x32xf32, #tpu.memory_space<vmem>>, vector<32x32xf32>
    %c0_5 = arith.constant 0 : index
    %c0_6 = arith.constant 0 : index
    %3 = vector.load %arg7[%c0_5, %c0_6] : memref<1x32xf32, #tpu.memory_space<vmem>>, vector<1x32xf32>
    %c0_7 = arith.constant 0 : index
    %c0_8 = arith.constant 0 : index
    %4 = vector.load %arg5[%c0_7, %c0_8] : memref<1x32xf32, #tpu.memory_space<vmem>>, vector<1x32xf32>
    %5 = vector.shape_cast %4 : vector<1x32xf32> to vector<1x32xf32>
    %6 = vector.broadcast %5 : vector<1x32xf32> to vector<2x32xf32>
    %c0_i32 = arith.constant 0 : i32
    %7 = arith.index_cast %c0_i32 : i32 to index
    %c0_9 = arith.constant 0 : index
    %c0_10 = arith.constant 0 : index
    %8 = vector.load %arg1[%7, %c0_9, %c0_10] : memref<8x2x16xf32, #tpu.memory_space<vmem>>, vector<1x2x16xf32>
    %9 = vector.shape_cast %8 : vector<1x2x16xf32> to vector<2x16xf32>
    %cst = arith.constant dense<0.000000e+00> : vector<2x32xf32>
    %10 = tpu.matmul %9, %0, %cst {dimension_numbers = #tpu.dot_dimension_numbers<[1], [0], [0], [1], [0, 0, 1, 1], [], []>} : vector<2x16xf32>, vector<16x32xf32>, vector<2x32xf32> -> vector<2x32xf32>
    %11 = arith.addf %10, %6 : vector<2x32xf32>
    %12 = arith.index_cast %c0_i32 : i32 to index
    %c0_11 = arith.constant 0 : index
    %c0_12 = arith.constant 0 : index
    %13 = vector.load %arg9[%12, %c0_11, %c0_12] : memref<8x2x32xf32, #tpu.memory_space<vmem>>, vector<1x2x32xf32>
    %14 = vector.shape_cast %13 : vector<1x2x32xf32> to vector<2x32xf32>
    %15 = vector.shape_cast %11 : vector<2x32xf32> to vector<1x2x32xf32>
    tpu.vector_store %arg9[%12, %c0_11, %c0_12], %15 {strides = array<i32>} : memref<8x2x32xf32, #tpu.memory_space<vmem>>, vector<1x2x32xf32>,
    %c1_i32 = arith.constant 1 : i32
    %16 = arith.index_cast %c1_i32 : i32 to index
    %c0_13 = arith.constant 0 : index
    %c0_14 = arith.constant 0 : index
    %17 = vector.load %arg1[%16, %c0_13, %c0_14] : memref<8x2x16xf32, #tpu.memory_space<vmem>>, vector<1x2x16xf32>
    %18 = vector.shape_cast %17 : vector<1x2x16xf32> to vector<2x16xf32>
    %cst_15 = arith.constant dense<0.000000e+00> : vector<2x32xf32>
    %19 = tpu.matmul %18, %0, %cst_15 {dimension_numbers = #tpu.dot_dimension_numbers<[1], [0], [0], [1], [0, 0, 1, 1], [], []>} : vector<2x16xf32>, vector<16x32xf32>, vector<2x32xf32> -> vector<2x32xf32>
    %20 = arith.addf %19, %6 : vector<2x32xf32>
    %21 = arith.index_cast %c1_i32 : i32 to index
    %c0_16 = arith.constant 0 : index
    %c0_17 = arith.constant 0 : index
    %22 = vector.load %arg9[%21, %c0_16, %c0_17] : memref<8x2x32xf32, #tpu.memory_space<vmem>>, vector<1x2x32xf32>
    %23 = vector.shape_cast %22 : vector<1x2x32xf32> to vector<2x32xf32>
    %24 = vector.shape_cast %20 : vector<2x32xf32> to vector<1x2x32xf32>
    tpu.vector_store %arg9[%21, %c0_16, %c0_17], %24 {strides = array<i32>} : memref<8x2x32xf32, #tpu.memory_space<vmem>>, vector<1x2x32xf32>,
    %c2_i32 = arith.constant 2 : i32
    %25 = arith.index_cast %c2_i32 : i32 to index
    %c0_18 = arith.constant 0 : index
    %c0_19 = arith.constant 0 : index
    %26 = vector.load %arg1[%25, %c0_18, %c0_19] : memref<8x2x16xf32, #tpu.memory_space<vmem>>, vector<1x2x16xf32>
    %27 = vector.shape_cast %26 : vector<1x2x16xf32> to vector<2x16xf32>
    %cst_20 = arith.constant dense<0.000000e+00> : vector<2x32xf32>
    %28 = tpu.matmul %27, %0, %cst_20 {dimension_numbers = #tpu.dot_dimension_numbers<[1], [0], [0], [1], [0, 0, 1, 1], [], []>} : vector<2x16xf32>, vector<16x32xf32>, vector<2x32xf32> -> vector<2x32xf32>
    %29 = arith.addf %28, %6 : vector<2x32xf32>
    %30 = arith.index_cast %c2_i32 : i32 to index
    %c0_21 = arith.constant 0 : index
    %c0_22 = arith.constant 0 : index
    %31 = vector.load %arg9[%30, %c0_21, %c0_22] : memref<8x2x32xf32, #tpu.memory_space<vmem>>, vector<1x2x32xf32>
    %32 = vector.shape_cast %31 : vector<1x2x32xf32> to vector<2x32xf32>
    %33 = vector.shape_cast %29 : vector<2x32xf32> to vector<1x2x32xf32>
    tpu.vector_store %arg9[%30, %c0_21, %c0_22], %33 {strides = array<i32>} : memref<8x2x32xf32, #tpu.memory_space<vmem>>, vector<1x2x32xf32>,
    %c3_i32 = arith.constant 3 : i32
    %34 = arith.index_cast %c3_i32 : i32 to index
    %c0_23 = arith.constant 0 : index
    %c0_24 = arith.constant 0 : index
    %35 = vector.load %arg1[%34, %c0_23, %c0_24] : memref<8x2x16xf32, #tpu.memory_space<vmem>>, vector<1x2x16xf32>
    %36 = vector.shape_cast %35 : vector<1x2x16xf32> to vector<2x16xf32>
    %cst_25 = arith.constant dense<0.000000e+00> : vector<2x32xf32>
    %37 = tpu.matmul %36, %0, %cst_25 {dimension_numbers = #tpu.dot_dimension_numbers<[1], [0], [0], [1], [0, 0, 1, 1], [], []>} : vector<2x16xf32>, vector<16x32xf32>, vector<2x32xf32> -> vector<2x32xf32>
    %38 = arith.addf %37, %6 : vector<2x32xf32>
    %39 = arith.index_cast %c3_i32 : i32 to index
    %c0_26 = arith.constant 0 : index
    %c0_27 = arith.constant 0 : index
    %40 = vector.load %arg9[%39, %c0_26, %c0_27] : memref<8x2x32xf32, #tpu.memory_space<vmem>>, vector<1x2x32xf32>
    %41 = vector.shape_cast %40 : vector<1x2x32xf32> to vector<2x32xf32>
    %42 = vector.shape_cast %38 : vector<2x32xf32> to vector<1x2x32xf32>
    tpu.vector_store %arg9[%39, %c0_26, %c0_27], %42 {strides = array<i32>} : memref<8x2x32xf32, #tpu.memory_space<vmem>>, vector<1x2x32xf32>,
    %c4_i32 = arith.constant 4 : i32
    %43 = arith.index_cast %c4_i32 : i32 to index
    %c0_28 = arith.constant 0 : index
    %c0_29 = arith.constant 0 : index
    %44 = vector.load %arg1[%43, %c0_28, %c0_29] : memref<8x2x16xf32, #tpu.memory_space<vmem>>, vector<1x2x16xf32>
    %45 = vector.shape_cast %44 : vector<1x2x16xf32> to vector<2x16xf32>
    %cst_30 = arith.constant dense<0.000000e+00> : vector<2x32xf32>
    %46 = tpu.matmul %45, %0, %cst_30 {dimension_numbers = #tpu.dot_dimension_numbers<[1], [0], [0], [1], [0, 0, 1, 1], [], []>} : vector<2x16xf32>, vector<16x32xf32>, vector<2x32xf32> -> vector<2x32xf32>
    %47 = arith.addf %46, %6 : vector<2x32xf32>
    %48 = arith.index_cast %c4_i32 : i32 to index
    %c0_31 = arith.constant 0 : index
    %c0_32 = arith.constant 0 : index
    %49 = vector.load %arg9[%48, %c0_31, %c0_32] : memref<8x2x32xf32, #tpu.memory_space<vmem>>, vector<1x2x32xf32>
    %50 = vector.shape_cast %49 : vector<1x2x32xf32> to vector<2x32xf32>
    %51 = vector.shape_cast %47 : vector<2x32xf32> to vector<1x2x32xf32>
    tpu.vector_store %arg9[%48, %c0_31, %c0_32], %51 {strides = array<i32>} : memref<8x2x32xf32, #tpu.memory_space<vmem>>, vector<1x2x32xf32>,
    %c5_i32 = arith.constant 5 : i32
    %52 = arith.index_cast %c5_i32 : i32 to index
    %c0_33 = arith.constant 0 : index
    %c0_34 = arith.constant 0 : index
    %53 = vector.load %arg1[%52, %c0_33, %c0_34] : memref<8x2x16xf32, #tpu.memory_space<vmem>>, vector<1x2x16xf32>
    %54 = vector.shape_cast %53 : vector<1x2x16xf32> to vector<2x16xf32>
    %cst_35 = arith.constant dense<0.000000e+00> : vector<2x32xf32>
    %55 = tpu.matmul %54, %0, %cst_35 {dimension_numbers = #tpu.dot_dimension_numbers<[1], [0], [0], [1], [0, 0, 1, 1], [], []>} : vector<2x16xf32>, vector<16x32xf32>, vector<2x32xf32> -> vector<2x32xf32>
    %56 = arith.addf %55, %6 : vector<2x32xf32>
    %57 = arith.index_cast %c5_i32 : i32 to index
    %c0_36 = arith.constant 0 : index
    %c0_37 = arith.constant 0 : index
    %58 = vector.load %arg9[%57, %c0_36, %c0_37] : memref<8x2x32xf32, #tpu.memory_space<vmem>>, vector<1x2x32xf32>
    %59 = vector.shape_cast %58 : vector<1x2x32xf32> to vector<2x32xf32>
    %60 = vector.shape_cast %56 : vector<2x32xf32> to vector<1x2x32xf32>
    tpu.vector_store %arg9[%57, %c0_36, %c0_37], %60 {strides = array<i32>} : memref<8x2x32xf32, #tpu.memory_space<vmem>>, vector<1x2x32xf32>,
    %c6_i32 = arith.constant 6 : i32
    %61 = arith.index_cast %c6_i32 : i32 to index
    %c0_38 = arith.constant 0 : index
    %c0_39 = arith.constant 0 : index
    %62 = vector.load %arg1[%61, %c0_38, %c0_39] : memref<8x2x16xf32, #tpu.memory_space<vmem>>, vector<1x2x16xf32>
    %63 = vector.shape_cast %62 : vector<1x2x16xf32> to vector<2x16xf32>
    %cst_40 = arith.constant dense<0.000000e+00> : vector<2x32xf32>
    %64 = tpu.matmul %63, %0, %cst_40 {dimension_numbers = #tpu.dot_dimension_numbers<[1], [0], [0], [1], [0, 0, 1, 1], [], []>} : vector<2x16xf32>, vector<16x32xf32>, vector<2x32xf32> -> vector<2x32xf32>
    %65 = arith.addf %64, %6 : vector<2x32xf32>
    %66 = arith.index_cast %c6_i32 : i32 to index
    %c0_41 = arith.constant 0 : index
    %c0_42 = arith.constant 0 : index
    %67 = vector.load %arg9[%66, %c0_41, %c0_42] : memref<8x2x32xf32, #tpu.memory_space<vmem>>, vector<1x2x32xf32>
    %68 = vector.shape_cast %67 : vector<1x2x32xf32> to vector<2x32xf32>
    %69 = vector.shape_cast %65 : vector<2x32xf32> to vector<1x2x32xf32>
    tpu.vector_store %arg9[%66, %c0_41, %c0_42], %69 {strides = array<i32>} : memref<8x2x32xf32, #tpu.memory_space<vmem>>, vector<1x2x32xf32>,
    %c7_i32 = arith.constant 7 : i32
    %70 = arith.index_cast %c7_i32 : i32 to index
    %c0_43 = arith.constant 0 : index
    %c0_44 = arith.constant 0 : index
    %71 = vector.load %arg1[%70, %c0_43, %c0_44] : memref<8x2x16xf32, #tpu.memory_space<vmem>>, vector<1x2x16xf32>
    %72 = vector.shape_cast %71 : vector<1x2x16xf32> to vector<2x16xf32>
    %cst_45 = arith.constant dense<0.000000e+00> : vector<2x32xf32>
    %73 = tpu.matmul %72, %0, %cst_45 {dimension_numbers = #tpu.dot_dimension_numbers<[1], [0], [0], [1], [0, 0, 1, 1], [], []>} : vector<2x16xf32>, vector<16x32xf32>, vector<2x32xf32> -> vector<2x32xf32>
    %74 = arith.addf %73, %6 : vector<2x32xf32>
    %75 = arith.index_cast %c7_i32 : i32 to index
    %c0_46 = arith.constant 0 : index
    %c0_47 = arith.constant 0 : index
    %76 = vector.load %arg9[%75, %c0_46, %c0_47] : memref<8x2x32xf32, #tpu.memory_space<vmem>>, vector<1x2x32xf32>
    %77 = vector.shape_cast %76 : vector<1x2x32xf32> to vector<2x32xf32>
    %78 = vector.shape_cast %74 : vector<2x32xf32> to vector<1x2x32xf32>
    tpu.vector_store %arg9[%75, %c0_46, %c0_47], %78 {strides = array<i32>} : memref<8x2x32xf32, #tpu.memory_space<vmem>>, vector<1x2x32xf32>,
    %c8_i32 = arith.constant 8 : i32
    %c0_48 = arith.constant 0 : index
    %c0_49 = arith.constant 0 : index
    %79 = vector.load %arg2[%c0_48, %c0_49] : memref<2x1xi32, #tpu.memory_space<vmem>>, vector<2x1xi32>
    %80 = vector.extract_strided_slice %79 {offsets = [0, 0], sizes = [1, 1], strides = [1, 1]} : vector<2x1xi32> to vector<1x1xi32>
    %81 = vector.extract_strided_slice %79 {offsets = [1, 0], sizes = [1, 1], strides = [1, 1]} : vector<2x1xi32> to vector<1x1xi32>
    %cst_50 = arith.constant 0.000000e+00 : f32
    %82 = vector.broadcast %cst_50 : f32 to vector<1x32xf32>
    %cst_51 = arith.constant 0.000000e+00 : f32
    %83 = vector.broadcast %cst_51 : f32 to vector<1x32xf32>
    %cst_52 = arith.constant 0.000000e+00 : f32
    %84 = vector.broadcast %cst_52 : f32 to vector<1x32xf32>
    %cst_53 = arith.constant 0xFF800000 : f32
    %85 = vector.broadcast %cst_53 : f32 to vector<1x32xf32>
    %cst_54 = arith.constant 0.000000e+00 : f32
    %86 = vector.broadcast %cst_54 : f32 to vector<1x32xf32>
    %cst_55 = arith.constant 0xFF800000 : f32
    %87 = vector.broadcast %cst_55 : f32 to vector<1x1xf32>
    %cst_56 = arith.constant 0.000000e+00 : f32
    %88 = vector.broadcast %cst_56 : f32 to vector<1x1xf32>
    %cst_57 = arith.constant 0.000000e+00 : f32
    %89 = vector.broadcast %cst_57 : f32 to vector<1x32xf32>
    %cst_58 = arith.constant 0.000000e+00 : f32
    %90 = vector.broadcast %cst_58 : f32 to vector<1x32xf32>
    %cst_59 = arith.constant 0.000000e+00 : f32
    %91 = vector.broadcast %cst_59 : f32 to vector<1x32xf32>
    %cst_60 = arith.constant 0xFF800000 : f32
    %92 = vector.broadcast %cst_60 : f32 to vector<1x32xf32>
    %cst_61 = arith.constant 0.000000e+00 : f32
    %93 = vector.broadcast %cst_61 : f32 to vector<1x32xf32>
    %cst_62 = arith.constant 0xFF800000 : f32
    %94 = vector.broadcast %cst_62 : f32 to vector<1x1xf32>
    %cst_63 = arith.constant 0.000000e+00 : f32
    %95 = vector.broadcast %cst_63 : f32 to vector<1x1xf32>
    %c0_i32_64 = arith.constant 0 : i32
    %96 = arith.index_cast %c0_i32_64 : i32 to index
    %c0_65 = arith.constant 0 : index
    %c0_66 = arith.constant 0 : index
    %97 = vector.load %arg9[%96, %c0_65, %c0_66] : memref<8x2x32xf32, #tpu.memory_space<vmem>>, vector<1x2x32xf32>
    %98 = vector.shape_cast %97 : vector<1x2x32xf32> to vector<2x32xf32>
    %99 = vector.extract_strided_slice %98 {offsets = [0, 0], sizes = [1, 32], strides = [1, 1]} : vector<2x32xf32> to vector<1x32xf32>
    %cst_67 = arith.constant dense<0.000000e+00> : vector<1x32xf32>
    %100 = tpu.matmul %82, %1, %cst_67 {dimension_numbers = #tpu.dot_dimension_numbers<[1], [0], [0], [1], [0, 0, 1, 1], [], []>} : vector<1x32xf32>, vector<32x32xf32>, vector<1x32xf32> -> vector<1x32xf32>
    %101 = arith.addf %99, %100 : vector<1x32xf32>
    %102 = math.tanh %101 : vector<1x32xf32>
    %103 = vector.broadcast %c0_i32_64 : i32 to vector<1x1xi32>
    %104 = arith.cmpi slt, %103, %80 : vector<1x1xi32>
    %105 = arith.extui %104 : vector<1x1xi1> to vector<1x1xi32>
    %106 = arith.sitofp %105 : vector<1x1xi32> to vector<1x1xf32>
    %107 = vector.broadcast %106 : vector<1x1xf32> to vector<1x32xf32>
    %108 = arith.mulf %102, %107 : vector<1x32xf32>
    %c1_i32_68 = arith.constant 1 : i32
    %109 = vector.broadcast %c1_i32_68 : i32 to vector<1x1xi32>
    %110 = arith.subi %80, %109 : vector<1x1xi32>
    %111 = vector.broadcast %c0_i32_64 : i32 to vector<1x1xi32>
    %112 = arith.cmpi eq, %111, %110 : vector<1x1xi32>
    %113 = vector.shape_cast %112 : vector<1x1xi1> to vector<1x1xi1>
    %114 = vector.broadcast %113 : vector<1x1xi1> to vector<1x32xi1>
    %115 = arith.select %114, %102, %83 : vector<1x32xi1>, vector<1x32xf32>
    %116 = arith.addf %84, %108 : vector<1x32xf32>
    %117 = arith.maximumf %85, %108 : vector<1x32xf32>
    %cst_69 = arith.constant dense<0.000000e+00> : vector<1x32xf32>
    %118 = tpu.matmul %108, %2, %cst_69 {dimension_numbers = #tpu.dot_dimension_numbers<[1], [0], [0], [1], [0, 0, 1, 1], [], []>} : vector<1x32xf32>, vector<32x32xf32>, vector<1x32xf32> -> vector<1x32xf32>
    %cst_70 = arith.constant 0.000000e+00 : f32
    %119 = vector.broadcast %cst_70 : f32 to vector<1x32xf32>
    %120 = arith.maximumf %118, %119 : vector<1x32xf32>
    %121 = arith.mulf %120, %3 : vector<1x32xf32>
    %cst_71 = arith.constant dense<0.000000e+00> : vector<1xf32>
    %122 = vector.multi_reduction <add>, %121, %cst_71 [1] : vector<1x32xf32> to vector<1xf32>
    %123 = vector.shape_cast %122 : vector<1xf32> to vector<1x1xf32>
    %124 = math.tanh %123 : vector<1x1xf32>
    %125 = arith.maximumf %87, %124 : vector<1x1xf32>
    %126 = arith.subf %87, %125 : vector<1x1xf32>
    %127 = math.exp %126 : vector<1x1xf32>
    %128 = arith.subf %124, %125 : vector<1x1xf32>
    %129 = math.exp %128 : vector<1x1xf32>
    %130 = arith.mulf %129, %106 : vector<1x1xf32>
    %131 = arith.mulf %88, %127 : vector<1x1xf32>
    %132 = arith.addf %131, %130 : vector<1x1xf32>
    %133 = vector.broadcast %127 : vector<1x1xf32> to vector<1x32xf32>
    %134 = arith.mulf %86, %133 : vector<1x32xf32>
    %135 = vector.broadcast %130 : vector<1x1xf32> to vector<1x32xf32>
    %136 = arith.mulf %135, %108 : vector<1x32xf32>
    %137 = arith.addf %134, %136 : vector<1x32xf32>
    %138 = vector.extract_strided_slice %98 {offsets = [1, 0], sizes = [1, 32], strides = [1, 1]} : vector<2x32xf32> to vector<1x32xf32>
    %cst_72 = arith.constant dense<0.000000e+00> : vector<1x32xf32>
    %139 = tpu.matmul %89, %1, %cst_72 {dimension_numbers = #tpu.dot_dimension_numbers<[1], [0], [0], [1], [0, 0, 1, 1], [], []>} : vector<1x32xf32>, vector<32x32xf32>, vector<1x32xf32> -> vector<1x32xf32>
    %140 = arith.addf %138, %139 : vector<1x32xf32>
    %141 = math.tanh %140 : vector<1x32xf32>
    %142 = vector.broadcast %c0_i32_64 : i32 to vector<1x1xi32>
    %143 = arith.cmpi slt, %142, %81 : vector<1x1xi32>
    %144 = arith.extui %143 : vector<1x1xi1> to vector<1x1xi32>
    %145 = arith.sitofp %144 : vector<1x1xi32> to vector<1x1xf32>
    %146 = vector.broadcast %145 : vector<1x1xf32> to vector<1x32xf32>
    %147 = arith.mulf %141, %146 : vector<1x32xf32>
    %c1_i32_73 = arith.constant 1 : i32
    %148 = vector.broadcast %c1_i32_73 : i32 to vector<1x1xi32>
    %149 = arith.subi %81, %148 : vector<1x1xi32>
    %150 = vector.broadcast %c0_i32_64 : i32 to vector<1x1xi32>
    %151 = arith.cmpi eq, %150, %149 : vector<1x1xi32>
    %152 = vector.shape_cast %151 : vector<1x1xi1> to vector<1x1xi1>
    %153 = vector.broadcast %152 : vector<1x1xi1> to vector<1x32xi1>
    %154 = arith.select %153, %141, %90 : vector<1x32xi1>, vector<1x32xf32>
    %155 = arith.addf %91, %147 : vector<1x32xf32>
    %156 = arith.maximumf %92, %147 : vector<1x32xf32>
    %cst_74 = arith.constant dense<0.000000e+00> : vector<1x32xf32>
    %157 = tpu.matmul %147, %2, %cst_74 {dimension_numbers = #tpu.dot_dimension_numbers<[1], [0], [0], [1], [0, 0, 1, 1], [], []>} : vector<1x32xf32>, vector<32x32xf32>, vector<1x32xf32> -> vector<1x32xf32>
    %cst_75 = arith.constant 0.000000e+00 : f32
    %158 = vector.broadcast %cst_75 : f32 to vector<1x32xf32>
    %159 = arith.maximumf %157, %158 : vector<1x32xf32>
    %160 = arith.mulf %159, %3 : vector<1x32xf32>
    %cst_76 = arith.constant dense<0.000000e+00> : vector<1xf32>
    %161 = vector.multi_reduction <add>, %160, %cst_76 [1] : vector<1x32xf32> to vector<1xf32>
    %162 = vector.shape_cast %161 : vector<1xf32> to vector<1x1xf32>
    %163 = math.tanh %162 : vector<1x1xf32>
    %164 = arith.maximumf %94, %163 : vector<1x1xf32>
    %165 = arith.subf %94, %164 : vector<1x1xf32>
    %166 = math.exp %165 : vector<1x1xf32>
    %167 = arith.subf %163, %164 : vector<1x1xf32>
    %168 = math.exp %167 : vector<1x1xf32>
    %169 = arith.mulf %168, %145 : vector<1x1xf32>
    %170 = arith.mulf %95, %166 : vector<1x1xf32>
    %171 = arith.addf %170, %169 : vector<1x1xf32>
    %172 = vector.broadcast %166 : vector<1x1xf32> to vector<1x32xf32>
    %173 = arith.mulf %93, %172 : vector<1x32xf32>
    %174 = vector.broadcast %169 : vector<1x1xf32> to vector<1x32xf32>
    %175 = arith.mulf %174, %147 : vector<1x32xf32>
    %176 = arith.addf %173, %175 : vector<1x32xf32>
    %c1_i32_77 = arith.constant 1 : i32
    %177 = arith.index_cast %c1_i32_77 : i32 to index
    %c0_78 = arith.constant 0 : index
    %c0_79 = arith.constant 0 : index
    %178 = vector.load %arg9[%177, %c0_78, %c0_79] : memref<8x2x32xf32, #tpu.memory_space<vmem>>, vector<1x2x32xf32>
    %179 = vector.shape_cast %178 : vector<1x2x32xf32> to vector<2x32xf32>
    %180 = vector.extract_strided_slice %179 {offsets = [0, 0], sizes = [1, 32], strides = [1, 1]} : vector<2x32xf32> to vector<1x32xf32>
    %cst_80 = arith.constant dense<0.000000e+00> : vector<1x32xf32>
    %181 = tpu.matmul %102, %1, %cst_80 {dimension_numbers = #tpu.dot_dimension_numbers<[1], [0], [0], [1], [0, 0, 1, 1], [], []>} : vector<1x32xf32>, vector<32x32xf32>, vector<1x32xf32> -> vector<1x32xf32>
    %182 = arith.addf %180, %181 : vector<1x32xf32>
    %183 = math.tanh %182 : vector<1x32xf32>
    %184 = vector.broadcast %c1_i32_77 : i32 to vector<1x1xi32>
    %185 = arith.cmpi slt, %184, %80 : vector<1x1xi32>
    %186 = arith.extui %185 : vector<1x1xi1> to vector<1x1xi32>
    %187 = arith.sitofp %186 : vector<1x1xi32> to vector<1x1xf32>
    %188 = vector.broadcast %187 : vector<1x1xf32> to vector<1x32xf32>
    %189 = arith.mulf %183, %188 : vector<1x32xf32>
    %c1_i32_81 = arith.constant 1 : i32
    %190 = vector.broadcast %c1_i32_81 : i32 to vector<1x1xi32>
    %191 = arith.subi %80, %190 : vector<1x1xi32>
    %192 = vector.broadcast %c1_i32_77 : i32 to vector<1x1xi32>
    %193 = arith.cmpi eq, %192, %191 : vector<1x1xi32>
    %194 = vector.shape_cast %193 : vector<1x1xi1> to vector<1x1xi1>
    %195 = vector.broadcast %194 : vector<1x1xi1> to vector<1x32xi1>
    %196 = arith.select %195, %183, %115 : vector<1x32xi1>, vector<1x32xf32>
    %197 = arith.addf %116, %189 : vector<1x32xf32>
    %198 = arith.maximumf %117, %189 : vector<1x32xf32>
    %cst_82 = arith.constant dense<0.000000e+00> : vector<1x32xf32>
    %199 = tpu.matmul %189, %2, %cst_82 {dimension_numbers = #tpu.dot_dimension_numbers<[1], [0], [0], [1], [0, 0, 1, 1], [], []>} : vector<1x32xf32>, vector<32x32xf32>, vector<1x32xf32> -> vector<1x32xf32>
    %cst_83 = arith.constant 0.000000e+00 : f32
    %200 = vector.broadcast %cst_83 : f32 to vector<1x32xf32>
    %201 = arith.maximumf %199, %200 : vector<1x32xf32>
    %202 = arith.mulf %201, %3 : vector<1x32xf32>
    %cst_84 = arith.constant dense<0.000000e+00> : vector<1xf32>
    %203 = vector.multi_reduction <add>, %202, %cst_84 [1] : vector<1x32xf32> to vector<1xf32>
    %204 = vector.shape_cast %203 : vector<1xf32> to vector<1x1xf32>
    %205 = math.tanh %204 : vector<1x1xf32>
    %206 = arith.maximumf %125, %205 : vector<1x1xf32>
    %207 = arith.subf %125, %206 : vector<1x1xf32>
    %208 = math.exp %207 : vector<1x1xf32>
    %209 = arith.subf %205, %206 : vector<1x1xf32>
    %210 = math.exp %209 : vector<1x1xf32>
    %211 = arith.mulf %210, %187 : vector<1x1xf32>
    %212 = arith.mulf %132, %208 : vector<1x1xf32>
    %213 = arith.addf %212, %211 : vector<1x1xf32>
    %214 = vector.broadcast %208 : vector<1x1xf32> to vector<1x32xf32>
    %215 = arith.mulf %137, %214 : vector<1x32xf32>
    %216 = vector.broadcast %211 : vector<1x1xf32> to vector<1x32xf32>
    %217 = arith.mulf %216, %189 : vector<1x32xf32>
    %218 = arith.addf %215, %217 : vector<1x32xf32>
    %219 = vector.extract_strided_slice %179 {offsets = [1, 0], sizes = [1, 32], strides = [1, 1]} : vector<2x32xf32> to vector<1x32xf32>
    %cst_85 = arith.constant dense<0.000000e+00> : vector<1x32xf32>
    %220 = tpu.matmul %141, %1, %cst_85 {dimension_numbers = #tpu.dot_dimension_numbers<[1], [0], [0], [1], [0, 0, 1, 1], [], []>} : vector<1x32xf32>, vector<32x32xf32>, vector<1x32xf32> -> vector<1x32xf32>
    %221 = arith.addf %219, %220 : vector<1x32xf32>
    %222 = math.tanh %221 : vector<1x32xf32>
    %223 = vector.broadcast %c1_i32_77 : i32 to vector<1x1xi32>
    %224 = arith.cmpi slt, %223, %81 : vector<1x1xi32>
    %225 = arith.extui %224 : vector<1x1xi1> to vector<1x1xi32>
    %226 = arith.sitofp %225 : vector<1x1xi32> to vector<1x1xf32>
    %227 = vector.broadcast %226 : vector<1x1xf32> to vector<1x32xf32>
    %228 = arith.mulf %222, %227 : vector<1x32xf32>
    %c1_i32_86 = arith.constant 1 : i32
    %229 = vector.broadcast %c1_i32_86 : i32 to vector<1x1xi32>
    %230 = arith.subi %81, %229 : vector<1x1xi32>
    %231 = vector.broadcast %c1_i32_77 : i32 to vector<1x1xi32>
    %232 = arith.cmpi eq, %231, %230 : vector<1x1xi32>
    %233 = vector.shape_cast %232 : vector<1x1xi1> to vector<1x1xi1>
    %234 = vector.broadcast %233 : vector<1x1xi1> to vector<1x32xi1>
    %235 = arith.select %234, %222, %154 : vector<1x32xi1>, vector<1x32xf32>
    %236 = arith.addf %155, %228 : vector<1x32xf32>
    %237 = arith.maximumf %156, %228 : vector<1x32xf32>
    %cst_87 = arith.constant dense<0.000000e+00> : vector<1x32xf32>
    %238 = tpu.matmul %228, %2, %cst_87 {dimension_numbers = #tpu.dot_dimension_numbers<[1], [0], [0], [1], [0, 0, 1, 1], [], []>} : vector<1x32xf32>, vector<32x32xf32>, vector<1x32xf32> -> vector<1x32xf32>
    %cst_88 = arith.constant 0.000000e+00 : f32
    %239 = vector.broadcast %cst_88 : f32 to vector<1x32xf32>
    %240 = arith.maximumf %238, %239 : vector<1x32xf32>
    %241 = arith.mulf %240, %3 : vector<1x32xf32>
    %cst_89 = arith.constant dense<0.000000e+00> : vector<1xf32>
    %242 = vector.multi_reduction <add>, %241, %cst_89 [1] : vector<1x32xf32> to vector<1xf32>
    %243 = vector.shape_cast %242 : vector<1xf32> to vector<1x1xf32>
    %244 = math.tanh %243 : vector<1x1xf32>
    %245 = arith.maximumf %164, %244 : vector<1x1xf32>
    %246 = arith.subf %164, %245 : vector<1x1xf32>
    %247 = math.exp %246 : vector<1x1xf32>
    %248 = arith.subf %244, %245 : vector<1x1xf32>
    %249 = math.exp %248 : vector<1x1xf32>
    %250 = arith.mulf %249, %226 : vector<1x1xf32>
    %251 = arith.mulf %171, %247 : vector<1x1xf32>
    %252 = arith.addf %251, %250 : vector<1x1xf32>
    %253 = vector.broadcast %247 : vector<1x1xf32> to vector<1x32xf32>
    %254 = arith.mulf %176, %253 : vector<1x32xf32>
    %255 = vector.broadcast %250 : vector<1x1xf32> to vector<1x32xf32>
    %256 = arith.mulf %255, %228 : vector<1x32xf32>
    %257 = arith.addf %254, %256 : vector<1x32xf32>
    %c2_i32_90 = arith.constant 2 : i32
    %258 = arith.index_cast %c2_i32_90 : i32 to index
    %c0_91 = arith.constant 0 : index
    %c0_92 = arith.constant 0 : index
    %259 = vector.load %arg9[%258, %c0_91, %c0_92] : memref<8x2x32xf32, #tpu.memory_space<vmem>>, vector<1x2x32xf32>
    %260 = vector.shape_cast %259 : vector<1x2x32xf32> to vector<2x32xf32>
    %261 = vector.extract_strided_slice %260 {offsets = [0, 0], sizes = [1, 32], strides = [1, 1]} : vector<2x32xf32> to vector<1x32xf32>
    %cst_93 = arith.constant dense<0.000000e+00> : vector<1x32xf32>
    %262 = tpu.matmul %183, %1, %cst_93 {dimension_numbers = #tpu.dot_dimension_numbers<[1], [0], [0], [1], [0, 0, 1, 1], [], []>} : vector<1x32xf32>, vector<32x32xf32>, vector<1x32xf32> -> vector<1x32xf32>
    %263 = arith.addf %261, %262 : vector<1x32xf32>
    %264 = math.tanh %263 : vector<1x32xf32>
    %265 = vector.broadcast %c2_i32_90 : i32 to vector<1x1xi32>
    %266 = arith.cmpi slt, %265, %80 : vector<1x1xi32>
    %267 = arith.extui %266 : vector<1x1xi1> to vector<1x1xi32>
    %268 = arith.sitofp %267 : vector<1x1xi32> to vector<1x1xf32>
    %269 = vector.broadcast %268 : vector<1x1xf32> to vector<1x32xf32>
    %270 = arith.mulf %264, %269 : vector<1x32xf32>
    %c1_i32_94 = arith.constant 1 : i32
    %271 = vector.broadcast %c1_i32_94 : i32 to vector<1x1xi32>
    %272 = arith.subi %80, %271 : vector<1x1xi32>
    %273 = vector.broadcast %c2_i32_90 : i32 to vector<1x1xi32>
    %274 = arith.cmpi eq, %273, %272 : vector<1x1xi32>
    %275 = vector.shape_cast %274 : vector<1x1xi1> to vector<1x1xi1>
    %276 = vector.broadcast %275 : vector<1x1xi1> to vector<1x32xi1>
    %277 = arith.select %276, %264, %196 : vector<1x32xi1>, vector<1x32xf32>
    %278 = arith.addf %197, %270 : vector<1x32xf32>
    %279 = arith.maximumf %198, %270 : vector<1x32xf32>
    %cst_95 = arith.constant dense<0.000000e+00> : vector<1x32xf32>
    %280 = tpu.matmul %270, %2, %cst_95 {dimension_numbers = #tpu.dot_dimension_numbers<[1], [0], [0], [1], [0, 0, 1, 1], [], []>} : vector<1x32xf32>, vector<32x32xf32>, vector<1x32xf32> -> vector<1x32xf32>
    %cst_96 = arith.constant 0.000000e+00 : f32
    %281 = vector.broadcast %cst_96 : f32 to vector<1x32xf32>
    %282 = arith.maximumf %280, %281 : vector<1x32xf32>
    %283 = arith.mulf %282, %3 : vector<1x32xf32>
    %cst_97 = arith.constant dense<0.000000e+00> : vector<1xf32>
    %284 = vector.multi_reduction <add>, %283, %cst_97 [1] : vector<1x32xf32> to vector<1xf32>
    %285 = vector.shape_cast %284 : vector<1xf32> to vector<1x1xf32>
    %286 = math.tanh %285 : vector<1x1xf32>
    %287 = arith.maximumf %206, %286 : vector<1x1xf32>
    %288 = arith.subf %206, %287 : vector<1x1xf32>
    %289 = math.exp %288 : vector<1x1xf32>
    %290 = arith.subf %286, %287 : vector<1x1xf32>
    %291 = math.exp %290 : vector<1x1xf32>
    %292 = arith.mulf %291, %268 : vector<1x1xf32>
    %293 = arith.mulf %213, %289 : vector<1x1xf32>
    %294 = arith.addf %293, %292 : vector<1x1xf32>
    %295 = vector.broadcast %289 : vector<1x1xf32> to vector<1x32xf32>
    %296 = arith.mulf %218, %295 : vector<1x32xf32>
    %297 = vector.broadcast %292 : vector<1x1xf32> to vector<1x32xf32>
    %298 = arith.mulf %297, %270 : vector<1x32xf32>
    %299 = arith.addf %296, %298 : vector<1x32xf32>
    %300 = vector.extract_strided_slice %260 {offsets = [1, 0], sizes = [1, 32], strides = [1, 1]} : vector<2x32xf32> to vector<1x32xf32>
    %cst_98 = arith.constant dense<0.000000e+00> : vector<1x32xf32>
    %301 = tpu.matmul %222, %1, %cst_98 {dimension_numbers = #tpu.dot_dimension_numbers<[1], [0], [0], [1], [0, 0, 1, 1], [], []>} : vector<1x32xf32>, vector<32x32xf32>, vector<1x32xf32> -> vector<1x32xf32>
    %302 = arith.addf %300, %301 : vector<1x32xf32>
    %303 = math.tanh %302 : vector<1x32xf32>
    %304 = vector.broadcast %c2_i32_90 : i32 to vector<1x1xi32>
    %305 = arith.cmpi slt, %304, %81 : vector<1x1xi32>
    %306 = arith.extui %305 : vector<1x1xi1> to vector<1x1xi32>
    %307 = arith.sitofp %306 : vector<1x1xi32> to vector<1x1xf32>
    %308 = vector.broadcast %307 : vector<1x1xf32> to vector<1x32xf32>
    %309 = arith.mulf %303, %308 : vector<1x32xf32>
    %c1_i32_99 = arith.constant 1 : i32
    %310 = vector.broadcast %c1_i32_99 : i32 to vector<1x1xi32>
    %311 = arith.subi %81, %310 : vector<1x1xi32>
    %312 = vector.broadcast %c2_i32_90 : i32 to vector<1x1xi32>
    %313 = arith.cmpi eq, %312, %311 : vector<1x1xi32>
    %314 = vector.shape_cast %313 : vector<1x1xi1> to vector<1x1xi1>
    %315 = vector.broadcast %314 : vector<1x1xi1> to vector<1x32xi1>
    %316 = arith.select %315, %303, %235 : vector<1x32xi1>, vector<1x32xf32>
    %317 = arith.addf %236, %309 : vector<1x32xf32>
    %318 = arith.maximumf %237, %309 : vector<1x32xf32>
    %cst_100 = arith.constant dense<0.000000e+00> : vector<1x32xf32>
    %319 = tpu.matmul %309, %2, %cst_100 {dimension_numbers = #tpu.dot_dimension_numbers<[1], [0], [0], [1], [0, 0, 1, 1], [], []>} : vector<1x32xf32>, vector<32x32xf32>, vector<1x32xf32> -> vector<1x32xf32>
    %cst_101 = arith.constant 0.000000e+00 : f32
    %320 = vector.broadcast %cst_101 : f32 to vector<1x32xf32>
    %321 = arith.maximumf %319, %320 : vector<1x32xf32>
    %322 = arith.mulf %321, %3 : vector<1x32xf32>
    %cst_102 = arith.constant dense<0.000000e+00> : vector<1xf32>
    %323 = vector.multi_reduction <add>, %322, %cst_102 [1] : vector<1x32xf32> to vector<1xf32>
    %324 = vector.shape_cast %323 : vector<1xf32> to vector<1x1xf32>
    %325 = math.tanh %324 : vector<1x1xf32>
    %326 = arith.maximumf %245, %325 : vector<1x1xf32>
    %327 = arith.subf %245, %326 : vector<1x1xf32>
    %328 = math.exp %327 : vector<1x1xf32>
    %329 = arith.subf %325, %326 : vector<1x1xf32>
    %330 = math.exp %329 : vector<1x1xf32>
    %331 = arith.mulf %330, %307 : vector<1x1xf32>
    %332 = arith.mulf %252, %328 : vector<1x1xf32>
    %333 = arith.addf %332, %331 : vector<1x1xf32>
    %334 = vector.broadcast %328 : vector<1x1xf32> to vector<1x32xf32>
    %335 = arith.mulf %257, %334 : vector<1x32xf32>
    %336 = vector.broadcast %331 : vector<1x1xf32> to vector<1x32xf32>
    %337 = arith.mulf %336, %309 : vector<1x32xf32>
    %338 = arith.addf %335, %337 : vector<1x32xf32>
    %c3_i32_103 = arith.constant 3 : i32
    %339 = arith.index_cast %c3_i32_103 : i32 to index
    %c0_104 = arith.constant 0 : index
    %c0_105 = arith.constant 0 : index
    %340 = vector.load %arg9[%339, %c0_104, %c0_105] : memref<8x2x32xf32, #tpu.memory_space<vmem>>, vector<1x2x32xf32>
    %341 = vector.shape_cast %340 : vector<1x2x32xf32> to vector<2x32xf32>
    %342 = vector.extract_strided_slice %341 {offsets = [0, 0], sizes = [1, 32], strides = [1, 1]} : vector<2x32xf32> to vector<1x32xf32>
    %cst_106 = arith.constant dense<0.000000e+00> : vector<1x32xf32>
    %343 = tpu.matmul %264, %1, %cst_106 {dimension_numbers = #tpu.dot_dimension_numbers<[1], [0], [0], [1], [0, 0, 1, 1], [], []>} : vector<1x32xf32>, vector<32x32xf32>, vector<1x32xf32> -> vector<1x32xf32>
    %344 = arith.addf %342, %343 : vector<1x32xf32>
    %345 = math.tanh %344 : vector<1x32xf32>
    %346 = vector.broadcast %c3_i32_103 : i32 to vector<1x1xi32>
    %347 = arith.cmpi slt, %346, %80 : vector<1x1xi32>
    %348 = arith.extui %347 : vector<1x1xi1> to vector<1x1xi32>
    %349 = arith.sitofp %348 : vector<1x1xi32> to vector<1x1xf32>
    %350 = vector.broadcast %349 : vector<1x1xf32> to vector<1x32xf32>
    %351 = arith.mulf %345, %350 : vector<1x32xf32>
    %c1_i32_107 = arith.constant 1 : i32
    %352 = vector.broadcast %c1_i32_107 : i32 to vector<1x1xi32>
    %353 = arith.subi %80, %352 : vector<1x1xi32>
    %354 = vector.broadcast %c3_i32_103 : i32 to vector<1x1xi32>
    %355 = arith.cmpi eq, %354, %353 : vector<1x1xi32>
    %356 = vector.shape_cast %355 : vector<1x1xi1> to vector<1x1xi1>
    %357 = vector.broadcast %356 : vector<1x1xi1> to vector<1x32xi1>
    %358 = arith.select %357, %345, %277 : vector<1x32xi1>, vector<1x32xf32>
    %359 = arith.addf %278, %351 : vector<1x32xf32>
    %360 = arith.maximumf %279, %351 : vector<1x32xf32>
    %cst_108 = arith.constant dense<0.000000e+00> : vector<1x32xf32>
    %361 = tpu.matmul %351, %2, %cst_108 {dimension_numbers = #tpu.dot_dimension_numbers<[1], [0], [0], [1], [0, 0, 1, 1], [], []>} : vector<1x32xf32>, vector<32x32xf32>, vector<1x32xf32> -> vector<1x32xf32>
    %cst_109 = arith.constant 0.000000e+00 : f32
    %362 = vector.broadcast %cst_109 : f32 to vector<1x32xf32>
    %363 = arith.maximumf %361, %362 : vector<1x32xf32>
    %364 = arith.mulf %363, %3 : vector<1x32xf32>
    %cst_110 = arith.constant dense<0.000000e+00> : vector<1xf32>
    %365 = vector.multi_reduction <add>, %364, %cst_110 [1] : vector<1x32xf32> to vector<1xf32>
    %366 = vector.shape_cast %365 : vector<1xf32> to vector<1x1xf32>
    %367 = math.tanh %366 : vector<1x1xf32>
    %368 = arith.maximumf %287, %367 : vector<1x1xf32>
    %369 = arith.subf %287, %368 : vector<1x1xf32>
    %370 = math.exp %369 : vector<1x1xf32>
    %371 = arith.subf %367, %368 : vector<1x1xf32>
    %372 = math.exp %371 : vector<1x1xf32>
    %373 = arith.mulf %372, %349 : vector<1x1xf32>
    %374 = arith.mulf %294, %370 : vector<1x1xf32>
    %375 = arith.addf %374, %373 : vector<1x1xf32>
    %376 = vector.broadcast %370 : vector<1x1xf32> to vector<1x32xf32>
    %377 = arith.mulf %299, %376 : vector<1x32xf32>
    %378 = vector.broadcast %373 : vector<1x1xf32> to vector<1x32xf32>
    %379 = arith.mulf %378, %351 : vector<1x32xf32>
    %380 = arith.addf %377, %379 : vector<1x32xf32>
    %381 = vector.extract_strided_slice %341 {offsets = [1, 0], sizes = [1, 32], strides = [1, 1]} : vector<2x32xf32> to vector<1x32xf32>
    %cst_111 = arith.constant dense<0.000000e+00> : vector<1x32xf32>
    %382 = tpu.matmul %303, %1, %cst_111 {dimension_numbers = #tpu.dot_dimension_numbers<[1], [0], [0], [1], [0, 0, 1, 1], [], []>} : vector<1x32xf32>, vector<32x32xf32>, vector<1x32xf32> -> vector<1x32xf32>
    %383 = arith.addf %381, %382 : vector<1x32xf32>
    %384 = math.tanh %383 : vector<1x32xf32>
    %385 = vector.broadcast %c3_i32_103 : i32 to vector<1x1xi32>
    %386 = arith.cmpi slt, %385, %81 : vector<1x1xi32>
    %387 = arith.extui %386 : vector<1x1xi1> to vector<1x1xi32>
    %388 = arith.sitofp %387 : vector<1x1xi32> to vector<1x1xf32>
    %389 = vector.broadcast %388 : vector<1x1xf32> to vector<1x32xf32>
    %390 = arith.mulf %384, %389 : vector<1x32xf32>
    %c1_i32_112 = arith.constant 1 : i32
    %391 = vector.broadcast %c1_i32_112 : i32 to vector<1x1xi32>
    %392 = arith.subi %81, %391 : vector<1x1xi32>
    %393 = vector.broadcast %c3_i32_103 : i32 to vector<1x1xi32>
    %394 = arith.cmpi eq, %393, %392 : vector<1x1xi32>
    %395 = vector.shape_cast %394 : vector<1x1xi1> to vector<1x1xi1>
    %396 = vector.broadcast %395 : vector<1x1xi1> to vector<1x32xi1>
    %397 = arith.select %396, %384, %316 : vector<1x32xi1>, vector<1x32xf32>
    %398 = arith.addf %317, %390 : vector<1x32xf32>
    %399 = arith.maximumf %318, %390 : vector<1x32xf32>
    %cst_113 = arith.constant dense<0.000000e+00> : vector<1x32xf32>
    %400 = tpu.matmul %390, %2, %cst_113 {dimension_numbers = #tpu.dot_dimension_numbers<[1], [0], [0], [1], [0, 0, 1, 1], [], []>} : vector<1x32xf32>, vector<32x32xf32>, vector<1x32xf32> -> vector<1x32xf32>
    %cst_114 = arith.constant 0.000000e+00 : f32
    %401 = vector.broadcast %cst_114 : f32 to vector<1x32xf32>
    %402 = arith.maximumf %400, %401 : vector<1x32xf32>
    %403 = arith.mulf %402, %3 : vector<1x32xf32>
    %cst_115 = arith.constant dense<0.000000e+00> : vector<1xf32>
    %404 = vector.multi_reduction <add>, %403, %cst_115 [1] : vector<1x32xf32> to vector<1xf32>
    %405 = vector.shape_cast %404 : vector<1xf32> to vector<1x1xf32>
    %406 = math.tanh %405 : vector<1x1xf32>
    %407 = arith.maximumf %326, %406 : vector<1x1xf32>
    %408 = arith.subf %326, %407 : vector<1x1xf32>
    %409 = math.exp %408 : vector<1x1xf32>
    %410 = arith.subf %406, %407 : vector<1x1xf32>
    %411 = math.exp %410 : vector<1x1xf32>
    %412 = arith.mulf %411, %388 : vector<1x1xf32>
    %413 = arith.mulf %333, %409 : vector<1x1xf32>
    %414 = arith.addf %413, %412 : vector<1x1xf32>
    %415 = vector.broadcast %409 : vector<1x1xf32> to vector<1x32xf32>
    %416 = arith.mulf %338, %415 : vector<1x32xf32>
    %417 = vector.broadcast %412 : vector<1x1xf32> to vector<1x32xf32>
    %418 = arith.mulf %417, %390 : vector<1x32xf32>
    %419 = arith.addf %416, %418 : vector<1x32xf32>
    %c4_i32_116 = arith.constant 4 : i32
    %420 = arith.index_cast %c4_i32_116 : i32 to index
    %c0_117 = arith.constant 0 : index
    %c0_118 = arith.constant 0 : index
    %421 = vector.load %arg9[%420, %c0_117, %c0_118] : memref<8x2x32xf32, #tpu.memory_space<vmem>>, vector<1x2x32xf32>
    %422 = vector.shape_cast %421 : vector<1x2x32xf32> to vector<2x32xf32>
    %423 = vector.extract_strided_slice %422 {offsets = [0, 0], sizes = [1, 32], strides = [1, 1]} : vector<2x32xf32> to vector<1x32xf32>
    %cst_119 = arith.constant dense<0.000000e+00> : vector<1x32xf32>
    %424 = tpu.matmul %345, %1, %cst_119 {dimension_numbers = #tpu.dot_dimension_numbers<[1], [0], [0], [1], [0, 0, 1, 1], [], []>} : vector<1x32xf32>, vector<32x32xf32>, vector<1x32xf32> -> vector<1x32xf32>
    %425 = arith.addf %423, %424 : vector<1x32xf32>
    %426 = math.tanh %425 : vector<1x32xf32>
    %427 = vector.broadcast %c4_i32_116 : i32 to vector<1x1xi32>
    %428 = arith.cmpi slt, %427, %80 : vector<1x1xi32>
    %429 = arith.extui %428 : vector<1x1xi1> to vector<1x1xi32>
    %430 = arith.sitofp %429 : vector<1x1xi32> to vector<1x1xf32>
    %431 = vector.broadcast %430 : vector<1x1xf32> to vector<1x32xf32>
    %432 = arith.mulf %426, %431 : vector<1x32xf32>
    %c1_i32_120 = arith.constant 1 : i32
    %433 = vector.broadcast %c1_i32_120 : i32 to vector<1x1xi32>
    %434 = arith.subi %80, %433 : vector<1x1xi32>
    %435 = vector.broadcast %c4_i32_116 : i32 to vector<1x1xi32>
    %436 = arith.cmpi eq, %435, %434 : vector<1x1xi32>
    %437 = vector.shape_cast %436 : vector<1x1xi1> to vector<1x1xi1>
    %438 = vector.broadcast %437 : vector<1x1xi1> to vector<1x32xi1>
    %439 = arith.select %438, %426, %358 : vector<1x32xi1>, vector<1x32xf32>
    %440 = arith.addf %359, %432 : vector<1x32xf32>
    %441 = arith.maximumf %360, %432 : vector<1x32xf32>
    %cst_121 = arith.constant dense<0.000000e+00> : vector<1x32xf32>
    %442 = tpu.matmul %432, %2, %cst_121 {dimension_numbers = #tpu.dot_dimension_numbers<[1], [0], [0], [1], [0, 0, 1, 1], [], []>} : vector<1x32xf32>, vector<32x32xf32>, vector<1x32xf32> -> vector<1x32xf32>
    %cst_122 = arith.constant 0.000000e+00 : f32
    %443 = vector.broadcast %cst_122 : f32 to vector<1x32xf32>
    %444 = arith.maximumf %442, %443 : vector<1x32xf32>
    %445 = arith.mulf %444, %3 : vector<1x32xf32>
    %cst_123 = arith.constant dense<0.000000e+00> : vector<1xf32>
    %446 = vector.multi_reduction <add>, %445, %cst_123 [1] : vector<1x32xf32> to vector<1xf32>
    %447 = vector.shape_cast %446 : vector<1xf32> to vector<1x1xf32>
    %448 = math.tanh %447 : vector<1x1xf32>
    %449 = arith.maximumf %368, %448 : vector<1x1xf32>
    %450 = arith.subf %368, %449 : vector<1x1xf32>
    %451 = math.exp %450 : vector<1x1xf32>
    %452 = arith.subf %448, %449 : vector<1x1xf32>
    %453 = math.exp %452 : vector<1x1xf32>
    %454 = arith.mulf %453, %430 : vector<1x1xf32>
    %455 = arith.mulf %375, %451 : vector<1x1xf32>
    %456 = arith.addf %455, %454 : vector<1x1xf32>
    %457 = vector.broadcast %451 : vector<1x1xf32> to vector<1x32xf32>
    %458 = arith.mulf %380, %457 : vector<1x32xf32>
    %459 = vector.broadcast %454 : vector<1x1xf32> to vector<1x32xf32>
    %460 = arith.mulf %459, %432 : vector<1x32xf32>
    %461 = arith.addf %458, %460 : vector<1x32xf32>
    %462 = vector.extract_strided_slice %422 {offsets = [1, 0], sizes = [1, 32], strides = [1, 1]} : vector<2x32xf32> to vector<1x32xf32>
    %cst_124 = arith.constant dense<0.000000e+00> : vector<1x32xf32>
    %463 = tpu.matmul %384, %1, %cst_124 {dimension_numbers = #tpu.dot_dimension_numbers<[1], [0], [0], [1], [0, 0, 1, 1], [], []>} : vector<1x32xf32>, vector<32x32xf32>, vector<1x32xf32> -> vector<1x32xf32>
    %464 = arith.addf %462, %463 : vector<1x32xf32>
    %465 = math.tanh %464 : vector<1x32xf32>
    %466 = vector.broadcast %c4_i32_116 : i32 to vector<1x1xi32>
    %467 = arith.cmpi slt, %466, %81 : vector<1x1xi32>
    %468 = arith.extui %467 : vector<1x1xi1> to vector<1x1xi32>
    %469 = arith.sitofp %468 : vector<1x1xi32> to vector<1x1xf32>
    %470 = vector.broadcast %469 : vector<1x1xf32> to vector<1x32xf32>
    %471 = arith.mulf %465, %470 : vector<1x32xf32>
    %c1_i32_125 = arith.constant 1 : i32
    %472 = vector.broadcast %c1_i32_125 : i32 to vector<1x1xi32>
    %473 = arith.subi %81, %472 : vector<1x1xi32>
    %474 = vector.broadcast %c4_i32_116 : i32 to vector<1x1xi32>
    %475 = arith.cmpi eq, %474, %473 : vector<1x1xi32>
    %476 = vector.shape_cast %475 : vector<1x1xi1> to vector<1x1xi1>
    %477 = vector.broadcast %476 : vector<1x1xi1> to vector<1x32xi1>
    %478 = arith.select %477, %465, %397 : vector<1x32xi1>, vector<1x32xf32>
    %479 = arith.addf %398, %471 : vector<1x32xf32>
    %480 = arith.maximumf %399, %471 : vector<1x32xf32>
    %cst_126 = arith.constant dense<0.000000e+00> : vector<1x32xf32>
    %481 = tpu.matmul %471, %2, %cst_126 {dimension_numbers = #tpu.dot_dimension_numbers<[1], [0], [0], [1], [0, 0, 1, 1], [], []>} : vector<1x32xf32>, vector<32x32xf32>, vector<1x32xf32> -> vector<1x32xf32>
    %cst_127 = arith.constant 0.000000e+00 : f32
    %482 = vector.broadcast %cst_127 : f32 to vector<1x32xf32>
    %483 = arith.maximumf %481, %482 : vector<1x32xf32>
    %484 = arith.mulf %483, %3 : vector<1x32xf32>
    %cst_128 = arith.constant dense<0.000000e+00> : vector<1xf32>
    %485 = vector.multi_reduction <add>, %484, %cst_128 [1] : vector<1x32xf32> to vector<1xf32>
    %486 = vector.shape_cast %485 : vector<1xf32> to vector<1x1xf32>
    %487 = math.tanh %486 : vector<1x1xf32>
    %488 = arith.maximumf %407, %487 : vector<1x1xf32>
    %489 = arith.subf %407, %488 : vector<1x1xf32>
    %490 = math.exp %489 : vector<1x1xf32>
    %491 = arith.subf %487, %488 : vector<1x1xf32>
    %492 = math.exp %491 : vector<1x1xf32>
    %493 = arith.mulf %492, %469 : vector<1x1xf32>
    %494 = arith.mulf %414, %490 : vector<1x1xf32>
    %495 = arith.addf %494, %493 : vector<1x1xf32>
    %496 = vector.broadcast %490 : vector<1x1xf32> to vector<1x32xf32>
    %497 = arith.mulf %419, %496 : vector<1x32xf32>
    %498 = vector.broadcast %493 : vector<1x1xf32> to vector<1x32xf32>
    %499 = arith.mulf %498, %471 : vector<1x32xf32>
    %500 = arith.addf %497, %499 : vector<1x32xf32>
    %c5_i32_129 = arith.constant 5 : i32
    %501 = arith.index_cast %c5_i32_129 : i32 to index
    %c0_130 = arith.constant 0 : index
    %c0_131 = arith.constant 0 : index
    %502 = vector.load %arg9[%501, %c0_130, %c0_131] : memref<8x2x32xf32, #tpu.memory_space<vmem>>, vector<1x2x32xf32>
    %503 = vector.shape_cast %502 : vector<1x2x32xf32> to vector<2x32xf32>
    %504 = vector.extract_strided_slice %503 {offsets = [0, 0], sizes = [1, 32], strides = [1, 1]} : vector<2x32xf32> to vector<1x32xf32>
    %cst_132 = arith.constant dense<0.000000e+00> : vector<1x32xf32>
    %505 = tpu.matmul %426, %1, %cst_132 {dimension_numbers = #tpu.dot_dimension_numbers<[1], [0], [0], [1], [0, 0, 1, 1], [], []>} : vector<1x32xf32>, vector<32x32xf32>, vector<1x32xf32> -> vector<1x32xf32>
    %506 = arith.addf %504, %505 : vector<1x32xf32>
    %507 = math.tanh %506 : vector<1x32xf32>
    %508 = vector.broadcast %c5_i32_129 : i32 to vector<1x1xi32>
    %509 = arith.cmpi slt, %508, %80 : vector<1x1xi32>
    %510 = arith.extui %509 : vector<1x1xi1> to vector<1x1xi32>
    %511 = arith.sitofp %510 : vector<1x1xi32> to vector<1x1xf32>
    %512 = vector.broadcast %511 : vector<1x1xf32> to vector<1x32xf32>
    %513 = arith.mulf %507, %512 : vector<1x32xf32>
    %c1_i32_133 = arith.constant 1 : i32
    %514 = vector.broadcast %c1_i32_133 : i32 to vector<1x1xi32>
    %515 = arith.subi %80, %514 : vector<1x1xi32>
    %516 = vector.broadcast %c5_i32_129 : i32 to vector<1x1xi32>
    %517 = arith.cmpi eq, %516, %515 : vector<1x1xi32>
    %518 = vector.shape_cast %517 : vector<1x1xi1> to vector<1x1xi1>
    %519 = vector.broadcast %518 : vector<1x1xi1> to vector<1x32xi1>
    %520 = arith.select %519, %507, %439 : vector<1x32xi1>, vector<1x32xf32>
    %521 = arith.addf %440, %513 : vector<1x32xf32>
    %522 = arith.maximumf %441, %513 : vector<1x32xf32>
    %cst_134 = arith.constant dense<0.000000e+00> : vector<1x32xf32>
    %523 = tpu.matmul %513, %2, %cst_134 {dimension_numbers = #tpu.dot_dimension_numbers<[1], [0], [0], [1], [0, 0, 1, 1], [], []>} : vector<1x32xf32>, vector<32x32xf32>, vector<1x32xf32> -> vector<1x32xf32>
    %cst_135 = arith.constant 0.000000e+00 : f32
    %524 = vector.broadcast %cst_135 : f32 to vector<1x32xf32>
    %525 = arith.maximumf %523, %524 : vector<1x32xf32>
    %526 = arith.mulf %525, %3 : vector<1x32xf32>
    %cst_136 = arith.constant dense<0.000000e+00> : vector<1xf32>
    %527 = vector.multi_reduction <add>, %526, %cst_136 [1] : vector<1x32xf32> to vector<1xf32>
    %528 = vector.shape_cast %527 : vector<1xf32> to vector<1x1xf32>
    %529 = math.tanh %528 : vector<1x1xf32>
    %530 = arith.maximumf %449, %529 : vector<1x1xf32>
    %531 = arith.subf %449, %530 : vector<1x1xf32>
    %532 = math.exp %531 : vector<1x1xf32>
    %533 = arith.subf %529, %530 : vector<1x1xf32>
    %534 = math.exp %533 : vector<1x1xf32>
    %535 = arith.mulf %534, %511 : vector<1x1xf32>
    %536 = arith.mulf %456, %532 : vector<1x1xf32>
    %537 = arith.addf %536, %535 : vector<1x1xf32>
    %538 = vector.broadcast %532 : vector<1x1xf32> to vector<1x32xf32>
    %539 = arith.mulf %461, %538 : vector<1x32xf32>
    %540 = vector.broadcast %535 : vector<1x1xf32> to vector<1x32xf32>
    %541 = arith.mulf %540, %513 : vector<1x32xf32>
    %542 = arith.addf %539, %541 : vector<1x32xf32>
    %543 = vector.extract_strided_slice %503 {offsets = [1, 0], sizes = [1, 32], strides = [1, 1]} : vector<2x32xf32> to vector<1x32xf32>
    %cst_137 = arith.constant dense<0.000000e+00> : vector<1x32xf32>
    %544 = tpu.matmul %465, %1, %cst_137 {dimension_numbers = #tpu.dot_dimension_numbers<[1], [0], [0], [1], [0, 0, 1, 1], [], []>} : vector<1x32xf32>, vector<32x32xf32>, vector<1x32xf32> -> vector<1x32xf32>
    %545 = arith.addf %543, %544 : vector<1x32xf32>
    %546 = math.tanh %545 : vector<1x32xf32>
    %547 = vector.broadcast %c5_i32_129 : i32 to vector<1x1xi32>
    %548 = arith.cmpi slt, %547, %81 : vector<1x1xi32>
    %549 = arith.extui %548 : vector<1x1xi1> to vector<1x1xi32>
    %550 = arith.sitofp %549 : vector<1x1xi32> to vector<1x1xf32>
    %551 = vector.broadcast %550 : vector<1x1xf32> to vector<1x32xf32>
    %552 = arith.mulf %546, %551 : vector<1x32xf32>
    %c1_i32_138 = arith.constant 1 : i32
    %553 = vector.broadcast %c1_i32_138 : i32 to vector<1x1xi32>
    %554 = arith.subi %81, %553 : vector<1x1xi32>
    %555 = vector.broadcast %c5_i32_129 : i32 to vector<1x1xi32>
    %556 = arith.cmpi eq, %555, %554 : vector<1x1xi32>
    %557 = vector.shape_cast %556 : vector<1x1xi1> to vector<1x1xi1>
    %558 = vector.broadcast %557 : vector<1x1xi1> to vector<1x32xi1>
    %559 = arith.select %558, %546, %478 : vector<1x32xi1>, vector<1x32xf32>
    %560 = arith.addf %479, %552 : vector<1x32xf32>
    %561 = arith.maximumf %480, %552 : vector<1x32xf32>
    %cst_139 = arith.constant dense<0.000000e+00> : vector<1x32xf32>
    %562 = tpu.matmul %552, %2, %cst_139 {dimension_numbers = #tpu.dot_dimension_numbers<[1], [0], [0], [1], [0, 0, 1, 1], [], []>} : vector<1x32xf32>, vector<32x32xf32>, vector<1x32xf32> -> vector<1x32xf32>
    %cst_140 = arith.constant 0.000000e+00 : f32
    %563 = vector.broadcast %cst_140 : f32 to vector<1x32xf32>
    %564 = arith.maximumf %562, %563 : vector<1x32xf32>
    %565 = arith.mulf %564, %3 : vector<1x32xf32>
    %cst_141 = arith.constant dense<0.000000e+00> : vector<1xf32>
    %566 = vector.multi_reduction <add>, %565, %cst_141 [1] : vector<1x32xf32> to vector<1xf32>
    %567 = vector.shape_cast %566 : vector<1xf32> to vector<1x1xf32>
    %568 = math.tanh %567 : vector<1x1xf32>
    %569 = arith.maximumf %488, %568 : vector<1x1xf32>
    %570 = arith.subf %488, %569 : vector<1x1xf32>
    %571 = math.exp %570 : vector<1x1xf32>
    %572 = arith.subf %568, %569 : vector<1x1xf32>
    %573 = math.exp %572 : vector<1x1xf32>
    %574 = arith.mulf %573, %550 : vector<1x1xf32>
    %575 = arith.mulf %495, %571 : vector<1x1xf32>
    %576 = arith.addf %575, %574 : vector<1x1xf32>
    %577 = vector.broadcast %571 : vector<1x1xf32> to vector<1x32xf32>
    %578 = arith.mulf %500, %577 : vector<1x32xf32>
    %579 = vector.broadcast %574 : vector<1x1xf32> to vector<1x32xf32>
    %580 = arith.mulf %579, %552 : vector<1x32xf32>
    %581 = arith.addf %578, %580 : vector<1x32xf32>
    %c6_i32_142 = arith.constant 6 : i32
    %582 = arith.index_cast %c6_i32_142 : i32 to index
    %c0_143 = arith.constant 0 : index
    %c0_144 = arith.constant 0 : index
    %583 = vector.load %arg9[%582, %c0_143, %c0_144] : memref<8x2x32xf32, #tpu.memory_space<vmem>>, vector<1x2x32xf32>
    %584 = vector.shape_cast %583 : vector<1x2x32xf32> to vector<2x32xf32>
    %585 = vector.extract_strided_slice %584 {offsets = [0, 0], sizes = [1, 32], strides = [1, 1]} : vector<2x32xf32> to vector<1x32xf32>
    %cst_145 = arith.constant dense<0.000000e+00> : vector<1x32xf32>
    %586 = tpu.matmul %507, %1, %cst_145 {dimension_numbers = #tpu.dot_dimension_numbers<[1], [0], [0], [1], [0, 0, 1, 1], [], []>} : vector<1x32xf32>, vector<32x32xf32>, vector<1x32xf32> -> vector<1x32xf32>
    %587 = arith.addf %585, %586 : vector<1x32xf32>
    %588 = math.tanh %587 : vector<1x32xf32>
    %589 = vector.broadcast %c6_i32_142 : i32 to vector<1x1xi32>
    %590 = arith.cmpi slt, %589, %80 : vector<1x1xi32>
    %591 = arith.extui %590 : vector<1x1xi1> to vector<1x1xi32>
    %592 = arith.sitofp %591 : vector<1x1xi32> to vector<1x1xf32>
    %593 = vector.broadcast %592 : vector<1x1xf32> to vector<1x32xf32>
    %594 = arith.mulf %588, %593 : vector<1x32xf32>
    %c1_i32_146 = arith.constant 1 : i32
    %595 = vector.broadcast %c1_i32_146 : i32 to vector<1x1xi32>
    %596 = arith.subi %80, %595 : vector<1x1xi32>
    %597 = vector.broadcast %c6_i32_142 : i32 to vector<1x1xi32>
    %598 = arith.cmpi eq, %597, %596 : vector<1x1xi32>
    %599 = vector.shape_cast %598 : vector<1x1xi1> to vector<1x1xi1>
    %600 = vector.broadcast %599 : vector<1x1xi1> to vector<1x32xi1>
    %601 = arith.select %600, %588, %520 : vector<1x32xi1>, vector<1x32xf32>
    %602 = arith.addf %521, %594 : vector<1x32xf32>
    %603 = arith.maximumf %522, %594 : vector<1x32xf32>
    %cst_147 = arith.constant dense<0.000000e+00> : vector<1x32xf32>
    %604 = tpu.matmul %594, %2, %cst_147 {dimension_numbers = #tpu.dot_dimension_numbers<[1], [0], [0], [1], [0, 0, 1, 1], [], []>} : vector<1x32xf32>, vector<32x32xf32>, vector<1x32xf32> -> vector<1x32xf32>
    %cst_148 = arith.constant 0.000000e+00 : f32
    %605 = vector.broadcast %cst_148 : f32 to vector<1x32xf32>
    %606 = arith.maximumf %604, %605 : vector<1x32xf32>
    %607 = arith.mulf %606, %3 : vector<1x32xf32>
    %cst_149 = arith.constant dense<0.000000e+00> : vector<1xf32>
    %608 = vector.multi_reduction <add>, %607, %cst_149 [1] : vector<1x32xf32> to vector<1xf32>
    %609 = vector.shape_cast %608 : vector<1xf32> to vector<1x1xf32>
    %610 = math.tanh %609 : vector<1x1xf32>
    %611 = arith.maximumf %530, %610 : vector<1x1xf32>
    %612 = arith.subf %530, %611 : vector<1x1xf32>
    %613 = math.exp %612 : vector<1x1xf32>
    %614 = arith.subf %610, %611 : vector<1x1xf32>
    %615 = math.exp %614 : vector<1x1xf32>
    %616 = arith.mulf %615, %592 : vector<1x1xf32>
    %617 = arith.mulf %537, %613 : vector<1x1xf32>
    %618 = arith.addf %617, %616 : vector<1x1xf32>
    %619 = vector.broadcast %613 : vector<1x1xf32> to vector<1x32xf32>
    %620 = arith.mulf %542, %619 : vector<1x32xf32>
    %621 = vector.broadcast %616 : vector<1x1xf32> to vector<1x32xf32>
    %622 = arith.mulf %621, %594 : vector<1x32xf32>
    %623 = arith.addf %620, %622 : vector<1x32xf32>
    %624 = vector.extract_strided_slice %584 {offsets = [1, 0], sizes = [1, 32], strides = [1, 1]} : vector<2x32xf32> to vector<1x32xf32>
    %cst_150 = arith.constant dense<0.000000e+00> : vector<1x32xf32>
    %625 = tpu.matmul %546, %1, %cst_150 {dimension_numbers = #tpu.dot_dimension_numbers<[1], [0], [0], [1], [0, 0, 1, 1], [], []>} : vector<1x32xf32>, vector<32x32xf32>, vector<1x32xf32> -> vector<1x32xf32>
    %626 = arith.addf %624, %625 : vector<1x32xf32>
    %627 = math.tanh %626 : vector<1x32xf32>
    %628 = vector.broadcast %c6_i32_142 : i32 to vector<1x1xi32>
    %629 = arith.cmpi slt, %628, %81 : vector<1x1xi32>
    %630 = arith.extui %629 : vector<1x1xi1> to vector<1x1xi32>
    %631 = arith.sitofp %630 : vector<1x1xi32> to vector<1x1xf32>
    %632 = vector.broadcast %631 : vector<1x1xf32> to vector<1x32xf32>
    %633 = arith.mulf %627, %632 : vector<1x32xf32>
    %c1_i32_151 = arith.constant 1 : i32
    %634 = vector.broadcast %c1_i32_151 : i32 to vector<1x1xi32>
    %635 = arith.subi %81, %634 : vector<1x1xi32>
    %636 = vector.broadcast %c6_i32_142 : i32 to vector<1x1xi32>
    %637 = arith.cmpi eq, %636, %635 : vector<1x1xi32>
    %638 = vector.shape_cast %637 : vector<1x1xi1> to vector<1x1xi1>
    %639 = vector.broadcast %638 : vector<1x1xi1> to vector<1x32xi1>
    %640 = arith.select %639, %627, %559 : vector<1x32xi1>, vector<1x32xf32>
    %641 = arith.addf %560, %633 : vector<1x32xf32>
    %642 = arith.maximumf %561, %633 : vector<1x32xf32>
    %cst_152 = arith.constant dense<0.000000e+00> : vector<1x32xf32>
    %643 = tpu.matmul %633, %2, %cst_152 {dimension_numbers = #tpu.dot_dimension_numbers<[1], [0], [0], [1], [0, 0, 1, 1], [], []>} : vector<1x32xf32>, vector<32x32xf32>, vector<1x32xf32> -> vector<1x32xf32>
    %cst_153 = arith.constant 0.000000e+00 : f32
    %644 = vector.broadcast %cst_153 : f32 to vector<1x32xf32>
    %645 = arith.maximumf %643, %644 : vector<1x32xf32>
    %646 = arith.mulf %645, %3 : vector<1x32xf32>
    %cst_154 = arith.constant dense<0.000000e+00> : vector<1xf32>
    %647 = vector.multi_reduction <add>, %646, %cst_154 [1] : vector<1x32xf32> to vector<1xf32>
    %648 = vector.shape_cast %647 : vector<1xf32> to vector<1x1xf32>
    %649 = math.tanh %648 : vector<1x1xf32>
    %650 = arith.maximumf %569, %649 : vector<1x1xf32>
    %651 = arith.subf %569, %650 : vector<1x1xf32>
    %652 = math.exp %651 : vector<1x1xf32>
    %653 = arith.subf %649, %650 : vector<1x1xf32>
    %654 = math.exp %653 : vector<1x1xf32>
    %655 = arith.mulf %654, %631 : vector<1x1xf32>
    %656 = arith.mulf %576, %652 : vector<1x1xf32>
    %657 = arith.addf %656, %655 : vector<1x1xf32>
    %658 = vector.broadcast %652 : vector<1x1xf32> to vector<1x32xf32>
    %659 = arith.mulf %581, %658 : vector<1x32xf32>
    %660 = vector.broadcast %655 : vector<1x1xf32> to vector<1x32xf32>
    %661 = arith.mulf %660, %633 : vector<1x32xf32>
    %662 = arith.addf %659, %661 : vector<1x32xf32>
    %c7_i32_155 = arith.constant 7 : i32
    %663 = arith.index_cast %c7_i32_155 : i32 to index
    %c0_156 = arith.constant 0 : index
    %c0_157 = arith.constant 0 : index
    %664 = vector.load %arg9[%663, %c0_156, %c0_157] : memref<8x2x32xf32, #tpu.memory_space<vmem>>, vector<1x2x32xf32>
    %665 = vector.shape_cast %664 : vector<1x2x32xf32> to vector<2x32xf32>
    %666 = vector.extract_strided_slice %665 {offsets = [0, 0], sizes = [1, 32], strides = [1, 1]} : vector<2x32xf32> to vector<1x32xf32>
    %cst_158 = arith.constant dense<0.000000e+00> : vector<1x32xf32>
    %667 = tpu.matmul %588, %1, %cst_158 {dimension_numbers = #tpu.dot_dimension_numbers<[1], [0], [0], [1], [0, 0, 1, 1], [], []>} : vector<1x32xf32>, vector<32x32xf32>, vector<1x32xf32> -> vector<1x32xf32>
    %668 = arith.addf %666, %667 : vector<1x32xf32>
    %669 = math.tanh %668 : vector<1x32xf32>
    %670 = vector.broadcast %c7_i32_155 : i32 to vector<1x1xi32>
    %671 = arith.cmpi slt, %670, %80 : vector<1x1xi32>
    %672 = arith.extui %671 : vector<1x1xi1> to vector<1x1xi32>
    %673 = arith.sitofp %672 : vector<1x1xi32> to vector<1x1xf32>
    %674 = vector.broadcast %673 : vector<1x1xf32> to vector<1x32xf32>
    %675 = arith.mulf %669, %674 : vector<1x32xf32>
    %c1_i32_159 = arith.constant 1 : i32
    %676 = vector.broadcast %c1_i32_159 : i32 to vector<1x1xi32>
    %677 = arith.subi %80, %676 : vector<1x1xi32>
    %678 = vector.broadcast %c7_i32_155 : i32 to vector<1x1xi32>
    %679 = arith.cmpi eq, %678, %677 : vector<1x1xi32>
    %680 = vector.shape_cast %679 : vector<1x1xi1> to vector<1x1xi1>
    %681 = vector.broadcast %680 : vector<1x1xi1> to vector<1x32xi1>
    %682 = arith.select %681, %669, %601 : vector<1x32xi1>, vector<1x32xf32>
    %683 = arith.addf %602, %675 : vector<1x32xf32>
    %684 = arith.maximumf %603, %675 : vector<1x32xf32>
    %cst_160 = arith.constant dense<0.000000e+00> : vector<1x32xf32>
    %685 = tpu.matmul %675, %2, %cst_160 {dimension_numbers = #tpu.dot_dimension_numbers<[1], [0], [0], [1], [0, 0, 1, 1], [], []>} : vector<1x32xf32>, vector<32x32xf32>, vector<1x32xf32> -> vector<1x32xf32>
    %cst_161 = arith.constant 0.000000e+00 : f32
    %686 = vector.broadcast %cst_161 : f32 to vector<1x32xf32>
    %687 = arith.maximumf %685, %686 : vector<1x32xf32>
    %688 = arith.mulf %687, %3 : vector<1x32xf32>
    %cst_162 = arith.constant dense<0.000000e+00> : vector<1xf32>
    %689 = vector.multi_reduction <add>, %688, %cst_162 [1] : vector<1x32xf32> to vector<1xf32>
    %690 = vector.shape_cast %689 : vector<1xf32> to vector<1x1xf32>
    %691 = math.tanh %690 : vector<1x1xf32>
    %692 = arith.maximumf %611, %691 : vector<1x1xf32>
    %693 = arith.subf %611, %692 : vector<1x1xf32>
    %694 = math.exp %693 : vector<1x1xf32>
    %695 = arith.subf %691, %692 : vector<1x1xf32>
    %696 = math.exp %695 : vector<1x1xf32>
    %697 = arith.mulf %696, %673 : vector<1x1xf32>
    %698 = arith.mulf %618, %694 : vector<1x1xf32>
    %699 = arith.addf %698, %697 : vector<1x1xf32>
    %700 = vector.broadcast %694 : vector<1x1xf32> to vector<1x32xf32>
    %701 = arith.mulf %623, %700 : vector<1x32xf32>
    %702 = vector.broadcast %697 : vector<1x1xf32> to vector<1x32xf32>
    %703 = arith.mulf %702, %675 : vector<1x32xf32>
    %704 = arith.addf %701, %703 : vector<1x32xf32>
    %705 = vector.extract_strided_slice %665 {offsets = [1, 0], sizes = [1, 32], strides = [1, 1]} : vector<2x32xf32> to vector<1x32xf32>
    %cst_163 = arith.constant dense<0.000000e+00> : vector<1x32xf32>
    %706 = tpu.matmul %627, %1, %cst_163 {dimension_numbers = #tpu.dot_dimension_numbers<[1], [0], [0], [1], [0, 0, 1, 1], [], []>} : vector<1x32xf32>, vector<32x32xf32>, vector<1x32xf32> -> vector<1x32xf32>
    %707 = arith.addf %705, %706 : vector<1x32xf32>
    %708 = math.tanh %707 : vector<1x32xf32>
    %709 = vector.broadcast %c7_i32_155 : i32 to vector<1x1xi32>
    %710 = arith.cmpi slt, %709, %81 : vector<1x1xi32>
    %711 = arith.extui %710 : vector<1x1xi1> to vector<1x1xi32>
    %712 = arith.sitofp %711 : vector<1x1xi32> to vector<1x1xf32>
    %713 = vector.broadcast %712 : vector<1x1xf32> to vector<1x32xf32>
    %714 = arith.mulf %708, %713 : vector<1x32xf32>
    %c1_i32_164 = arith.constant 1 : i32
    %715 = vector.broadcast %c1_i32_164 : i32 to vector<1x1xi32>
    %716 = arith.subi %81, %715 : vector<1x1xi32>
    %717 = vector.broadcast %c7_i32_155 : i32 to vector<1x1xi32>
    %718 = arith.cmpi eq, %717, %716 : vector<1x1xi32>
    %719 = vector.shape_cast %718 : vector<1x1xi1> to vector<1x1xi1>
    %720 = vector.broadcast %719 : vector<1x1xi1> to vector<1x32xi1>
    %721 = arith.select %720, %708, %640 : vector<1x32xi1>, vector<1x32xf32>
    %722 = arith.addf %641, %714 : vector<1x32xf32>
    %723 = arith.maximumf %642, %714 : vector<1x32xf32>
    %cst_165 = arith.constant dense<0.000000e+00> : vector<1x32xf32>
    %724 = tpu.matmul %714, %2, %cst_165 {dimension_numbers = #tpu.dot_dimension_numbers<[1], [0], [0], [1], [0, 0, 1, 1], [], []>} : vector<1x32xf32>, vector<32x32xf32>, vector<1x32xf32> -> vector<1x32xf32>
    %cst_166 = arith.constant 0.000000e+00 : f32
    %725 = vector.broadcast %cst_166 : f32 to vector<1x32xf32>
    %726 = arith.maximumf %724, %725 : vector<1x32xf32>
    %727 = arith.mulf %726, %3 : vector<1x32xf32>
    %cst_167 = arith.constant dense<0.000000e+00> : vector<1xf32>
    %728 = vector.multi_reduction <add>, %727, %cst_167 [1] : vector<1x32xf32> to vector<1xf32>
    %729 = vector.shape_cast %728 : vector<1xf32> to vector<1x1xf32>
    %730 = math.tanh %729 : vector<1x1xf32>
    %731 = arith.maximumf %650, %730 : vector<1x1xf32>
    %732 = arith.subf %650, %731 : vector<1x1xf32>
    %733 = math.exp %732 : vector<1x1xf32>
    %734 = arith.subf %730, %731 : vector<1x1xf32>
    %735 = math.exp %734 : vector<1x1xf32>
    %736 = arith.mulf %735, %712 : vector<1x1xf32>
    %737 = arith.mulf %657, %733 : vector<1x1xf32>
    %738 = arith.addf %737, %736 : vector<1x1xf32>
    %739 = vector.broadcast %733 : vector<1x1xf32> to vector<1x32xf32>
    %740 = arith.mulf %662, %739 : vector<1x32xf32>
    %741 = vector.broadcast %736 : vector<1x1xf32> to vector<1x32xf32>
    %742 = arith.mulf %741, %714 : vector<1x32xf32>
    %743 = arith.addf %740, %742 : vector<1x32xf32>
    %c8_i32_168 = arith.constant 8 : i32
    %744 = arith.sitofp %80 : vector<1x1xi32> to vector<1x1xf32>
    %745 = tpu.reciprocal %744 : vector<1x1xf32> -> vector<1x1xf32>
    %746 = vector.broadcast %745 : vector<1x1xf32> to vector<1x32xf32>
    %747 = arith.mulf %683, %746 : vector<1x32xf32>
    %cst_169 = arith.constant 9.99999982E-15 : f32
    %748 = vector.broadcast %cst_169 : f32 to vector<1x1xf32>
    %749 = arith.addf %699, %748 : vector<1x1xf32>
    %750 = tpu.reciprocal %749 {approx = true} : vector<1x1xf32> -> vector<1x1xf32>
    %751 = vector.broadcast %750 : vector<1x1xf32> to vector<1x32xf32>
    %752 = arith.mulf %704, %751 : vector<1x32xf32>
    %c0_170 = arith.constant 0 : index
    %c0_171 = arith.constant 0 : index
    %753 = vector.load %arg8[%c0_170, %c0_171] : memref<2x128xf32, #tpu.memory_space<vmem>>, vector<1x32xf32>
    tpu.vector_store %arg8[%c0_170, %c0_171], %682 {strides = array<i32>} : memref<2x128xf32, #tpu.memory_space<vmem>>, vector<1x32xf32>,
    %c0_172 = arith.constant 0 : index
    %c32 = arith.constant 32 : index
    %754 = vector.load %arg8[%c0_172, %c32] : memref<2x128xf32, #tpu.memory_space<vmem>>, vector<1x32xf32>
    tpu.vector_store %arg8[%c0_172, %c32], %747 {strides = array<i32>} : memref<2x128xf32, #tpu.memory_space<vmem>>, vector<1x32xf32>,
    %c0_173 = arith.constant 0 : index
    %c64 = arith.constant 64 : index
    %755 = vector.load %arg8[%c0_173, %c64] : memref<2x128xf32, #tpu.memory_space<vmem>>, vector<1x32xf32>
    tpu.vector_store %arg8[%c0_173, %c64], %684 {strides = array<i32>} : memref<2x128xf32, #tpu.memory_space<vmem>>, vector<1x32xf32>,
    %c0_174 = arith.constant 0 : index
    %c96 = arith.constant 96 : index
    %756 = vector.load %arg8[%c0_174, %c96] : memref<2x128xf32, #tpu.memory_space<vmem>>, vector<1x32xf32>
    tpu.vector_store %arg8[%c0_174, %c96], %752 {strides = array<i32>} : memref<2x128xf32, #tpu.memory_space<vmem>>, vector<1x32xf32>,
    %757 = arith.sitofp %81 : vector<1x1xi32> to vector<1x1xf32>
    %758 = tpu.reciprocal %757 : vector<1x1xf32> -> vector<1x1xf32>
    %759 = vector.broadcast %758 : vector<1x1xf32> to vector<1x32xf32>
    %760 = arith.mulf %722, %759 : vector<1x32xf32>
    %cst_175 = arith.constant 9.99999982E-15 : f32
    %761 = vector.broadcast %cst_175 : f32 to vector<1x1xf32>
    %762 = arith.addf %738, %761 : vector<1x1xf32>
    %763 = tpu.reciprocal %762 {approx = true} : vector<1x1xf32> -> vector<1x1xf32>
    %764 = vector.broadcast %763 : vector<1x1xf32> to vector<1x32xf32>
    %765 = arith.mulf %743, %764 : vector<1x32xf32>
    %c1 = arith.constant 1 : index
    %c0_176 = arith.constant 0 : index
    %766 = vector.load %arg8[%c1, %c0_176] : memref<2x128xf32, #tpu.memory_space<vmem>>, vector<1x32xf32>
    tpu.vector_store %arg8[%c1, %c0_176], %721 {strides = array<i32>} : memref<2x128xf32, #tpu.memory_space<vmem>>, vector<1x32xf32>,
    %c1_177 = arith.constant 1 : index
    %c32_178 = arith.constant 32 : index
    %767 = vector.load %arg8[%c1_177, %c32_178] : memref<2x128xf32, #tpu.memory_space<vmem>>, vector<1x32xf32>
    tpu.vector_store %arg8[%c1_177, %c32_178], %760 {strides = array<i32>} : memref<2x128xf32, #tpu.memory_space<vmem>>, vector<1x32xf32>,
    %c1_179 = arith.constant 1 : index
    %c64_180 = arith.constant 64 : index
    %768 = vector.load %arg8[%c1_179, %c64_180] : memref<2x128xf32, #tpu.memory_space<vmem>>, vector<1x32xf32>
    tpu.vector_store %arg8[%c1_179, %c64_180], %723 {strides = array<i32>} : memref<2x128xf32, #tpu.memory_space<vmem>>, vector<1x32xf32>,
    %c1_181 = arith.constant 1 : index
    %c96_182 = arith.constant 96 : index
    %769 = vector.load %arg8[%c1_181, %c96_182] : memref<2x128xf32, #tpu.memory_space<vmem>>, vector<1x32xf32>
    tpu.vector_store %arg8[%c1_181, %c96_182], %765 {strides = array<i32>} : memref<2x128xf32, #tpu.memory_space<vmem>>, vector<1x32xf32>,
    return
  }
  func.func @transform_0(%arg0: i32) -> (i32, i32, i32) {
    %c0_i32 = arith.constant 0 : i32
    %c0_i32_0 = arith.constant 0 : i32
    %c0_i32_1 = arith.constant 0 : i32
    return %c0_i32, %arg0, %c0_i32_0 : i32, i32, i32
  }
  func.func @transform_1(%arg0: i32) -> (i32, i32) {
    %c0_i32 = arith.constant 0 : i32
    %c0_i32_0 = arith.constant 0 : i32
    return %arg0, %c0_i32 : i32, i32
  }
  func.func @transform_2(%arg0: i32) -> (i32, i32) {
    %c0_i32 = arith.constant 0 : i32
    %c0_i32_0 = arith.constant 0 : i32
    %c0_i32_1 = arith.constant 0 : i32
    return %c0_i32, %c0_i32_0 : i32, i32
  }
  func.func @transform_3(%arg0: i32) -> (i32, i32) {
    %c0_i32 = arith.constant 0 : i32
    %c0_i32_0 = arith.constant 0 : i32
    %c0_i32_1 = arith.constant 0 : i32
    return %c0_i32, %c0_i32_0 : i32, i32
  }
  func.func @transform_4(%arg0: i32) -> (i32, i32) {
    %c0_i32 = arith.constant 0 : i32
    %c0_i32_0 = arith.constant 0 : i32
    %c0_i32_1 = arith.constant 0 : i32
    return %c0_i32, %c0_i32_0 : i32, i32
  }
  func.func @transform_5(%arg0: i32) -> (i32, i32) {
    %c0_i32 = arith.constant 0 : i32
    %c0_i32_0 = arith.constant 0 : i32
    %c0_i32_1 = arith.constant 0 : i32
    return %c0_i32, %c0_i32_0 : i32, i32
  }
  func.func @transform_6(%arg0: i32) -> (i32, i32) {
    %c0_i32 = arith.constant 0 : i32
    %c0_i32_0 = arith.constant 0 : i32
    %c0_i32_1 = arith.constant 0 : i32
    return %c0_i32, %c0_i32_0 : i32, i32
  }
  func.func @transform_7(%arg0: i32) -> (i32, i32) {
    %c0_i32 = arith.constant 0 : i32
    %c0_i32_0 = arith.constant 0 : i32
    return %arg0, %c0_i32 : i32, i32
  }
}

</mosaic_0001>

<bundles_post_ra>
// kernel: tpu_custom_call.1
= control target key start
LH: loop header
LB: loop body
LE: loop exit
PB: predicated region body
PF: predicated region fallthrough
CT: control target
= control target key end

     0   :  { %12 = vsyncpa [#allocation4], 0  ;;  %s5710_s0 = inlined_call_operand.hbm [shape: f32[8,2,16], index: 0, kind: input, shape index: {}]   ;;  %s5711_s1 = inlined_call_operand.vmem [shape: s32[2,1], index: 1, kind: input, shape index: {}]   ;;  %s5712_s2 = inlined_call_operand.hbm [shape: f32[16,32], index: 2, kind: input, shape index: {}]   ;;  %s5713_s3 = inlined_call_operand.hbm [shape: f32[32,32], index: 3, kind: input, shape index: {}]   ;;  %s5714_s4 = inlined_call_operand.vmem [shape: f32[1,32], index: 4, kind: input, shape index: {}]   ;;  %s5715_s5 = inlined_call_operand.hbm [shape: f32[32,32], index: 5, kind: input, shape index: {}]   ;;  %s5716_s6 = inlined_call_operand.vmem [shape: f32[1,32], index: 6, kind: input, shape index: {}]   ;;  %s5717_s7 = inlined_call_operand.hbm [shape: f32[2,128], index: 7, kind: output, shape index: {}]  }
   0x1   :  { %13 = vsyncpa [#allocation7], 0 }
   0x2   :  { %14 = vsyncpa [#allocation10], 0 }
   0x3   :  { %15 = vsyncpa [#allocation5], 0  ;;  %s4612_s24 = smov [#allocation6]  }
   0x4   :  { %s35_s25 = sshll.u32 %s4612_s24, 4  ;;  %s36_s25 = int_to_ptr.vmem [resolvable:$true] %s35_s25 }
   0x5   :  { %s4512_s26 = scalar_lea.vmem %s36_s25, 256  ;;  %p4517_p1 = scmp.lt.s32.totalorder %s36_s25, %s36_s25 }
   0x6   :  { %p4513_p0 = scmp.ne.s32.totalorder %s36_s25, %s4512_s26  ;;  %p4518_p2 = scmp.lt.s32.totalorder %s4512_s26, %s4512_s26 }
   0x8   :  { %p4519_p3 = por %p4518_p2, %p4517_p1 }
   0xa   :  { %p4520_p4 = pnand %p4519_p3, %p4513_p0 }
   0xc   :  { %4523 = shalt.err (!%p4520_p4)
}
   0xd   :  { %s4613_s27 = smov 128   ;;  %s4614_s28 = smov 8  }
   0xe   :  { %41 = dma.hbm_to_vmem [thread:$0]  %s5712_s2, 256, %s36_s25, [#allocation7], %s4613_s27, %s4613_s27, %s4614_s28  }
   0xf   :  { %s4615_s8 = smov [#allocation3]  }
  0x10   :  { %s21_s9 = sshll.u32 %s4615_s8, 4  ;;  %s22_s9 = int_to_ptr.vmem [resolvable:$true] %s21_s9 }
  0x11   :  { %s4532_s10 = scalar_lea.vmem %s22_s9, 256  ;;  %p4537_p6 = scmp.lt.s32.totalorder %s22_s9, %s22_s9 }
  0x12   :  { %p4533_p5 = scmp.ne.s32.totalorder %s22_s9, %s4532_s10  ;;  %p4538_p7 = scmp.lt.s32.totalorder %s4532_s10, %s4532_s10 }
  0x14   :  { %p4539_p8 = por %p4538_p7, %p4537_p6 }
  0x16   :  { %p4540_p9 = pnand %p4539_p8, %p4533_p5 }
  0x18   :  { %4543 = shalt.err (!%p4540_p9)
}
  0x19   :  { %s4616_s11 = smov 32   ;;  %s4617_s12 = smov 2  }
  0x1a   :  { %27 = dma.hbm_to_vmem [thread:$0]  %s5710_s0, 256, %s22_s9, [#allocation4], %s4616_s11, %s4616_s11, %s4617_s12  }
  0x1b   :  { %s4618_s15 = smov [#allocation8]   ;;  %s4619_s16 = smov [#allocation9]  }
  0x1c   :  { %s47_s2 = sshll.u32 %s4618_s15, 4  ;;  %s61_s17 = sshll.u32 %s4619_s16, 4  ;;  %s48_s2 = int_to_ptr.vmem [resolvable:$true] %s47_s2  ;;  %s62_s17 = int_to_ptr.vmem [resolvable:$true] %s61_s17 }
  0x1d   :  { %s4552_s18 = scalar_lea.vmem %s48_s2, 512  ;;  %p4557_p11 = scmp.lt.s32.totalorder %s48_s2, %s48_s2 }
  0x1e   :  { %p4553_p10 = scmp.ne.s32.totalorder %s48_s2, %s4552_s18  ;;  %p4558_p12 = scmp.lt.s32.totalorder %s4552_s18, %s4552_s18 }
  0x20   :  { %p4559_p13 = por %p4558_p12, %p4557_p11 }
  0x22   :  { %p4560_p0 = pnand %p4559_p13, %p4553_p10 }
  0x24   :  { %4563 = shalt.err (!%p4560_p0)
}
  0x25   :  { %53 = dma.hbm_to_vmem [thread:$0]  %s5713_s3, 512, %s48_s2, [#allocation7], %s4613_s27, %s4613_s27, %s4614_s28  }
  0x26   :  { %s4572_s0 = scalar_lea.vmem %s62_s17, 512  ;;  %p4577_p2 = scmp.lt.s32.totalorder %s62_s17, %s62_s17 }
  0x27   :  { %p4573_p1 = scmp.ne.s32.totalorder %s62_s17, %s4572_s0  ;;  %p4578_p3 = scmp.lt.s32.totalorder %s4572_s0, %s4572_s0 }
  0x29   :  { %p4579_p4 = por %p4578_p3, %p4577_p2 }
  0x2b   :  { %p4580_p5 = pnand %p4579_p4, %p4573_p1 }
  0x2d   :  { %4583 = shalt.err (!%p4580_p5)
}
  0x2e   :  { %67 = dma.hbm_to_vmem [thread:$0]  %s5715_s5, 512, %s62_s17, [#allocation10], %s4613_s27, %s4613_s27, %s4614_s28  }
  0x2f   :  { %4604 = dma.done.wait [#allocation4], 256  }
  0x30   :  { %4605 = vsyncadd [#allocation4], 4294967040 }
  0x31   :  { %4606 = dma.done.wait [#allocation7], 768  }
  0x32   :  { %4607 = vsyncadd [#allocation7], 4294966528 }
  0x33   :  { %4608 = dma.done.wait [#allocation10], 512  }
  0x34   :  { %4609 = vsyncadd [#allocation10], 4294966784  ;;  %v5726_v0 = vmov 0.0   ;;  %vm4621_vm0 = vmmov 0   ;;  %v5723_v1 = vmov 0   ;;  %v4697_v2 = vld [vmem:[#allocation6 + $0x8] sm:$0xff] }
  0x35   :  { %3961 = vmatprep.subr.mxu0 %v5726_v0  ;;  %3965 = vmatprep.mubr.msk.f32.mxu0 %vm4621_vm0, %v5726_v0  ;;  %v4699_v3 = vld [vmem:[#allocation6] sm:$0xff]  ;;  %vm101_vm1 = vcmask 130048   ;;  %v255_v4 = vld [vmem:[#allocation3 + $0x4] sm:$0x3]  ;;  %v100_v5 = vld [vmem:[#allocation3] sm:$0x3] }
  0x36   :  { %3947 = vmatprep.subr.mxu1 %v5726_v0  ;;  %3951 = vmatprep.mubr.msk.f32.mxu1 %vm4621_vm0, %v5726_v0  ;;  %v4710_v6 = vld [vmem:[%s5711_s1] sm:$0x3]  ;;  %v409_v8 = vld [vmem:[#allocation3 + $0x8] sm:$0x3]  ;;  %v563_v11 = vld [vmem:[#allocation3 + $0xc] sm:$0x3] }
  0x37   :  { %4358 = vset.pattern.permute.xlu0 %v5723_v1  ;;  %4359 = vset.pattern.permute.xlu1 %v5723_v1  ;;  %vm794_vm2 = vcmp.gt.s32.totalorder %v4710_v6, 0  ;;  %v4716_v7 = vadd.s32 4294967295, %v4710_v6  ;;  %vm1466_vm4 = vcmp.gt.s32.totalorder %v4710_v6, 2  ;;  %v4737_v12 = vld [vmem:[#allocation8 + $0x18] sm:$0xff]  ;;  %v4743_v13 = vld [vmem:[#allocation8 + $0x10] sm:$0xff]  ;;  %vm1841_vm5 = vcmp.gt.s32.totalorder %v4710_v6, 3 }
  0x38   :  { %3962 = vmatpush3.msra.mxu0 %v4697_v2  ;;  %3948 = vmatpush3.msra.mxu1 %v4697_v2  ;;  %v4722_v9 = vsel %vm794_vm2, 1.0, %v5726_v0  ;;  %v4746_v14 = vsel %vm1466_vm4, 1.0, %v5726_v0  ;;  %v4753_v15 = vld [vmem:[#allocation8 + $0x8] sm:$0xff]  ;;  %v4759_v16 = vld [vmem:[#allocation8] sm:$0xff]  ;;  %v4762_v17 = vsel %vm1841_vm5, 1.0, %v5726_v0  ;;  %vm2216_vm6 = vcmp.gt.s32.totalorder %v4710_v6, 4 }
  0x39   :  { %3963 = vmatprep.subr.mxu0 %v5726_v0  ;;  %3949 = vmatprep.subr.mxu1 %v5726_v0  ;;  %vm804_vm3 = vcmp.eq.s32.totalorder %v4716_v7, 0  ;;  %v4775_v18 = vsel %vm2216_vm6, 1.0, %v5726_v0  ;;  %vm2591_vm7 = vcmp.gt.s32.totalorder %v4710_v6, 5  ;;  %vm3341_vm8 = vcmp.gt.s32.totalorder %v4710_v6, 7  ;;  %v178_v21 = vld [vmem:[#allocation3 + $0x2] sm:$0x3] }
  0x3a   :  { %3964 = vmatpush3.msra.mxu0 %v4699_v3  ;;  %3950 = vmatpush3.msra.mxu1 %v4699_v3  ;;  %v805_v10 = vsel %vm804_vm3, 1, %v5723_v1  ;;  %v4784_v19 = vsel %vm2591_vm7, 1.0, %v5726_v0  ;;  %v4789_v20 = vsel %vm3341_vm8, 1.0, %v5726_v0  ;;  %v332_v22 = vld [vmem:[#allocation3 + $0x6] sm:$0x3]  ;;  %v4810_v25 = vld [vmem:[#allocation9 + $0x18] sm:$0xff] }
  0x3b   :  { %3966 = vmatmul.mubr.msk.f32.vlgmr.msra.gmra.mxu0 %vm101_vm1, %v255_v4  ;;  %3975 = vmatprep.subr.mxu0 %v5726_v0  ;;  %v486_v23 = vld [vmem:[#allocation3 + $0xa] sm:$0x3]  ;;  %v640_v24 = vld [vmem:[#allocation3 + $0xe] sm:$0x3]  ;;  %v4818_v26 = vld [vmem:[#allocation9 + $0x10] sm:$0xff]  ;;  %vm1091_vm9 = vcmp.gt.s32.totalorder %v4710_v6, 1 }
  0x3c   :  { %3976 = vmatpush3.msra.mxu0 %v4697_v2  ;;  %3979 = vmatprep.mubr.msk.f32.mxu0 %vm4621_vm0, %v5726_v0  ;;  %v4824_v27 = vld [vmem:[#allocation9 + $0x8] sm:$0xff]  ;;  %v4830_v28 = vld [vmem:[#allocation9] sm:$0xff]  ;;  %vm1100_vm10 = vcmp.eq.s32.totalorder %v4716_v7, 1  ;;  %v4843_v29 = vsel %vm1091_vm9, 1.0, %v5726_v0  ;;  %vm2966_vm11 = vcmp.gt.s32.totalorder %v4710_v6, 6  ;;  %vm175_vm12 = vcmask 254976  }
  0x3d   :  { %3977 = vmatprep.subr.mxu0 %v5726_v0  ;;  %3952 = vmatmul.mubr.msk.f32.vlgmr.msra.gmra.mxu1 %vm101_vm1, %v100_v5  ;;  %v1101_v30 = vsel %vm1100_vm10, 1, %v5723_v1  ;;  %v4849_v31 = vsel %vm2966_vm11, 1.0, %v5726_v0  ;;  %v4855_v32 = vld [vmem:[%s5714_s4] ss:$0 sm:$0xff]  ;;  %vm718_vm14 = vcmask 261120   ;;  %vm887_vm15 = vcmask 253952  }
  0x3e   :  { %3978 = vmatpush3.msra.mxu0 %v4699_v3  ;;  %799 = vperm.xlu0 %4358, %v4722_v9   ;;  %vm1850_vm2 = vcmp.eq.s32.totalorder %v4716_v7, 3  ;;  %vm2225_vm3 = vcmp.eq.s32.totalorder %v4716_v7, 4  ;;  %vm2600_vm4 = vcmp.eq.s32.totalorder %v4716_v7, 5  ;;  %vm2975_vm5 = vcmp.eq.s32.totalorder %v4716_v7, 6  ;;  %s4625_s30 = smov [#allocation11]  }
  0x3f   :  { %3980 = vmatmul.mubr.msk.f32.vlgmr.msra.gmra.mxu0 %vm101_vm1, %v409_v8  ;;  %3989 = vmatprep.subr.mxu0 %v5726_v0  ;;  %vm3350_vm6 = vcmp.eq.s32.totalorder %v4716_v7, 7  ;;  %s3709_s8 = sshll.u32 %s4625_s30, 4  ;;  %s3710_s8 = int_to_ptr.vmem [resolvable:$true] %s3709_s8 }
  0x40   :  { %3990 = vmatpush3.msra.mxu0 %v4697_v2  ;;  %3993 = vmatprep.mubr.msk.f32.mxu0 %vm4621_vm0, %v5726_v0  ;;  %s4584_s9 = scalar_lea.vmem %s3710_s8, 32  ;;  %p4589_p7 = scmp.lt.s32.totalorder %s3710_s8, %s3710_s8 }
  0x41   :  { %3991 = vmatprep.subr.mxu0 %v5726_v0  ;;  %3954 = vmatprep.subr.mxu1 %v5726_v0  ;;  %p4585_p6 = scmp.ne.s32.totalorder %s3710_s8, %s4584_s9  ;;  %p4590_p8 = scmp.lt.s32.totalorder %s4584_s9, %s4584_s9 }
  0x42   :  { %3992 = vmatpush3.msra.mxu0 %v4699_v3  ;;  %807 = vperm.xlu0 %4358, %v805_v10  }
  0x43   :  { %3994 = vmatmul.mubr.msk.f32.vlgmr.msra.gmra.mxu0 %vm101_vm1, %v563_v11  ;;  %4003 = vmatprep.subr.mxu0 %v5726_v0  ;;  %p4591_p9 = por %p4590_p8, %p4589_p7 }
  0x44   :  { %4004 = vmatpush3.msra.mxu0 %v4737_v12  ;;  %4011 = vmatprep.mubr.msk.f32.mxu0 %vm4621_vm0, %v5726_v0 }
  0x45   :  { %4005 = vmatprep.subr.mxu0 %v5726_v0  ;;  %3955 = vmatpush3.msra.mxu1 %v4697_v2  ;;  %p4592_p10 = pnand %p4591_p9, %p4585_p6 }
  0x46   :  { %4006 = vmatpush3.msra.mxu0 %v4743_v13  ;;  %1471 = vperm.xlu0 %4358, %v4746_v14  }
  0x47   :  { %4007 = vmatprep.subr.mxu0 %v5726_v0  ;;  %3956 = vmatprep.subr.mxu1 %v5726_v0 }
  0x48   :  { %4008 = vmatpush3.msra.mxu0 %v4753_v15  ;;  %3957 = vmatpush3.msra.mxu1 %v4699_v3 }
  0x49   :  { %4009 = vmatprep.subr.mxu0 %v5726_v0  ;;  %3958 = vmatprep.mubr.msk.f32.mxu1 %vm4621_vm0, %v5726_v0 }
  0x4a   :  { %4010 = vmatpush3.msra.mxu0 %v4759_v16  ;;  %1846 = vperm.xlu0 %4358, %v4762_v17  }
  0x4b   :  { %4012 = vmatmul.mubr.f32.vlgmr.msra.gmra.mxu0 %v5726_v0  ;;  %3968 = vmatprep.subr.mxu1 %v5726_v0 }
  0x4c   :  { %4025 = vmatprep.subr.mxu0 %v5726_v0  ;;  %4033 = vmatprep.mubr.msk.f32.mxu0 %vm4621_vm0, %v5726_v0 }
  0x4d   :  { %3959 = vmatmul.mubr.msk.f32.vlgmr.msra.gmra.mxu1 %vm101_vm1, %v178_v21  ;;  %4026 = vmatpush3.msra.mxu0 %v4810_v25 }
  0x4e   :  { %2221 = vperm.xlu0 %4358, %v4775_v18   ;;  %3969 = vmatpush3.msra.mxu1 %v4697_v2 }
  0x4f   :  { %3972 = vmatprep.mubr.msk.f32.mxu1 %vm4621_vm0, %v5726_v0  ;;  %3970 = vmatprep.subr.mxu1 %v5726_v0 }
  0x50   :  { %3971 = vmatpush3.msra.mxu1 %v4699_v3  ;;  %4027 = vmatprep.subr.mxu0 %v5726_v0 }
  0x51   :  { %3982 = vmatprep.subr.mxu1 %v5726_v0  ;;  %3973 = vmatmul.mubr.msk.f32.vlgmr.msra.gmra.mxu1 %vm101_vm1, %v332_v22 }
  0x52   :  { %2596 = vperm.xlu0 %4358, %v4784_v19   ;;  %3983 = vmatpush3.msra.mxu1 %v4697_v2 }
  0x53   :  { %3986 = vmatprep.mubr.msk.f32.mxu1 %vm4621_vm0, %v5726_v0  ;;  %3984 = vmatprep.subr.mxu1 %v5726_v0 }
  0x54   :  { %3985 = vmatpush3.msra.mxu1 %v4699_v3  ;;  %4028 = vmatpush3.msra.mxu0 %v4818_v26 }
  0x55   :  { %3987 = vmatmul.mubr.msk.f32.vlgmr.msra.gmra.mxu1 %vm101_vm1, %v486_v23  ;;  %3996 = vmatprep.subr.mxu1 %v5726_v0  ;;  %v4932_v23 = vld [vmem:[%s5716_s6] sm:$0x1] }
  0x56   :  { %3346 = vperm.xlu0 %4358, %v4789_v20   ;;  %3997 = vmatpush3.msra.mxu1 %v4697_v2 }
  0x57   :  { %4000 = vmatprep.mubr.msk.f32.mxu1 %vm4621_vm0, %v5726_v0  ;;  %3998 = vmatprep.subr.mxu1 %v5726_v0 }
  0x58   :  { %3999 = vmatpush3.msra.mxu1 %v4699_v3  ;;  %4029 = vmatprep.subr.mxu0 %v5726_v0 }
  0x59   :  { %4001 = vmatmul.mubr.msk.f32.vlgmr.msra.gmra.mxu1 %vm101_vm1, %v640_v24  ;;  %4014 = vmatprep.subr.mxu1 %v5726_v0 }
  0x5a   :  { %4015 = vmatpush3.msra.mxu1 %v4810_v25  ;;  %4022 = vmatprep.mubr.msk.f32.mxu1 %vm4621_vm0, %v5726_v0 }
  0x5b   :  { %4016 = vmatprep.subr.mxu1 %v5726_v0  ;;  %4030 = vmatpush3.msra.mxu0 %v4824_v27 }
  0x5c   :  { %4017 = vmatpush3.msra.mxu1 %v4818_v26  ;;  %4031 = vmatprep.subr.mxu0 %v5726_v0 }
  0x5d   :  { %4018 = vmatprep.subr.mxu1 %v5726_v0  ;;  %4032 = vmatpush3.msra.mxu0 %v4830_v28 }
  0x5e   :  { %4019 = vmatpush3.msra.mxu1 %v4824_v27  ;;  %4047 = vmatprep.subr.mxu0 %v5726_v0 }
  0x5f   :  { %4020 = vmatprep.subr.mxu1 %v5726_v0  ;;  %1096 = vperm.xlu1 %4359, %v4843_v29  }
  0x60   :  { %4021 = vmatpush3.msra.mxu1 %v4830_v28 }
  0x61   :  { %4036 = vmatprep.subr.mxu1 %v5726_v0 }
  0x63   :  { %1103 = vperm.xlu1 %4359, %v1101_v30  }
  0x67   :  { %2971 = vperm.xlu1 %4359, %v4849_v31  }
  0xb9   :  { %v800_v51 = vpop.permute.xlu0 %799 }
  0xbd   :  { %v808_v52 = vpop.permute.xlu0 %807 }
  0xbe   :  { %vm809_vm13 = vcmp.eq.s32.totalorder %v808_v52, 1 }
  0xfb   :  { %v325_v33 = vpop.f32.mrf.mxu0 }
  0xfc   :  { %v326_v34 = vadd.f32 %v4855_v32, %v325_v33 }
  0xfd   :  { %v3967_v35 = vpop.f32.mrf.mxu0  ;;  %v171_v36 = vpop.f32.mrf.mxu1 }
  0xfe   :  { %330 = vst.msk [vmem:[#allocation2 + $0x4] sm:$0x3] %vm175_vm12, %v326_v34  ;;  %v172_v37 = vadd.f32 %v4855_v32, %v171_v36 }
  0xff   :  { %v479_v38 = vpop.f32.mrf.mxu0  ;;  %v3953_v39 = vpop.f32.mrf.mxu1 }
 0x100   :  { %176 = vst.msk [vmem:[#allocation2] sm:$0x3] %vm175_vm12, %v172_v37  ;;  %v480_v40 = vadd.f32 %v4855_v32, %v479_v38 }
 0x101   :  { %v3981_v41 = vpop.f32.mrf.mxu0 }
 0x102   :  { %484 = vst.msk [vmem:[#allocation2 + $0x8] sm:$0x3] %vm175_vm12, %v480_v40 }
 0x103   :  { %v633_v42 = vpop.f32.mrf.mxu0 }
 0x104   :  { %v634_v43 = vadd.f32 %v4855_v32, %v633_v42 }
 0x105   :  { %v3995_v44 = vpop.f32.mrf.mxu0 }
 0x106   :  { %638 = vst.msk [vmem:[#allocation2 + $0xc] sm:$0x3] %vm175_vm12, %v634_v43  ;;  %v1097_v43 = vpop.permute.xlu1 %1096 }
 0x107   :  { %v717_v45 = vld [vmem:[#allocation2] sm:$0x3] }
 0x10b   :  { %v788_v46 = vpop.f32.mrf.mxu0 }
 0x10c   :  { %v792_v47 = vadd.f32 %v788_v46, %v717_v45  ;;  %v909_v48 = vrot.slane %v788_v46, 7 }
 0x10d   :  { %v4013_v49 = vpop.f32.mrf.mxu0  ;;  %v248_v61 = vpop.f32.mrf.mxu1 }
 0x10e   :  { %4360 = vtanh.f32 %v792_v47  ;;  %v911_v50 = vadd.f32 %v909_v48, %v717_v45  ;;  %v249_v62 = vadd.f32 %v4855_v32, %v248_v61  ;;  %v1104_v48 = vpop.permute.xlu1 %1103 }
 0x10f   :  { %v3960_v63 = vpop.f32.mrf.mxu1  ;;  %vm1105_vm1 = vcmp.eq.s32.totalorder %v1104_v48, 1 }
 0x110   :  { %4362 = vtanh.f32 %v911_v50  ;;  %253 = vst.msk [vmem:[#allocation2 + $0x2] sm:$0x3] %vm175_vm12, %v249_v62 }
 0x111   :  { %v402_v2 = vpop.f32.mrf.mxu1 }
 0x112   :  { %v403_v3 = vadd.f32 %v4855_v32, %v402_v2  ;;  %v5006_v2 = vpop.permute.xlu1 %2971 }
 0x113   :  { %v3974_v4 = vpop.f32.mrf.mxu1 }
 0x114   :  { %407 = vst.msk [vmem:[#allocation2 + $0x6] sm:$0x3] %vm175_vm12, %v403_v3 }
 0x115   :  { %v556_v5 = vpop.f32.mrf.mxu1 }
 0x116   :  { %v557_v6 = vadd.f32 %v4855_v32, %v556_v5 }
 0x117   :  { %v3988_v8 = vpop.f32.mrf.mxu1  ;;  %v1015_v38 = vld [vmem:[#allocation2 + $0x2] sm:$0x3] }
 0x118   :  { %561 = vst.msk [vmem:[#allocation2 + $0xa] sm:$0x3] %vm175_vm12, %v557_v6 }
 0x119   :  { %v710_v10 = vpop.f32.mrf.mxu1 }
 0x11a   :  { %v711_v11 = vadd.f32 %v4855_v32, %v710_v10 }
 0x11b   :  { %v4361_v53 = vpop.eup %4360  ;;  %v4002_v21 = vpop.f32.mrf.mxu1 }
 0x11c   :  { %v4865_v54 = vmul.f32 %v4361_v53, %v800_v51  ;;  %v4867_v55 = vsel %vm809_vm13, %v4361_v53, 0.0  ;;  %715 = vst.msk [vmem:[#allocation2 + $0xe] sm:$0x3] %vm175_vm12, %v711_v11  ;;  %vm3684_vm12 = vcmask 254977  }
 0x11d   :  { %v4363_v56 = vpop.eup %4362 }
 0x11e   :  { %4023 = vmatmul.mubr.msk.f32.vlgmr.msra.gmra.mxu1 %vm718_vm14, %v4865_v54  ;;  %v4871_v57 = vmul.f32 %v4363_v56, %v800_v51  ;;  %v4873_v58 = vsel %vm809_vm13, %v4363_v56, 0.0  ;;  %v1207_v60 = vrot.slane %v4363_v56, 1 }
 0x11f   :  { %4037 = vmatpush3.msra.mxu1 %v4737_v12  ;;  %4044 = vmatprep.mubr.msk.f32.mxu1 %vm4621_vm0, %v5726_v0 }
 0x120   :  { %4038 = vmatprep.subr.mxu1 %v5726_v0  ;;  %v917_v59 = vrot.slane %v4871_v57, 1 }
 0x121   :  { %4039 = vmatpush3.msra.mxu1 %v4743_v13 }
 0x122   :  { %4040 = vmatprep.subr.mxu1 %v5726_v0  ;;  %4034 = vmatmul.mubr.msk.f32.vlgmr.msra.gmra.mxu0 %vm718_vm14, %v917_v59 }
 0x123   :  { %4041 = vmatpush3.msra.mxu1 %v4753_v15  ;;  %4048 = vmatpush3.msra.mxu0 %v4810_v25 }
 0x124   :  { %4042 = vmatprep.subr.mxu1 %v5726_v0  ;;  %4049 = vmatprep.subr.mxu0 %v5726_v0 }
 0x125   :  { %4043 = vmatpush3.msra.mxu1 %v4759_v16  ;;  %4050 = vmatpush3.msra.mxu0 %v4818_v26 }
 0x126   :  { %4045 = vmatmul.mubr.msk.f32.vlgmr.msra.gmra.mxu1 %vm718_vm14, %v4361_v53  ;;  %4058 = vmatprep.subr.mxu1 %v5726_v0 }
 0x127   :  { %4059 = vmatpush3.msra.mxu1 %v4737_v12  ;;  %4066 = vmatprep.mubr.msk.f32.mxu1 %vm4621_vm0, %v5726_v0 }
 0x128   :  { %4060 = vmatprep.subr.mxu1 %v5726_v0  ;;  %4051 = vmatprep.subr.mxu0 %v5726_v0 }
 0x129   :  { %4061 = vmatpush3.msra.mxu1 %v4743_v13  ;;  %4052 = vmatpush3.msra.mxu0 %v4824_v27 }
 0x12a   :  { %4062 = vmatprep.subr.mxu1 %v5726_v0  ;;  %4053 = vmatprep.subr.mxu0 %v5726_v0 }
 0x12b   :  { %4063 = vmatpush3.msra.mxu1 %v4753_v15  ;;  %4054 = vmatpush3.msra.mxu0 %v4830_v28 }
 0x12c   :  { %4064 = vmatprep.subr.mxu1 %v5726_v0  ;;  %4055 = vmatprep.mubr.msk.f32.mxu0 %vm4621_vm0, %v5726_v0 }
 0x12d   :  { %4065 = vmatpush3.msra.mxu1 %v4759_v16  ;;  %4069 = vmatprep.subr.mxu0 %v5726_v0 }
 0x12e   :  { %4067 = vmatmul.mubr.msk.f32.vlgmr.msra.gmra.mxu1 %vm718_vm14, %v1207_v60  ;;  %4080 = vmatprep.subr.mxu1 %v5726_v0 }
 0x12f   :  { %4081 = vmatpush3.msra.mxu1 %v4737_v12  ;;  %4088 = vmatprep.mubr.msk.f32.mxu1 %vm4621_vm0, %v5726_v0 }
 0x130   :  { %4082 = vmatprep.subr.mxu1 %v5726_v0 }
 0x131   :  { %4083 = vmatpush3.msra.mxu1 %v4743_v13 }
 0x132   :  { %4084 = vmatprep.subr.mxu1 %v5726_v0 }
 0x133   :  { %4085 = vmatpush3.msra.mxu1 %v4753_v15 }
 0x134   :  { %4086 = vmatprep.subr.mxu1 %v5726_v0 }
 0x135   :  { %4087 = vmatpush3.msra.mxu1 %v4759_v16 }
 0x136   :  { %4102 = vmatprep.subr.mxu1 %v5726_v0 }
 0x1de   :  { %v881_v22 = vpop.f32.mrf.mxu1 }
 0x1df   :  { %v885_v24 = vmax.f32 %v881_v22, 0.0 }
 0x1e0   :  { %v4024_v30 = vpop.f32.mrf.mxu1 }
 0x1e1   :  { %v886_v33 = vmul.f32 %v885_v24, %v4932_v23  ;;  %v1002_v30 = vrot.slane %v4722_v9, 1 }
 0x1e2   :  { %v986_v34 = vpop.f32.mrf.mxu0 }
 0x1e3   :  { %v990_v35 = vmax.f32 %v986_v34, 0.0  ;;  %v888_v36 = vsel %vm887_vm15, %v886_v33, 0.0 }
 0x1e4   :  { %v4035_v37 = vpop.f32.mrf.mxu0  ;;  %889 = vadd.xlane.f32.xlu1 %v888_v36  ;;  %v1390_v36 = vld [vmem:[#allocation2 + $0x4] sm:$0x3] }
 0x1e5   :  { %v991_v32 = vmul.f32 %v990_v35, %v4932_v23 }
 0x1e6   :  { %v1085_v39 = vpop.f32.mrf.mxu1 }
 0x1e7   :  { %v1089_v40 = vadd.f32 %v1085_v39, %v1015_v38  ;;  %v992_v41 = vsel %vm887_vm15, %v991_v32, 0.0 }
 0x1e8   :  { %v4046_v42 = vpop.f32.mrf.mxu1  ;;  %993 = vadd.xlane.f32.xlu0 %v992_v41 }
 0x1e9   :  { %4364 = vtanh.f32 %v1089_v40 }
 0x1ee   :  { %v1276_v44 = vpop.f32.mrf.mxu1 }
 0x1ef   :  { %v1281_v45 = vrot.slane %v1276_v44, 7 }
 0x1f0   :  { %v4068_v46 = vpop.f32.mrf.mxu1 }
 0x1f1   :  { %v1283_v47 = vadd.f32 %v1281_v45, %v1015_v38 }
 0x1f3   :  { %4366 = vtanh.f32 %v1283_v47 }
 0x1f6   :  { %v4365_v49 = vpop.eup %4364 }
 0x1f7   :  { %v4938_v50 = vmul.f32 %v4365_v49, %v1097_v43  ;;  %v4942_v51 = vsel %vm1105_vm1, %v4365_v49, %v4867_v55  ;;  %4089 = vmatmul.mubr.msk.f32.vlgmr.msra.gmra.mxu1 %vm718_vm14, %v4365_v49 }
 0x1f8   :  { %4103 = vmatpush3.msra.mxu1 %v4737_v12  ;;  %4110 = vmatprep.mubr.msk.f32.mxu1 %vm4621_vm0, %v5726_v0 }
 0x1f9   :  { %4056 = vmatmul.mubr.msk.f32.vlgmr.msra.gmra.mxu0 %vm718_vm14, %v4938_v50  ;;  %4104 = vmatprep.subr.mxu1 %v5726_v0 }
 0x1fa   :  { %4070 = vmatpush3.msra.mxu0 %v4810_v25  ;;  %4105 = vmatpush3.msra.mxu1 %v4743_v13 }
 0x1fb   :  { %4071 = vmatprep.subr.mxu0 %v5726_v0  ;;  %4106 = vmatprep.subr.mxu1 %v5726_v0 }
 0x1fc   :  { %4072 = vmatpush3.msra.mxu0 %v4818_v26  ;;  %4107 = vmatpush3.msra.mxu1 %v4753_v15 }
 0x1fd   :  { %4073 = vmatprep.subr.mxu0 %v5726_v0  ;;  %4108 = vmatprep.subr.mxu1 %v5726_v0 }
 0x1fe   :  { %4074 = vmatpush3.msra.mxu0 %v4824_v27  ;;  %4109 = vmatpush3.msra.mxu1 %v4759_v16 }
 0x1ff   :  { %4075 = vmatprep.subr.mxu0 %v5726_v0  ;;  %4077 = vmatprep.mubr.msk.f32.mxu0 %vm4621_vm0, %v5726_v0 }
 0x200   :  { %v4367_v52 = vpop.eup %4366  ;;  %4076 = vmatpush3.msra.mxu0 %v4830_v28  ;;  %4124 = vmatprep.subr.mxu1 %v5726_v0 }
 0x201   :  { %v4966_v53 = vmul.f32 %v4367_v52, %v1097_v43  ;;  %v4970_v55 = vsel %vm1105_vm1, %v4367_v52, %v4873_v58  ;;  %v1582_v56 = vrot.slane %v4367_v52, 1  ;;  %4091 = vmatprep.subr.mxu0 %v5726_v0  ;;  %v4998_v58 = vpop.permute.xlu0 %1471  ;;  %vm3690_vm1 = vcmask 517377  }
 0x203   :  { %v5722_v60 = vrot.slane %v4966_v53, 1  ;;  %4111 = vmatmul.mubr.msk.f32.vlgmr.msra.gmra.mxu1 %vm718_vm14, %v1582_v56 }
 0x204   :  { %4125 = vmatpush3.msra.mxu1 %v4737_v12  ;;  %4132 = vmatprep.mubr.msk.f32.mxu1 %vm4621_vm0, %v5726_v0 }
 0x205   :  { %4078 = vmatmul.mubr.msk.f32.vlgmr.msra.gmra.mxu0 %vm718_vm14, %v5722_v60  ;;  %4126 = vmatprep.subr.mxu1 %v5726_v0  ;;  %v5000_v61 = vpop.permute.xlu0 %1846 }
 0x206   :  { %4092 = vmatpush3.msra.mxu0 %v4810_v25  ;;  %4127 = vmatpush3.msra.mxu1 %v4743_v13 }
 0x207   :  { %4093 = vmatprep.subr.mxu0 %v5726_v0  ;;  %4128 = vmatprep.subr.mxu1 %v5726_v0 }
 0x208   :  { %4094 = vmatpush3.msra.mxu0 %v4818_v26  ;;  %4129 = vmatpush3.msra.mxu1 %v4753_v15 }
 0x209   :  { %4095 = vmatprep.subr.mxu0 %v5726_v0  ;;  %4130 = vmatprep.subr.mxu1 %v5726_v0  ;;  %v5002_v62 = vpop.permute.xlu0 %2221 }
 0x20a   :  { %4096 = vmatpush3.msra.mxu0 %v4824_v27  ;;  %4131 = vmatpush3.msra.mxu1 %v4759_v16 }
 0x20b   :  { %4097 = vmatprep.subr.mxu0 %v5726_v0  ;;  %4099 = vmatprep.mubr.msk.f32.mxu0 %vm4621_vm0, %v5726_v0 }
 0x20c   :  { %4098 = vmatpush3.msra.mxu0 %v4830_v28  ;;  %4146 = vmatprep.subr.mxu1 %v5726_v0 }
 0x20d   :  { %4113 = vmatprep.subr.mxu0 %v5726_v0  ;;  %v5004_v63 = vpop.permute.xlu0 %2596 }
 0x211   :  { %v5008_v3 = vpop.permute.xlu0 %3346 }
 0x26d   :  { %v890_v4 = vpop.xlane.xlu1 %889 }
 0x26e   :  { %4368 = vtanh.f32 %v890_v4 }
 0x271   :  { %v994_v5 = vpop.xlane.xlu0 %993 }
 0x272   :  { %4370 = vtanh.f32 %v994_v5 }
 0x27b   :  { %v5010_v6 = vpop.eup %4368 }
 0x27c   :  { %v895_v8 = vsub.f32 %v5010_v6, %v5010_v6 }
 0x27e   :  { %v896_v10 = vmul.f32 1.442695, %v895_v8 }
 0x27f   :  { %v5014_v11 = vpop.eup %4370 }
 0x280   :  { %4372 = vpow2.f32 %v896_v10  ;;  %v999_v21 = vsub.f32 %v5014_v11, %v5014_v11  ;;  %v1287_v10 = vadd.f32 %v4966_v53, %v4871_v57 }
 0x282   :  { %v1000_v22 = vmul.f32 1.442695, %v999_v21  ;;  %v1288_v21 = vmax.f32 %v4871_v57, %v4966_v53 }
 0x284   :  { %4374 = vpow2.f32 %v1000_v22 }
 0x28d   :  { %v4373_v24 = vpop.eup %4372 }
 0x28e   :  { %v5020_v33 = vmul.f32 %v4373_v24, %v4722_v9 }
 0x290   :  { %903 = vperm.xlu1 %4359, %v5020_v33  }
 0x291   :  { %v4375_v34 = vpop.eup %4374 }
 0x292   :  { %v5023_v35 = vmul.f32 %v4375_v34, %v1002_v30 }
 0x294   :  { %1009 = vperm.xlu1 %4359, %v5023_v35  }
 0x2b7   :  { %v1460_v37 = vpop.f32.mrf.mxu1 }
 0x2b8   :  { %v1464_v32 = vadd.f32 %v1460_v37, %v1390_v36 }
 0x2b9   :  { %v1178_v38 = vpop.f32.mrf.mxu0  ;;  %v4090_v39 = vpop.f32.mrf.mxu1 }
 0x2ba   :  { %4376 = vtanh.f32 %v1464_v32  ;;  %v1182_v40 = vmax.f32 %v1178_v38, 0.0  ;;  %v892_v38 = vsub.f32 -inf, %v5010_v6 }
 0x2bb   :  { %v4057_v41 = vpop.f32.mrf.mxu0 }
 0x2bc   :  { %v1183_v42 = vmul.f32 %v1182_v40, %v4932_v23  ;;  %v893_v39 = vmul.f32 1.442695, %v892_v38 }
 0x2be   :  { %v1184_v9 = vsel %vm887_vm15, %v1183_v42, 0.0 }
 0x2bf   :  { %1185 = vadd.xlane.f32.xlu1 %v1184_v9 }
 0x2c3   :  { %v1651_v43 = vpop.f32.mrf.mxu1 }
 0x2c4   :  { %v1656_v44 = vrot.slane %v1651_v43, 7 }
 0x2c5   :  { %v1359_v45 = vpop.f32.mrf.mxu0  ;;  %v4112_v46 = vpop.f32.mrf.mxu1 }
 0x2c6   :  { %v1658_v47 = vadd.f32 %v1656_v44, %v1390_v36  ;;  %v1363_v48 = vmax.f32 %v1359_v45, 0.0  ;;  %v996_v46 = vsub.f32 -inf, %v5014_v11 }
 0x2c7   :  { %v5028_v49 = vpop.eup %4376  ;;  %v4079_v52 = vpop.f32.mrf.mxu0 }
 0x2c8   :  { %4378 = vtanh.f32 %v1658_v47  ;;  %4133 = vmatmul.mubr.msk.f32.vlgmr.msra.gmra.mxu1 %vm718_vm14, %v5028_v49  ;;  %v5034_v56 = vmul.f32 %v5028_v49, %v4998_v58  ;;  %v1364_v4 = vmul.f32 %v1363_v48, %v4932_v23  ;;  %v997_v47 = vmul.f32 1.442695, %v996_v46 }
 0x2c9   :  { %4147 = vmatpush3.msra.mxu1 %v4737_v12  ;;  %4154 = vmatprep.mubr.msk.f32.mxu1 %vm4621_vm0, %v5726_v0 }
 0x2ca   :  { %4100 = vmatmul.mubr.msk.f32.vlgmr.msra.gmra.mxu0 %vm718_vm14, %v5034_v56  ;;  %v1365_v5 = vsel %vm887_vm15, %v1364_v4, 0.0  ;;  %4148 = vmatprep.subr.mxu1 %v5726_v0 }
 0x2cb   :  { %1366 = vadd.xlane.f32.xlu1 %v1365_v5  ;;  %4114 = vmatpush3.msra.mxu0 %v4810_v25 }
 0x2cc   :  { %4149 = vmatpush3.msra.mxu1 %v4743_v13  ;;  %4115 = vmatprep.subr.mxu0 %v5726_v0 }
 0x2cd   :  { %4150 = vmatprep.subr.mxu1 %v5726_v0  ;;  %4116 = vmatpush3.msra.mxu0 %v4818_v26 }
 0x2ce   :  { %4151 = vmatpush3.msra.mxu1 %v4753_v15  ;;  %4117 = vmatprep.subr.mxu0 %v5726_v0 }
 0x2cf   :  { %4152 = vmatprep.subr.mxu1 %v5726_v0  ;;  %4118 = vmatpush3.msra.mxu0 %v4824_v27 }
 0x2d0   :  { %4153 = vmatpush3.msra.mxu1 %v4759_v16  ;;  %4119 = vmatprep.subr.mxu0 %v5726_v0 }
 0x2d1   :  { %4120 = vmatpush3.msra.mxu0 %v4830_v28  ;;  %4121 = vmatprep.mubr.msk.f32.mxu0 %vm4621_vm0, %v5726_v0 }
 0x2d2   :  { %4168 = vmatprep.subr.mxu1 %v5726_v0  ;;  %4135 = vmatprep.subr.mxu0 %v5726_v0 }
 0x2d5   :  { %v5060_v8 = vpop.eup %4378 }
 0x2d6   :  { %v1957_v22 = vrot.slane %v5060_v8, 1  ;;  %v5069_v24 = vmul.f32 %v5060_v8, %v4998_v58 }
 0x2d8   :  { %4155 = vmatmul.mubr.msk.f32.vlgmr.msra.gmra.mxu1 %vm718_vm14, %v1957_v22  ;;  %v5719_v30 = vrot.slane %v5069_v24, 1  ;;  %v5074_v34 = vmax.f32 %v1288_v21, %v5069_v24  ;;  %v5077_v36 = vadd.f32 %v5069_v24, %v1287_v10 }
 0x2d9   :  { %4169 = vmatpush3.msra.mxu1 %v4737_v12  ;;  %4176 = vmatprep.mubr.msk.f32.mxu1 %vm4621_vm0, %v5726_v0 }
 0x2da   :  { %4122 = vmatmul.mubr.msk.f32.vlgmr.msra.gmra.mxu0 %vm718_vm14, %v5719_v30  ;;  %4170 = vmatprep.subr.mxu1 %v5726_v0 }
 0x2db   :  { %4136 = vmatpush3.msra.mxu0 %v4810_v25  ;;  %4171 = vmatpush3.msra.mxu1 %v4743_v13 }
 0x2dc   :  { %4137 = vmatprep.subr.mxu0 %v5726_v0  ;;  %4172 = vmatprep.subr.mxu1 %v5726_v0 }
 0x2dd   :  { %4138 = vmatpush3.msra.mxu0 %v4818_v26  ;;  %4173 = vmatpush3.msra.mxu1 %v4753_v15 }
 0x2de   :  { %4139 = vmatprep.subr.mxu0 %v5726_v0  ;;  %4174 = vmatprep.subr.mxu1 %v5726_v0 }
 0x2df   :  { %4140 = vmatpush3.msra.mxu0 %v4824_v27  ;;  %4175 = vmatpush3.msra.mxu1 %v4759_v16 }
 0x2e0   :  { %4141 = vmatprep.subr.mxu0 %v5726_v0  ;;  %4143 = vmatprep.mubr.msk.f32.mxu0 %vm4621_vm0, %v5726_v0 }
 0x2e1   :  { %4142 = vmatpush3.msra.mxu0 %v4830_v28  ;;  %4190 = vmatprep.subr.mxu1 %v5726_v0 }
 0x2e2   :  { %4157 = vmatprep.subr.mxu0 %v5726_v0 }
 0x30b   :  { %v904_v58 = vpop.permute.xlu1 %903 }
 0x30c   :  { %v906_v10 = vmul.f32 %v904_v58, %v4865_v54 }
 0x30f   :  { %v1010_v37 = vpop.permute.xlu1 %1009 }
 0x348   :  { %v1186_v32 = vpop.xlane.xlu1 %1185 }
 0x349   :  { %4380 = vtanh.f32 %v1186_v32 }
 0x354   :  { %v1367_v40 = vpop.xlane.xlu1 %1366 }
 0x355   :  { %4382 = vtanh.f32 %v1367_v40 }
 0x356   :  { %v4381_v41 = vpop.eup %4380  ;;  %4384 = vpow2.f32 %v893_v39 }
 0x357   :  { %v5104_v42 = vmax.f32 %v5010_v6, %v4381_v41 }
 0x359   :  { %v1189_v9 = vsub.f32 %v5010_v6, %v5104_v42  ;;  %v1192_v43 = vsub.f32 %v4381_v41, %v5104_v42 }
 0x35b   :  { %v1193_v44 = vmul.f32 1.442695, %v1192_v43  ;;  %v1190_v45 = vmul.f32 1.442695, %v1189_v9 }
 0x35d   :  { %4386 = vpow2.f32 %v1193_v44 }
 0x35e   :  { %4388 = vpow2.f32 %v1190_v45 }
 0x35f   :  { %4390 = vpow2.f32 %v997_v47  ;;  %v1765_v47 = vld [vmem:[#allocation2 + $0x6] sm:$0x3] }
 0x362   :  { %v5110_v48 = vpop.eup %4382 }
 0x363   :  { %v4385_v52 = vpop.eup %4384  ;;  %v5114_v4 = vmax.f32 %v5014_v11, %v5110_v48 }
 0x364   :  { %v899_v5 = vmul.f32 0.0, %v4385_v52 }
 0x365   :  { %v1370_v6 = vsub.f32 %v5014_v11, %v5114_v4  ;;  %v1013_v11 = vmul.f32 %v1010_v37, %v917_v59 }
 0x366   :  { %v900_v32 = vadd.f32 %v899_v5, %v5020_v33  ;;  %v907_v38 = vadd.f32 %v906_v10, %v899_v5 }
 0x367   :  { %v1371_v21 = vmul.f32 1.442695, %v1370_v6 }
 0x369   :  { %4392 = vpow2.f32 %v1371_v21 }
 0x36a   :  { %v4387_v22 = vpop.eup %4386 }
 0x36b   :  { %v4389_v39 = vpop.eup %4388  ;;  %v1195_v40 = vmul.f32 %v4387_v22, %v4843_v29 }
 0x36c   :  { %v1196_v41 = vmul.f32 %v4389_v39, %v900_v32  ;;  %v5121_v9 = vmul.f32 %v4389_v39, %v907_v38  ;;  %v4391_v44 = vpop.eup %4390 }
 0x36d   :  { %1201 = vperm.xlu0 %4358, %v1195_v40   ;;  %v5127_v58 = vmul.f32 0.0, %v4391_v44 }
 0x36e   :  { %v5123_v43 = vadd.f32 %v1196_v41, %v1195_v40 }
 0x36f   :  { %v1014_v45 = vadd.f32 %v1013_v11, %v5127_v58 }
 0x376   :  { %v5130_v33 = vpop.eup %4392 }
 0x377   :  { %v5133_v46 = vmul.f32 %v5130_v33, %v1014_v45 }
 0x388   :  { %v1835_v52 = vpop.f32.mrf.mxu1 }
 0x389   :  { %v1839_v6 = vadd.f32 %v1835_v52, %v1765_v47 }
 0x38a   :  { %v1553_v5 = vpop.f32.mrf.mxu0  ;;  %v4134_v10 = vpop.f32.mrf.mxu1 }
 0x38b   :  { %4394 = vtanh.f32 %v1839_v6  ;;  %v1557_v21 = vmax.f32 %v1553_v5, 0.0 }
 0x38c   :  { %v4101_v22 = vpop.f32.mrf.mxu0 }
 0x38d   :  { %v1558_v57 = vmul.f32 %v1557_v21, %v4932_v23 }
 0x38f   :  { %v1559_v59 = vsel %vm887_vm15, %v1558_v57, 0.0 }
 0x390   :  { %1560 = vadd.xlane.f32.xlu0 %v1559_v59 }
 0x398   :  { %v5137_v37 = vpop.eup %4394  ;;  %v2026_v32 = vpop.f32.mrf.mxu1 }
 0x399   :  { %5741 = vst [vmem:[#allocation16_spill] sm:$0xff] %v5137_v37  ;;  %v2031_v38 = vrot.slane %v2026_v32, 7  ;;  %4177 = vmatmul.mubr.msk.f32.vlgmr.msra.gmra.mxu1 %vm718_vm14, %v5137_v37  ;;  %v5143_v39 = vmul.f32 %v5137_v37, %v5000_v61  ;;  %v1376_v37 = vrot.slane %v4843_v29, 1 }
 0x39a   :  { %v1734_v40 = vpop.f32.mrf.mxu0  ;;  %v4156_v41 = vpop.f32.mrf.mxu1  ;;  %4191 = vmatpush3.msra.mxu1 %v4737_v12  ;;  %4198 = vmatprep.mubr.msk.f32.mxu1 %vm4621_vm0, %v5726_v0 }
 0x39b   :  { %v2033_v44 = vadd.f32 %v2031_v38, %v1765_v47  ;;  %v1738_v11 = vmax.f32 %v1734_v40, 0.0  ;;  %4144 = vmatmul.mubr.msk.f32.vlgmr.msra.gmra.mxu0 %vm718_vm14, %v5143_v39  ;;  %4192 = vmatprep.subr.mxu1 %v5726_v0 }
 0x39c   :  { %v4123_v45 = vpop.f32.mrf.mxu0  ;;  %4158 = vmatpush3.msra.mxu0 %v4810_v25  ;;  %4193 = vmatpush3.msra.mxu1 %v4743_v13 }
 0x39d   :  { %4396 = vtanh.f32 %v2033_v44  ;;  %v1739_v52 = vmul.f32 %v1738_v11, %v4932_v23  ;;  %4159 = vmatprep.subr.mxu0 %v5726_v0  ;;  %4194 = vmatprep.subr.mxu1 %v5726_v0 }
 0x39e   :  { %4160 = vmatpush3.msra.mxu0 %v4818_v26  ;;  %4195 = vmatpush3.msra.mxu1 %v4753_v15 }
 0x39f   :  { %v1740_v47 = vsel %vm887_vm15, %v1739_v52, 0.0  ;;  %4161 = vmatprep.subr.mxu0 %v5726_v0  ;;  %4196 = vmatprep.subr.mxu1 %v5726_v0  ;;  %v2140_v52 = vld [vmem:[#allocation2 + $0x8] sm:$0x3] }
 0x3a0   :  { %1741 = vadd.xlane.f32.xlu1 %v1740_v47  ;;  %4162 = vmatpush3.msra.mxu0 %v4824_v27 }
 0x3a1   :  { %4197 = vmatpush3.msra.mxu1 %v4759_v16  ;;  %4163 = vmatprep.subr.mxu0 %v5726_v0 }
 0x3a2   :  { %4164 = vmatpush3.msra.mxu0 %v4830_v28  ;;  %4165 = vmatprep.mubr.msk.f32.mxu0 %vm4621_vm0, %v5726_v0 }
 0x3a3   :  { %4212 = vmatprep.subr.mxu1 %v5726_v0  ;;  %4179 = vmatprep.subr.mxu0 %v5726_v0 }
 0x3aa   :  { %v5169_v6 = vpop.eup %4396 }
 0x3ab   :  { %5742 = vst [vmem:[#allocation17_spill] sm:$0xff] %v5169_v6  ;;  %v2332_v5 = vrot.slane %v5169_v6, 1  ;;  %v5174_v10 = vmul.f32 %v5169_v6, %v5000_v61 }
 0x3ad   :  { %4199 = vmatmul.mubr.msk.f32.vlgmr.msra.gmra.mxu1 %vm718_vm14, %v2332_v5  ;;  %v5718_v21 = vrot.slane %v5174_v10, 1  ;;  %v2038_v22 = vmax.f32 %v5074_v34, %v5174_v10  ;;  %v5182_v57 = vadd.f32 %v5174_v10, %v5077_v36  ;;  %v5291_v34 = vld [vmem:[#allocation8 + $0x8] sm:$0xff] }
 0x3ae   :  { %4213 = vmatpush3.msra.mxu1 %v4737_v12  ;;  %4220 = vmatprep.mubr.msk.f32.mxu1 %vm4621_vm0, %v5726_v0 }
 0x3af   :  { %4166 = vmatmul.mubr.msk.f32.vlgmr.msra.gmra.mxu0 %vm718_vm14, %v5718_v21  ;;  %4214 = vmatprep.subr.mxu1 %v5726_v0 }
 0x3b0   :  { %4180 = vmatpush3.msra.mxu0 %v4810_v25  ;;  %4215 = vmatpush3.msra.mxu1 %v4743_v13 }
 0x3b1   :  { %4181 = vmatprep.subr.mxu0 %v5726_v0  ;;  %4216 = vmatprep.subr.mxu1 %v5726_v0 }
 0x3b2   :  { %4182 = vmatpush3.msra.mxu0 %v4818_v26  ;;  %4217 = vmatpush3.msra.mxu1 %v4753_v15 }
 0x3b3   :  { %4183 = vmatprep.subr.mxu0 %v5726_v0  ;;  %4218 = vmatprep.subr.mxu1 %v5726_v0 }
 0x3b4   :  { %4184 = vmatpush3.msra.mxu0 %v4824_v27  ;;  %4219 = vmatpush3.msra.mxu1 %v4759_v16 }
 0x3b5   :  { %4185 = vmatprep.subr.mxu0 %v5726_v0  ;;  %4187 = vmatprep.mubr.msk.f32.mxu0 %vm4621_vm0, %v5726_v0 }
 0x3b6   :  { %4186 = vmatpush3.msra.mxu0 %v4830_v28  ;;  %4234 = vmatprep.subr.mxu1 %v5726_v0 }
 0x3b7   :  { %4201 = vmatprep.subr.mxu0 %v5726_v0 }
 0x3e8   :  { %v1202_v61 = vpop.permute.xlu0 %1201 }
 0x3e9   :  { %v1204_v36 = vmul.f32 %v1202_v61, %v4938_v50 }
 0x3eb   :  { %v1205_v59 = vadd.f32 %v1204_v36, %v5121_v9 }
 0x419   :  { %v1561_v32 = vpop.xlane.xlu0 %1560 }
 0x41a   :  { %4398 = vtanh.f32 %v1561_v32 }
 0x427   :  { %v5209_v38 = vpop.eup %4398 }
 0x428   :  { %v5213_v40 = vmax.f32 %v5104_v42, %v5209_v38 }
 0x42a   :  { %v1564_v41 = vsub.f32 %v5104_v42, %v5213_v40 }
 0x42c   :  { %v1565_v44 = vmul.f32 1.442695, %v1564_v41 }
 0x42e   :  { %4400 = vpow2.f32 %v1565_v44 }
 0x43b   :  { %v5217_v11 = vpop.eup %4400 }
 0x43c   :  { %v5220_v45 = vmul.f32 %v5217_v11, %v1205_v59 }
 0x459   :  { %v2210_v9 = vpop.f32.mrf.mxu1 }
 0x45a   :  { %v2214_v47 = vadd.f32 %v2210_v9, %v2140_v52 }
 0x45b   :  { %v1928_v5 = vpop.f32.mrf.mxu0  ;;  %v4178_v61 = vpop.f32.mrf.mxu1 }
 0x45c   :  { %4402 = vtanh.f32 %v2214_v47  ;;  %v1932_v36 = vmax.f32 %v1928_v5, 0.0 }
 0x45d   :  { %v4145_v32 = vpop.f32.mrf.mxu0 }
 0x45e   :  { %v1933_v21 = vmul.f32 %v1932_v36, %v4932_v23 }
 0x460   :  { %v1934_v30 = vsel %vm887_vm15, %v1933_v21, 0.0 }
 0x461   :  { %1935 = vadd.xlane.f32.xlu0 %v1934_v30 }
 0x469   :  { %v5224_v42 = vpop.eup %4402 }
 0x46a   :  { %5743 = vst [vmem:[#allocation18_spill] sm:$0xff] %v5224_v42  ;;  %4221 = vmatmul.mubr.msk.f32.vlgmr.msra.gmra.mxu1 %vm718_vm14, %v5224_v42  ;;  %v5230_v59 = vmul.f32 %v5224_v42, %v5002_v62 }
 0x46b   :  { %4235 = vmatpush3.msra.mxu1 %v4737_v12  ;;  %4242 = vmatprep.mubr.msk.f32.mxu1 %vm4621_vm0, %v5726_v0 }
 0x46c   :  { %4188 = vmatmul.mubr.msk.f32.vlgmr.msra.gmra.mxu0 %vm718_vm14, %v5230_v59  ;;  %4236 = vmatprep.subr.mxu1 %v5726_v0 }
 0x46d   :  { %v2401_v30 = vpop.f32.mrf.mxu1  ;;  %4202 = vmatpush3.msra.mxu0 %v4810_v25  ;;  %4237 = vmatpush3.msra.mxu1 %v4743_v13 }
 0x46e   :  { %v2406_v21 = vrot.slane %v2401_v30, 7  ;;  %4203 = vmatprep.subr.mxu0 %v5726_v0  ;;  %4238 = vmatprep.subr.mxu1 %v5726_v0  ;;  %v5275_v30 = vld [vmem:[#allocation8 + $0x18] sm:$0xff] }
 0x46f   :  { %v2109_v41 = vpop.f32.mrf.mxu0  ;;  %v4200_v12 = vpop.f32.mrf.mxu1  ;;  %4204 = vmatpush3.msra.mxu0 %v4818_v26  ;;  %4239 = vmatpush3.msra.mxu1 %v4753_v15 }
 0x470   :  { %v2408_v44 = vadd.f32 %v2406_v21, %v2140_v52  ;;  %v2113_v9 = vmax.f32 %v2109_v41, 0.0  ;;  %4205 = vmatprep.subr.mxu0 %v5726_v0  ;;  %4240 = vmatprep.subr.mxu1 %v5726_v0 }
 0x471   :  { %v4167_v47 = vpop.f32.mrf.mxu0  ;;  %4206 = vmatpush3.msra.mxu0 %v4824_v27  ;;  %4241 = vmatpush3.msra.mxu1 %v4759_v16 }
 0x472   :  { %4404 = vtanh.f32 %v2408_v44  ;;  %v2114_v13 = vmul.f32 %v2113_v9, %v4932_v23  ;;  %4207 = vmatprep.subr.mxu0 %v5726_v0  ;;  %4209 = vmatprep.mubr.msk.f32.mxu0 %vm4621_vm0, %v5726_v0 }
 0x473   :  { %4208 = vmatpush3.msra.mxu0 %v4830_v28  ;;  %4256 = vmatprep.subr.mxu1 %v5726_v0 }
 0x474   :  { %v2115_v15 = vsel %vm887_vm15, %v2114_v13, 0.0  ;;  %4223 = vmatprep.subr.mxu0 %v5726_v0 }
 0x475   :  { %2116 = vadd.xlane.f32.xlu1 %v2115_v15 }
 0x47f   :  { %v5256_v52 = vpop.eup %4404 }
 0x480   :  { %5744 = vst [vmem:[#allocation19_spill] sm:$0xff] %v5256_v52  ;;  %v2707_v16 = vrot.slane %v5256_v52, 1  ;;  %v5261_v5 = vmul.f32 %v5256_v52, %v5002_v62  ;;  %v5285_v62 = vld [vmem:[#allocation8 + $0x10] sm:$0xff] }
 0x482   :  { %4243 = vmatmul.mubr.msk.f32.vlgmr.msra.gmra.mxu1 %vm718_vm14, %v2707_v16  ;;  %v5720_v61 = vrot.slane %v5261_v5, 1  ;;  %v5269_v36 = vmax.f32 %v2038_v22, %v5261_v5  ;;  %v5273_v32 = vadd.f32 %v5261_v5, %v5182_v57  ;;  %v2515_v22 = vld [vmem:[#allocation2 + $0xa] sm:$0x3] }
 0x483   :  { %4257 = vmatpush3.msra.mxu1 %v5275_v30  ;;  %4264 = vmatprep.mubr.msk.f32.mxu1 %vm4621_vm0, %v5726_v0  ;;  %v5322_v16 = vld [vmem:[#allocation9 + $0x18] sm:$0xff] }
 0x484   :  { %4210 = vmatmul.mubr.msk.f32.vlgmr.msra.gmra.mxu0 %vm718_vm14, %v5720_v61  ;;  %4258 = vmatprep.subr.mxu1 %v5726_v0 }
 0x485   :  { %4224 = vmatpush3.msra.mxu0 %v4810_v25  ;;  %4259 = vmatpush3.msra.mxu1 %v5285_v62  ;;  %v5297_v25 = vld [vmem:[#allocation8] sm:$0xff] }
 0x486   :  { %4225 = vmatprep.subr.mxu0 %v5726_v0  ;;  %4260 = vmatprep.subr.mxu1 %v5726_v0 }
 0x487   :  { %4226 = vmatpush3.msra.mxu0 %v4818_v26  ;;  %4261 = vmatpush3.msra.mxu1 %v5291_v34 }
 0x488   :  { %4227 = vmatprep.subr.mxu0 %v5726_v0  ;;  %4262 = vmatprep.subr.mxu1 %v5726_v0 }
 0x489   :  { %4228 = vmatpush3.msra.mxu0 %v4824_v27  ;;  %4263 = vmatpush3.msra.mxu1 %v5297_v25 }
 0x48a   :  { %4229 = vmatprep.subr.mxu0 %v5726_v0  ;;  %4231 = vmatprep.mubr.msk.f32.mxu0 %vm4621_vm0, %v5726_v0 }
 0x48b   :  { %4230 = vmatpush3.msra.mxu0 %v4830_v28  ;;  %4278 = vmatprep.subr.mxu1 %v5726_v0 }
 0x48c   :  { %4245 = vmatprep.subr.mxu0 %v5726_v0 }
 0x52a   :  { %v2585_v57 = vpop.f32.mrf.mxu1 }
 0x52b   :  { %v2589_v21 = vadd.f32 %v2585_v57, %v2515_v22 }
 0x52c   :  { %v2303_v41 = vpop.f32.mrf.mxu0  ;;  %v4222_v12 = vpop.f32.mrf.mxu1 }
 0x52d   :  { %4406 = vtanh.f32 %v2589_v21  ;;  %v2307_v44 = vmax.f32 %v2303_v41, 0.0 }
 0x52e   :  { %v4189_v9 = vpop.f32.mrf.mxu0 }
 0x52f   :  { %v2308_v47 = vmul.f32 %v2307_v44, %v4932_v23 }
 0x531   :  { %v2309_v13 = vsel %vm887_vm15, %v2308_v47, 0.0 }
 0x532   :  { %2310 = vadd.xlane.f32.xlu0 %v2309_v13 }
 0x53a   :  { %v5308_v15 = vpop.eup %4406 }
 0x53b   :  { %5745 = vst [vmem:[#allocation20_spill] sm:$0xff] %v5308_v15  ;;  %4265 = vmatmul.mubr.msk.f32.vlgmr.msra.gmra.mxu1 %vm718_vm14, %v5308_v15  ;;  %v5314_v28 = vmul.f32 %v5308_v15, %v5004_v63 }
 0x53c   :  { %4279 = vmatpush3.msra.mxu1 %v5275_v30  ;;  %4286 = vmatprep.mubr.msk.f32.mxu1 %vm4621_vm0, %v5726_v0 }
 0x53d   :  { %4232 = vmatmul.mubr.msk.f32.vlgmr.msra.gmra.mxu0 %vm718_vm14, %v5314_v28  ;;  %4280 = vmatprep.subr.mxu1 %v5726_v0 }
 0x53e   :  { %4246 = vmatpush3.msra.mxu0 %v5322_v16  ;;  %4281 = vmatpush3.msra.mxu1 %v5285_v62 }
 0x53f   :  { %4247 = vmatprep.subr.mxu0 %v5726_v0  ;;  %4282 = vmatprep.subr.mxu1 %v5726_v0 }
 0x540   :  { %4248 = vmatpush3.msra.mxu0 %v4818_v26  ;;  %4283 = vmatpush3.msra.mxu1 %v5291_v34  ;;  %v5337_v26 = vld [vmem:[#allocation9] sm:$0xff] }
 0x541   :  { %4249 = vmatprep.subr.mxu0 %v5726_v0  ;;  %4284 = vmatprep.subr.mxu1 %v5726_v0 }
 0x542   :  { %v2776_v57 = vpop.f32.mrf.mxu1  ;;  %4250 = vmatpush3.msra.mxu0 %v4824_v27  ;;  %4285 = vmatpush3.msra.mxu1 %v5297_v25 }
 0x543   :  { %v2781_v21 = vrot.slane %v2776_v57, 7  ;;  %4251 = vmatprep.subr.mxu0 %v5726_v0  ;;  %4253 = vmatprep.mubr.msk.f32.mxu0 %vm4621_vm0, %v5726_v0 }
 0x544   :  { %v2484_v41 = vpop.f32.mrf.mxu0  ;;  %v4244_v12 = vpop.f32.mrf.mxu1  ;;  %4252 = vmatpush3.msra.mxu0 %v5337_v26  ;;  %4300 = vmatprep.subr.mxu1 %v5726_v0 }
 0x545   :  { %v2783_v44 = vadd.f32 %v2781_v21, %v2515_v22  ;;  %v2488_v9 = vmax.f32 %v2484_v41, 0.0  ;;  %4267 = vmatprep.subr.mxu0 %v5726_v0  ;;  %v1936_v21 = vpop.xlane.xlu0 %1935 }
 0x546   :  { %v4211_v27 = vpop.f32.mrf.mxu0 }
 0x547   :  { %4408 = vtanh.f32 %v2783_v44  ;;  %v2489_v47 = vmul.f32 %v2488_v9, %v4932_v23  ;;  %v2890_v44 = vld [vmem:[#allocation2 + $0xc] sm:$0x3] }
 0x549   :  { %v2490_v13 = vsel %vm887_vm15, %v2489_v47, 0.0 }
 0x54a   :  { %2491 = vadd.xlane.f32.xlu1 %v2490_v13 }
 0x554   :  { %v5344_v57 = vpop.eup %4408 }
 0x555   :  { %5746 = vst [vmem:[#allocation21_spill] sm:$0xff] %v5344_v57  ;;  %v3082_v12 = vrot.slane %v5344_v57, 1  ;;  %v5349_v61 = vmul.f32 %v5344_v57, %v5004_v63  ;;  %v5370_v63 = vld [vmem:[#allocation9 + $0x10] sm:$0xff] }
 0x557   :  { %5747 = vst [vmem:[#allocation22_spill] sm:$0xff] %v5349_v61  ;;  %4287 = vmatmul.mubr.msk.f32.vlgmr.msra.gmra.mxu1 %vm718_vm14, %v3082_v12  ;;  %v5721_v22 = vrot.slane %v5349_v61, 1  ;;  %v5357_v41 = vadd.f32 %v5349_v61, %v5273_v32  ;;  %v5376_v32 = vld [vmem:[#allocation9 + $0x8] sm:$0xff] }
 0x558   :  { %4301 = vmatpush3.msra.mxu1 %v5275_v30  ;;  %4308 = vmatprep.mubr.msk.f32.mxu1 %vm4621_vm0, %v5726_v0 }
 0x559   :  { %4254 = vmatmul.mubr.msk.f32.vlgmr.msra.gmra.mxu0 %vm718_vm14, %v5721_v22  ;;  %4302 = vmatprep.subr.mxu1 %v5726_v0 }
 0x55a   :  { %4268 = vmatpush3.msra.mxu0 %v5322_v16  ;;  %4303 = vmatpush3.msra.mxu1 %v5285_v62 }
 0x55b   :  { %4269 = vmatprep.subr.mxu0 %v5726_v0  ;;  %4304 = vmatprep.subr.mxu1 %v5726_v0 }
 0x55c   :  { %4270 = vmatpush3.msra.mxu0 %v5370_v63  ;;  %4305 = vmatpush3.msra.mxu1 %v5291_v34 }
 0x55d   :  { %4271 = vmatprep.subr.mxu0 %v5726_v0  ;;  %4306 = vmatprep.subr.mxu1 %v5726_v0 }
 0x55e   :  { %4272 = vmatpush3.msra.mxu0 %v5376_v32  ;;  %4307 = vmatpush3.msra.mxu1 %v5297_v25 }
 0x55f   :  { %4273 = vmatprep.subr.mxu0 %v5726_v0  ;;  %4275 = vmatprep.mubr.msk.f32.mxu0 %vm4621_vm0, %v5726_v0 }
 0x560   :  { %4274 = vmatpush3.msra.mxu0 %v5337_v26  ;;  %4322 = vmatprep.subr.mxu1 %v5726_v0 }
 0x561   :  { %4289 = vmatprep.subr.mxu0 %v5726_v0 }
 0x5fb   :  { %v2960_v9 = vpop.f32.mrf.mxu1 }
 0x5fc   :  { %v2964_v27 = vadd.f32 %v2960_v9, %v2890_v44 }
 0x5fd   :  { %v2678_v47 = vpop.f32.mrf.mxu0  ;;  %v4266_v13 = vpop.f32.mrf.mxu1 }
 0x5fe   :  { %4410 = vtanh.f32 %v2964_v27  ;;  %v2682_v12 = vmax.f32 %v2678_v47, 0.0 }
 0x5ff   :  { %v4233_v22 = vpop.f32.mrf.mxu0  ;;  %4412 = vtanh.f32 %v1936_v21 }
 0x600   :  { %v2683_v60 = vmul.f32 %v2682_v12, %v4932_v23 }
 0x602   :  { %v2684_v1 = vsel %vm887_vm15, %v2683_v60, 0.0  ;;  %v1567_v60 = vsub.f32 %v5209_v38, %v5213_v40 }
 0x603   :  { %2685 = vadd.xlane.f32.xlu0 %v2684_v1  ;;  %v2311_v1 = vpop.xlane.xlu0 %2310 }
 0x604   :  { %4414 = vtanh.f32 %v2311_v1  ;;  %v1568_v27 = vmul.f32 1.442695, %v1567_v60 }
 0x60b   :  { %v5388_v57 = vpop.eup %4410 }
 0x60c   :  { %5748 = vst [vmem:[#allocation23_spill] sm:$0xff] %v5388_v57  ;;  %4309 = vmatmul.mubr.msk.f32.vlgmr.msra.gmra.mxu1 %vm718_vm14, %v5388_v57  ;;  %v5394_v9 = vmul.f32 %v5388_v57, %v5006_v2 }
 0x60d   :  { %4323 = vmatpush3.msra.mxu1 %v5275_v30  ;;  %4330 = vmatprep.mubr.msk.f32.mxu1 %vm4621_vm0, %v5726_v0  ;;  %v4413_v30 = vpop.eup %4412 }
 0x60e   :  { %4276 = vmatmul.mubr.msk.f32.vlgmr.msra.gmra.mxu0 %vm718_vm14, %v5394_v9  ;;  %4324 = vmatprep.subr.mxu1 %v5726_v0 }
 0x60f   :  { %4290 = vmatpush3.msra.mxu0 %v5322_v16  ;;  %4325 = vmatpush3.msra.mxu1 %v5285_v62 }
 0x610   :  { %4291 = vmatprep.subr.mxu0 %v5726_v0  ;;  %4326 = vmatprep.subr.mxu1 %v5726_v0 }
 0x611   :  { %4292 = vmatpush3.msra.mxu0 %v5370_v63  ;;  %4327 = vmatpush3.msra.mxu1 %v5291_v34  ;;  %v4415_v57 = vpop.eup %4414 }
 0x612   :  { %4293 = vmatprep.subr.mxu0 %v5726_v0  ;;  %4328 = vmatprep.subr.mxu1 %v5726_v0 }
 0x613   :  { %4294 = vmatpush3.msra.mxu0 %v5376_v32  ;;  %4329 = vmatpush3.msra.mxu1 %v5297_v25  ;;  %v5420_v25 = vmax.f32 %v5213_v40, %v4413_v30 }
 0x614   :  { %4295 = vmatprep.subr.mxu0 %v5726_v0  ;;  %4297 = vmatprep.mubr.msk.f32.mxu0 %vm4621_vm0, %v5726_v0 }
 0x615   :  { %4296 = vmatpush3.msra.mxu0 %v5337_v26  ;;  %v1942_v38 = vsub.f32 %v4413_v30, %v5420_v25 }
 0x616   :  { %4311 = vmatprep.subr.mxu0 %v5726_v0 }
 0x617   :  { %v3151_v62 = vpop.f32.mrf.mxu1 }
 0x618   :  { %v3156_v34 = vrot.slane %v3151_v62, 7  ;;  %v1943_v62 = vmul.f32 1.442695, %v1942_v38 }
 0x619   :  { %v2859_v22 = vpop.f32.mrf.mxu0  ;;  %v4288_v21 = vpop.f32.mrf.mxu1 }
 0x61a   :  { %v3158_v47 = vadd.f32 %v3156_v34, %v2890_v44  ;;  %v2863_v13 = vmax.f32 %v2859_v22, 0.0  ;;  %v5426_v21 = vmax.f32 %v5420_v25, %v4415_v57 }
 0x61b   :  { %v4255_v12 = vpop.f32.mrf.mxu0 }
 0x61c   :  { %4416 = vtanh.f32 %v3158_v47  ;;  %v2864_v1 = vmul.f32 %v2863_v13, %v4932_v23  ;;  %v2317_v60 = vsub.f32 %v4415_v57, %v5426_v21  ;;  %v5752_v13 = vmov 0.0  }
 0x61d   :  { %4418 = vpow2.f32 %v1568_v27  ;;  %v5751_v27 = vmax.f32 %v5269_v36, %v5349_v61  ;;  %v5753_v36 = vmov 0  }
 0x61e   :  { %v2865_v0 = vsel %vm887_vm15, %v2864_v1, 0.0  ;;  %4420 = vpow2.f32 %v1943_v62  ;;  %v2318_v34 = vmul.f32 1.442695, %v2317_v60  ;;  %v2226_v38 = vsel %vm2225_vm3, 1, %v5753_v36 }
 0x61f   :  { %2866 = vadd.xlane.f32.xlu1 %v2865_v0  ;;  %vm3673_vm3 = vcmask 1041152  }
 0x620   :  { %4422 = vpow2.f32 %v2318_v34  ;;  %v2601_v34 = vsel %vm2600_vm4, 1, %v5753_v36 }
 0x629   :  { %v5429_v44 = vpop.eup %4416 }
 0x62a   :  { %5749 = vst [vmem:[#allocation24_spill] sm:$0xff] %v5429_v44  ;;  %v3457_v22 = vrot.slane %v5429_v44, 1  ;;  %v5434_v23 = vmul.f32 %v5429_v44, %v5006_v2  ;;  %v4419_v30 = vpop.eup %4418  ;;  %v1939_v44 = vsub.f32 %v5213_v40, %v5420_v25 }
 0x62b   :  { %v5452_v2 = vmul.f32 %v4419_v30, %v4746_v14  ;;  %v4421_v12 = vpop.eup %4420 }
 0x62c   :  { %5750 = vst [vmem:[#allocation25_spill] sm:$0xff] %v5434_v23  ;;  %4331 = vmatmul.mubr.msk.f32.vlgmr.msra.gmra.mxu1 %vm718_vm14, %v3457_v22  ;;  %v5729_v0 = vrot.slane %v5434_v23, 1  ;;  %v5442_v47 = vmax.f32 %v5751_v27, %v5434_v23  ;;  %v5446_v57 = vadd.f32 %v5434_v23, %v5357_v41  ;;  %v1851_v41 = vsel %vm1850_vm2, 1, %v5753_v36  ;;  %v1742_v22 = vpop.xlane.xlu1 %1741 }
 0x62d   :  { %v5467_v1 = vmul.f32 %v4421_v12, %v4762_v17  ;;  %v4423_v62 = vpop.eup %4422  ;;  %4424 = vtanh.f32 %v1742_v22  ;;  %vm3696_vm2 = vcmask 779777  }
 0x62e   :  { %4298 = vmatmul.mubr.msk.f32.vlgmr.msra.gmra.mxu0 %vm718_vm14, %v5729_v0  ;;  %v5474_v60 = vmul.f32 %v4423_v62, %v4775_v18 }
 0x62f   :  { %4312 = vmatpush3.msra.mxu0 %v5322_v16  ;;  %4319 = vmatprep.mubr.msk.f32.mxu0 %vm4621_vm0, %v5752_v13 }
 0x630   :  { %1576 = vperm.xlu1 %4359, %v5452_v2   ;;  %4313 = vmatprep.subr.mxu0 %v5752_v13  ;;  %v2117_v30 = vpop.xlane.xlu1 %2116 }
 0x631   :  { %4314 = vmatpush3.msra.mxu0 %v5370_v63  ;;  %4426 = vtanh.f32 %v2117_v30  ;;  %v1940_v30 = vmul.f32 1.442695, %v1939_v44 }
 0x632   :  { %4315 = vmatprep.subr.mxu0 %v5752_v13 }
 0x633   :  { %4316 = vmatpush3.msra.mxu0 %v5376_v32 }
 0x634   :  { %1853 = vperm.xlu1 %4359, %v1851_v41   ;;  %4317 = vmatprep.subr.mxu0 %v5752_v13  ;;  %v2492_v41 = vpop.xlane.xlu1 %2491 }
 0x635   :  { %4318 = vmatpush3.msra.mxu0 %v5337_v26 }
 0x636   :  { %4333 = vmatprep.subr.mxu0 %v5752_v13 }
 0x638   :  { %1951 = vperm.xlu1 %4359, %v5467_v1  }
 0x63a   :  { %v4425_v12 = vpop.eup %4424 }
 0x63b   :  { %v1744_v62 = vmax.f32 %v5114_v4, %v4425_v12 }
 0x63c   :  { %2228 = vperm.xlu1 %4359, %v2226_v38   ;;  %v1373_v38 = vsub.f32 %v5110_v48, %v5114_v4  ;;  %v2314_v48 = vsub.f32 %v5420_v25, %v5426_v21 }
 0x63d   :  { %v1745_v22 = vsub.f32 %v5114_v4, %v1744_v62 }
 0x63e   :  { %v4427_v0 = vpop.eup %4426  ;;  %v1374_v15 = vmul.f32 1.442695, %v1373_v38 }
 0x63f   :  { %v2119_v23 = vmax.f32 %v1744_v62, %v4427_v0  ;;  %v1746_v61 = vmul.f32 1.442695, %v1745_v22 }
 0x640   :  { %2326 = vperm.xlu1 %4359, %v5474_v60  }
 0x641   :  { %v2123_v42 = vsub.f32 %v4427_v0, %v2119_v23 }
 0x643   :  { %v2124_v44 = vmul.f32 1.442695, %v2123_v42 }
 0x644   :  { %2603 = vperm.xlu1 %4359, %v2601_v34   ;;  %v1748_v34 = vsub.f32 %v4425_v12, %v1744_v62  ;;  %v2120_v12 = vsub.f32 %v1744_v62, %v2119_v23 }
 0x646   :  { %v2121_v22 = vmul.f32 1.442695, %v2120_v12 }
 0x68c   :  { %v2686_v27 = vpop.xlane.xlu0 %2685 }
 0x68d   :  { %4428 = vtanh.f32 %v2686_v27  ;;  %v1749_v27 = vmul.f32 1.442695, %v1748_v34 }
 0x68e   :  { %4430 = vtanh.f32 %v2492_v41 }
 0x68f   :  { %4432 = vpow2.f32 %v1374_v15  ;;  %v2315_v15 = vmul.f32 1.442695, %v2314_v48 }
 0x690   :  { %4434 = vpow2.f32 %v1940_v30 }
 0x691   :  { %4436 = vpow2.f32 %v1749_v27 }
 0x69a   :  { %v5485_v52 = vpop.eup %4428 }
 0x69b   :  { %v4431_v41 = vpop.eup %4430  ;;  %v5491_v40 = vmax.f32 %v5426_v21, %v5485_v52 }
 0x69c   :  { %v2494_v38 = vmax.f32 %v2119_v23, %v4431_v41  ;;  %v4433_v42 = vpop.eup %4432 }
 0x69d   :  { %v2689_v0 = vsub.f32 %v5426_v21, %v5491_v40  ;;  %v1006_v21 = vadd.f32 %v5127_v58, %v5023_v35 }
 0x69e   :  { %v2498_v6 = vsub.f32 %v4431_v41, %v2494_v38  ;;  %v2495_v30 = vsub.f32 %v2119_v23, %v2494_v38  ;;  %v5502_v41 = vpop.eup %4434  ;;  %v5504_v23 = vmul.f32 %v4433_v42, %v1376_v37 }
 0x69f   :  { %v2690_v62 = vmul.f32 1.442695, %v2689_v0 }
 0x6a0   :  { %v2496_v48 = vmul.f32 1.442695, %v2495_v30 }
 0x6a8   :  { %v2867_v4 = vpop.xlane.xlu1 %2866 }
 0x6a9   :  { %4438 = vtanh.f32 %v2867_v4 }
 0x6aa   :  { %4440 = vpow2.f32 %v1746_v61  ;;  %v2499_v61 = vmul.f32 1.442695, %v2498_v6  ;;  %v1751_v6 = vrot.slane %v4746_v14, 1 }
 0x6ab   :  { %4442 = vpow2.f32 %v2124_v44  ;;  %v4437_v44 = vpop.eup %4436 }
 0x6ac   :  { %v1577_v34 = vpop.permute.xlu1 %1576  ;;  %4444 = vpow2.f32 %v2315_v15  ;;  %v5519_v30 = vmul.f32 %v4437_v44, %v1751_v6 }
 0x6ad   :  { %v1579_v25 = vmul.f32 %v1577_v34, %v5034_v56  ;;  %4446 = vpow2.f32 %v2121_v22 }
 0x6ae   :  { %4448 = vpow2.f32 %v2690_v62 }
 0x6af   :  { %v1580_v27 = vadd.f32 %v1579_v25, %v5220_v45  ;;  %v1379_v45 = vmul.f32 %v5130_v33, %v1006_v21  ;;  %4450 = vpow2.f32 %v2499_v61  ;;  %v2126_v21 = vrot.slane %v4762_v17, 1 }
 0x6b0   :  { %v5498_v4 = vpop.permute.xlu1 %1853  ;;  %4452 = vpow2.f32 %v2496_v48 }
 0x6b1   :  { %v1948_v29 = vmul.f32 %v5502_v41, %v1580_v27  ;;  %v1380_v37 = vadd.f32 %v1379_v45, %v5504_v23  ;;  %vm1855_vm8 = vcmp.eq.s32.totalorder %v5498_v4, 1 }
 0x6b4   :  { %v1952_v12 = vpop.permute.xlu1 %1951 }
 0x6b5   :  { %v1954_v15 = vmul.f32 %v1952_v12, %v5143_v39 }
 0x6b6   :  { %v4439_v0 = vpop.eup %4438 }
 0x6b7   :  { %v5510_v35 = vpop.eup %4440  ;;  %v5512_v58 = vmax.f32 %v2494_v38, %v4439_v0  ;;  %v1955_v34 = vadd.f32 %v1954_v15, %v1948_v29 }
 0x6b8   :  { %v5514_v22 = vpop.permute.xlu1 %2228  ;;  %v1754_v27 = vmul.f32 %v5510_v35, %v1380_v37  ;;  %v4443_v62 = vpop.eup %4442 }
 0x6b9   :  { %5754 = vst [vmem:[#allocation26_spill] sm:$0xff] %v5514_v22  ;;  %v2870_v33 = vsub.f32 %v2494_v38, %v5512_v58  ;;  %v2873_v25 = vsub.f32 %v4439_v0, %v5512_v58  ;;  %v5522_v61 = vpop.eup %4444  ;;  %v5532_v0 = vmul.f32 %v4443_v62, %v2126_v21 }
 0x6ba   :  { %v5525_v12 = vpop.eup %4446  ;;  %v2323_v45 = vmul.f32 %v5522_v61, %v1955_v34  ;;  %v1755_v44 = vadd.f32 %v1754_v27, %v5519_v30 }
 0x6bb   :  { %v2874_v14 = vmul.f32 1.442695, %v2873_v25  ;;  %v2871_v42 = vmul.f32 1.442695, %v2870_v33  ;;  %v5530_v15 = vpop.eup %4448  ;;  %v2501_v33 = vrot.slane %v4775_v18, 1 }
 0x6bc   :  { %v2327_v48 = vpop.permute.xlu1 %2326  ;;  %v2129_v6 = vmul.f32 %v5525_v12, %v1755_v44  ;;  %v4451_v37 = vpop.eup %4450 }
 0x6bd   :  { %4454 = vpow2.f32 %v2874_v14  ;;  %v2329_v38 = vmul.f32 %v2327_v48, %v5230_v59  ;;  %v5539_v25 = vpop.eup %4452  ;;  %v5542_v14 = vmul.f32 %v4451_v37, %v2501_v33  ;;  %v2976_v33 = vsel %vm2975_vm5, 1, %v5753_v36 }
 0x6be   :  { %4456 = vpow2.f32 %v2871_v42  ;;  %v2130_v34 = vadd.f32 %v2129_v6, %v5532_v0  ;;  %v2876_v42 = vrot.slane %v4784_v19, 1 }
 0x6bf   :  { %v2330_v29 = vadd.f32 %v2329_v38, %v2323_v45  ;;  %v3265_v38 = vld [vmem:[#allocation2 + $0xe] sm:$0x3] }
 0x6c0   :  { %v2504_v27 = vmul.f32 %v5539_v25, %v2130_v34 }
 0x6c1   :  { %v5536_v17 = vmul.f32 %v5530_v15, %v2330_v29 }
 0x6c2   :  { %v2505_v21 = vadd.f32 %v2504_v27, %v5542_v14  ;;  %v4502_v27 = vld [vmem:[%s5716_s6] sm:$0x1]  ;;  %s4623_s6 = smov 64  }
 0x6c3   :  { %5755 = vst [vmem:[#allocation27_spill] sm:$0xff] %v5536_v17 }
 0x6ca   :  { %v4455_v62 = vpop.eup %4454 }
 0x6cb   :  { %v5547_v48 = vpop.eup %4456  ;;  %v2878_v45 = vmul.f32 %v4455_v62, %v2876_v42 }
 0x6cc   :  { %v3335_v18 = vpop.f32.mrf.mxu1  ;;  %v2879_v44 = vmul.f32 %v5547_v48, %v2505_v21 }
 0x6cd   :  { %v3339_v29 = vadd.f32 %v3335_v18, %v3265_v38  ;;  %2884 = vperm.xlu1 %4359, %v2878_v45  }
 0x6ce   :  { %v3053_v6 = vpop.f32.mrf.mxu0  ;;  %v4310_v37 = vpop.f32.mrf.mxu1  ;;  %v2880_v34 = vadd.f32 %v2879_v44, %v2878_v45 }
 0x6cf   :  { %4458 = vtanh.f32 %v3339_v29  ;;  %v3057_v17 = vmax.f32 %v3053_v6, 0.0 }
 0x6d0   :  { %v4277_v22 = vpop.f32.mrf.mxu0 }
 0x6d1   :  { %2978 = vperm.xlu1 %4359, %v2976_v33   ;;  %v3058_v42 = vmul.f32 %v4502_v27, %v3057_v17 }
 0x6d3   :  { %v3059_v62 = vsel %vm887_vm15, %v3058_v42, 0.0 }
 0x6d4   :  { %3060 = vadd.xlane.f32.xlu0 %v3059_v62 }
 0x6dc   :  { %v5556_v21 = vpop.eup %4458 }
 0x6dd   :  { %v5560_v18 = vmul.f32 %v5556_v21, %v5008_v3 }
 0x6df   :  { %4320 = vmatmul.mubr.msk.f32.vlgmr.msra.gmra.mxu0 %vm718_vm14, %v5560_v18 }
 0x6e0   :  { %4334 = vmatpush3.msra.mxu0 %v5322_v16  ;;  %4341 = vmatprep.mubr.msk.f32.mxu0 %vm4621_vm0, %v5752_v13  ;;  %vm1475_vm0 = vcmp.eq.s32.totalorder %v4716_v7, 2  ;;  %v1571_v7 = vmul.f32 %v5217_v11, %v5123_v43  ;;  %v4503_v11 = vld [vmem:[%s5711_s1] sm:$0x3]  ;;  %s4624_s1 = smov 96  }
 0x6e1   :  { %4335 = vmatprep.subr.mxu0 %v5752_v13 }
 0x6e2   :  { %4336 = vmatpush3.msra.mxu0 %v5370_v63 }
 0x6e3   :  { %4337 = vmatprep.subr.mxu0 %v5752_v13 }
 0x6e4   :  { %4338 = vmatpush3.msra.mxu0 %v5376_v32 }
 0x6e5   :  { %4339 = vmatprep.subr.mxu0 %v5752_v13 }
 0x6e6   :  { %4340 = vmatpush3.msra.mxu0 %v5337_v26 }
 0x6ec   :  { %v3526_v22 = vpop.f32.mrf.mxu1 }
 0x6ed   :  { %v3531_v17 = vrot.slane %v3526_v22, 7 }
 0x6ee   :  { %v3234_v45 = vpop.f32.mrf.mxu0  ;;  %v4332_v44 = vpop.f32.mrf.mxu1 }
 0x6ef   :  { %v3533_v16 = vadd.f32 %v3531_v17, %v3265_v38  ;;  %v3238_v29 = vmax.f32 %v3234_v45, 0.0 }
 0x6f0   :  { %v4299_v6 = vpop.f32.mrf.mxu0 }
 0x6f1   :  { %4460 = vtanh.f32 %v3533_v16  ;;  %v3239_v37 = vmul.f32 %v4502_v27, %v3238_v29 }
 0x6f3   :  { %v3240_v33 = vsel %vm887_vm15, %v3239_v37, 0.0 }
 0x6f4   :  { %3241 = vadd.xlane.f32.xlu0 %v3240_v33 }
 0x6fe   :  { %v5574_v63 = vpop.eup %4460 }
 0x6ff   :  { %v5578_v32 = vmul.f32 %v5574_v63, %v5008_v3 }
 0x701   :  { %5756 = vst [vmem:[#allocation28_spill] sm:$0xff] %v5578_v32  ;;  %v5738_v26 = vrot.slane %v5578_v32, 1  ;;  %v5585_v38 = vadd.f32 %v5578_v32, %v5446_v57  ;;  %v3251_v57 = vrot.slane %v4849_v31, 1 }
 0x703   :  { %5757 = vst [vmem:[#allocation29_spill] sm:$0xff] %v5585_v38  ;;  %4342 = vmatmul.mubr.msk.f32.vlgmr.msra.gmra.mxu0 %vm718_vm14, %v5738_v26  ;;  %vm3661_vm14 = vcmask 516352  }
 0x75d   :  { %v3061_v42 = vpop.xlane.xlu0 %3060 }
 0x77d   :  { %v3242_v62 = vpop.xlane.xlu0 %3241 }
 0x77e   :  { %4462 = vtanh.f32 %v3242_v62 }
 0x78b   :  { %v4463_v22 = vpop.eup %4462 }
 0x78c   :  { %v5591_v3 = vmax.f32 %v5512_v58, %v4463_v22 }
 0x78e   :  { %v3245_v17 = vsub.f32 %v5512_v58, %v5591_v3  ;;  %v3248_v45 = vsub.f32 %v4463_v22, %v5591_v3 }
 0x790   :  { %v3246_v44 = vmul.f32 1.442695, %v3245_v17  ;;  %v3249_v16 = vmul.f32 1.442695, %v3248_v45 }
 0x792   :  { %4464 = vpow2.f32 %v3246_v44 }
 0x793   :  { %4466 = vpow2.f32 %v3249_v16 }
 0x794   :  { %4468 = vtanh.f32 %v3061_v42 }
 0x79f   :  { %v5597_v29 = vpop.eup %4464  ;;  %v3428_v6 = vpop.f32.mrf.mxu0 }
 0x7a0   :  { %v4467_v37 = vpop.eup %4466  ;;  %v3432_v33 = vmax.f32 %v3428_v6, 0.0  ;;  %v3254_v62 = vmul.f32 %v5597_v29, %v2880_v34  ;;  %v2692_v34 = vsub.f32 %v5485_v52, %v5491_v40  ;;  %v1108_v52 = vmax.f32 %v4865_v54, %v4938_v50 }
 0x7a1   :  { %v4321_v26 = vpop.f32.mrf.mxu0  ;;  %v3253_v13 = vmul.f32 %v4467_v37, %v3251_v57  ;;  %v4469_v6 = vpop.eup %4468 }
 0x7a2   :  { %v3433_v38 = vmul.f32 %v4502_v27, %v3432_v33  ;;  %v3063_v26 = vmax.f32 %v5491_v40, %v4469_v6  ;;  %v2693_v57 = vmul.f32 1.442695, %v2692_v34 }
 0x7a3   :  { %3259 = vperm.xlu1 %4359, %v3253_v13   ;;  %v5600_v58 = vadd.f32 %v3254_v62, %v3253_v13 }
 0x7a4   :  { %v3434_v22 = vsel %vm887_vm15, %v3433_v38, 0.0  ;;  %v3067_v13 = vsub.f32 %v4469_v6, %v3063_v26  ;;  %v1476_v38 = vsel %vm1475_vm0, 1, %v5753_v36  ;;  %4470 = vpow2.f32 %v2693_v57 }
 0x7a5   :  { %3435 = vadd.xlane.f32.xlu0 %v3434_v22 }
 0x7c3   :  { %v3609_v17 = vpop.f32.mrf.mxu0 }
 0x7c4   :  { %v3613_v45 = vmax.f32 %v3609_v17, 0.0  ;;  %v3064_v17 = vsub.f32 %v5491_v40, %v3063_v26 }
 0x7c5   :  { %v4343_v44 = vpop.f32.mrf.mxu0 }
 0x7c6   :  { %v3614_v16 = vmul.f32 %v4502_v27, %v3613_v45  ;;  %v3068_v27 = vmul.f32 1.442695, %v3067_v13  ;;  %v1572_v45 = vadd.f32 %v1571_v7, %v5452_v2  ;;  %v3640_v2 = vcvt.s32.f32 %v4503_v11  ;;  %v2604_v7 = vpop.permute.xlu1 %2603 }
 0x7c7   :  { %vm2605_vm10 = vcmp.eq.s32.totalorder %v2604_v7, 1 }
 0x7c8   :  { %v3615_v32 = vsel %vm887_vm15, %v3614_v16, 0.0  ;;  %4472 = vpow2.f32 %v3068_v27  ;;  %v1946_v44 = vmul.f32 %v5502_v41, %v1572_v45 }
 0x7c9   :  { %3616 = vadd.xlane.f32.xlu0 %v3615_v32  ;;  %v4471_v32 = vpop.eup %4470 }
 0x7ca   :  { %v2695_v42 = vmul.f32 %v4471_v32, %v4784_v19  ;;  %v1947_v6 = vadd.f32 %v1946_v44, %v5467_v1 }
 0x7cc   :  { %v2321_v57 = vmul.f32 %v5522_v61, %v1947_v6  ;;  %v5759_v6 = vrot.slane %v5069_v24, 1 }
 0x7ce   :  { %v2322_v43 = vadd.f32 %v2321_v57, %v5474_v60 }
 0x7d0   :  { %v2696_v40 = vmul.f32 %v5530_v15, %v2322_v43  ;;  %v5760_v43 = vrot.slane %v5174_v10, 1 }
 0x7d2   :  { %v2697_v1 = vadd.f32 %v2696_v40, %v2695_v42 }
 0x7d5   :  { %v4473_v37 = vpop.eup %4472 }
 0x7d6   :  { %v3070_v33 = vmul.f32 %v4473_v37, %v4849_v31 }
 0x7df   :  { %1384 = vperm.xlu0 %4358, %v5504_v23   ;;  %v1483_v23 = vmax.f32 %v1108_v52, %v5034_v56 }
 0x7e3   :  { %1478 = vperm.xlu0 %4358, %v1476_v38  }
 0x7e7   :  { %1759 = vperm.xlu0 %4358, %v5519_v30   ;;  %v1858_v30 = vmax.f32 %v1483_v23, %v5143_v39 }
 0x7eb   :  { %2134 = vperm.xlu0 %4358, %v5532_v0   ;;  %v2233_v0 = vmax.f32 %v1858_v30, %v5230_v59 }
 0x7ed   :  { %v2608_v62 = vmax.f32 %v2233_v0, %v5314_v28 }
 0x7ef   :  { %2509 = vperm.xlu0 %4358, %v5542_v14   ;;  %v3351_v14 = vsel %vm3350_vm6, 1, %v5753_v36  ;;  %v2983_v19 = vmax.f32 %v2608_v62, %v5394_v9  ;;  %v3065_v36 = vmul.f32 1.442695, %v3064_v17 }
 0x7f1   :  { %v3358_v22 = vmax.f32 %v2983_v19, %v5560_v18 }
 0x7f3   :  { %2701 = vperm.xlu0 %4358, %v2695_v42   ;;  %v5758_v42 = vrot.slane %v4966_v53, 1 }
 0x7f7   :  { %3076 = vperm.xlu0 %4358, %v3070_v33  }
 0x7fb   :  { %3353 = vperm.xlu0 %4358, %v3351_v14  }
 0x7ff   :  { %3664 = vrot.lane.b32.xlu0 %v3358_v22, %s4623_s6 }
 0x82e   :  { %v3436_v31 = vpop.xlane.xlu0 %3435 }
 0x82f   :  { %4474 = vtanh.f32 %v3436_v31 }
 0x830   :  { %4476 = vpow2.f32 %v3065_v36 }
 0x83c   :  { %v4475_v16 = vpop.eup %4474 }
 0x83d   :  { %v3438_v34 = vmax.f32 %v3063_v26, %v4475_v16  ;;  %v5638_v41 = vpop.eup %4476 }
 0x83e   :  { %v3071_v61 = vmul.f32 %v5638_v41, %v2697_v1 }
 0x83f   :  { %v3439_v13 = vsub.f32 %v3063_v26, %v3438_v34  ;;  %v3442_v38 = vsub.f32 %v4475_v16, %v3438_v34 }
 0x840   :  { %v3072_v26 = vadd.f32 %v3071_v61, %v3070_v33  ;;  %v5761_v61 = vrot.slane %v5261_v5, 1  ;;  %v5767_v5 = vld [vmem:[#allocation18_spill] sm:$0xff] }
 0x841   :  { %v3440_v27 = vmul.f32 1.442695, %v3439_v13  ;;  %v3443_v32 = vmul.f32 1.442695, %v3442_v38  ;;  %v2885_v13 = vpop.permute.xlu1 %2884 }
 0x843   :  { %4478 = vpow2.f32 %v3440_v27 }
 0x844   :  { %4480 = vpow2.f32 %v3443_v32 }
 0x845   :  { %4482 = vrcp.f32 %v3640_v2  ;;  %v2979_v2 = vpop.permute.xlu1 %2978 }
 0x846   :  { %vm2980_vm11 = vcmp.eq.s32.totalorder %v2979_v2, 1 }
 0x850   :  { %v5641_v52 = vpop.eup %4478 }
 0x851   :  { %v4481_v37 = vpop.eup %4480  ;;  %v3446_v60 = vmul.f32 %v5641_v52, %v3072_v26 }
 0x852   :  { %v3617_v23 = vpop.xlane.xlu0 %3616  ;;  %v3445_v30 = vmul.f32 %v4481_v37, %v4789_v20  ;;  %v4483_v14 = vpop.eup %4482 }
 0x853   :  { %4484 = vtanh.f32 %v3617_v23 }
 0x854   :  { %3451 = vperm.xlu1 %4359, %v3445_v30   ;;  %v3447_v0 = vadd.f32 %v3446_v60, %v3445_v30  ;;  %v5763_v60 = vld [vmem:[#allocation17_spill] sm:$0xff] }
 0x856   :  { %v3648_v15 = vadd.f32 1e-14, %v3447_v0  ;;  %v5764_v0 = vld [vmem:[#allocation26_spill] sm:$0xff] }
 0x857   :  { %vm2230_vm9 = vcmp.eq.s32.totalorder %v5764_v0, 1 }
 0x858   :  { %4486 = vrcp.f32 %v3648_v15  ;;  %3644 = vperm.xlu1 %4359, %v4483_v14   ;;  %v3260_v15 = vpop.permute.xlu1 %3259 }
 0x85a   :  { %v1385_v62 = vpop.permute.xlu0 %1384 }
 0x85b   :  { %v1388_v19 = vmul.f32 %v1385_v62, %v5758_v42  ;;  %v5768_v62 = vld [vmem:[#allocation19_spill] sm:$0xff] }
 0x85d   :  { %v1389_v33 = vadd.f32 %v1388_v19, %v5133_v46  ;;  %v5769_v19 = vld [vmem:[#allocation27_spill] sm:$0xff] }
 0x85e   :  { %v1479_v22 = vpop.permute.xlu0 %1478 }
 0x85f   :  { %v1756_v16 = vmul.f32 %v5510_v35, %v1389_v33  ;;  %vm1480_vm7 = vcmp.eq.s32.totalorder %v1479_v22, 1  ;;  %v3626_v22 = vrot.slane %v4789_v20, 1 }
 0x860   :  { %v4485_v31 = vpop.eup %4484  ;;  %v1481_v24 = vsel %vm1480_vm7, %v5028_v49, %v4942_v51  ;;  %v1661_v40 = vsel %vm1480_vm7, %v5060_v8, %v4970_v55  ;;  %v5765_v51 = vld [vmem:[#allocation22_spill] sm:$0xff] }
 0x861   :  { %v3619_v17 = vmax.f32 %v5591_v3, %v4485_v31  ;;  %v2036_v23 = vsel %vm1855_vm8, %v5763_v60, %v1661_v40  ;;  %v5766_v49 = vrot.slane %v5765_v51, 1 }
 0x862   :  { %v1760_v45 = vpop.permute.xlu0 %1759  ;;  %v2411_v4 = vsel %vm2230_vm9, %v5768_v62, %v2036_v23 }
 0x863   :  { %v3620_v36 = vsub.f32 %v5591_v3, %v3619_v17  ;;  %v3623_v44 = vsub.f32 %v4485_v31, %v3619_v17  ;;  %v1763_v34 = vmul.f32 %v1760_v45, %v5759_v6  ;;  %v2888_v14 = vmul.f32 %v2885_v13, %v5766_v49  ;;  %v5770_v31 = vld [vmem:[#allocation25_spill] sm:$0xff] }
 0x864   :  { %v5771_v17 = vrot.slane %v5770_v31, 1  ;;  %v5773_v13 = vld [vmem:[#allocation21_spill] sm:$0xff] }
 0x865   :  { %v4487_v57 = vpop.eup %4486  ;;  %v3621_v53 = vmul.f32 1.442695, %v3620_v36  ;;  %v3624_v38 = vmul.f32 1.442695, %v3623_v44  ;;  %v1764_v27 = vadd.f32 %v1763_v34, %v1756_v16  ;;  %v5772_v16 = vld [vmem:[#allocation20_spill] sm:$0xff] }
 0x866   :  { %3652 = vperm.xlu0 %4358, %v4487_v57   ;;  %v2135_v46 = vpop.permute.xlu0 %2134  ;;  %v3263_v45 = vmul.f32 %v3260_v15, %v5771_v17 }
 0x867   :  { %4488 = vpow2.f32 %v3621_v53  ;;  %v2131_v32 = vmul.f32 %v5525_v12, %v1764_v27  ;;  %v2138_v3 = vmul.f32 %v2135_v46, %v5760_v43  ;;  %v5762_v12 = vld [vmem:[#allocation16_spill] sm:$0xff]  ;;  %v2786_v53 = vsel %vm2605_vm10, %v5773_v13, %v2411_v4  ;;  %v5774_v46 = vld [vmem:[#allocation23_spill] sm:$0xff] }
 0x868   :  { %4490 = vpow2.f32 %v3624_v38  ;;  %v1856_v10 = vsel %vm1855_vm8, %v5762_v12, %v1481_v24 }
 0x869   :  { %v2139_v11 = vadd.f32 %v2138_v3, %v2131_v32  ;;  %v5775_v3 = vld [vmem:[#allocation24_spill] sm:$0xff] }
 0x86a   :  { %v2510_v35 = vpop.permute.xlu0 %2509 }
 0x86b   :  { %v2506_v1 = vmul.f32 %v5539_v25, %v2139_v11  ;;  %v2513_v26 = vmul.f32 %v2510_v35, %v5761_v61  ;;  %v2231_v25 = vsel %vm2230_vm9, %v5767_v5, %v1856_v10  ;;  %v3161_v11 = vsel %vm2980_vm11, %v5775_v3, %v2786_v53  ;;  %v5776_v61 = vld [vmem:[#allocation28_spill] sm:$0xff] }
 0x86c   :  { %v2606_v6 = vsel %vm2605_vm10, %v5772_v16, %v2231_v25 }
 0x86d   :  { %v2514_v37 = vadd.f32 %v2513_v26, %v2506_v1  ;;  %v2981_v32 = vsel %vm2980_vm11, %v5774_v46, %v2606_v6  ;;  %v5777_v26 = vmax.f32 %v5442_v47, %v5776_v61  ;;  %v5778_v47 = vld [vmem:[#allocation29_spill] sm:$0xff] }
 0x86e   :  { %v2702_v30 = vpop.permute.xlu0 %2701 }
 0x86f   :  { %v2881_v55 = vmul.f32 %v5547_v48, %v2514_v37  ;;  %v2704_v8 = vmul.f32 %v2702_v30, %v5314_v28 }
 0x871   :  { %v2889_v42 = vadd.f32 %v2888_v14, %v2881_v55  ;;  %v2705_v33 = vadd.f32 %v2704_v8, %v5769_v19 }
 0x872   :  { %v3077_v36 = vpop.permute.xlu0 %3076 }
 0x873   :  { %v3073_v44 = vmul.f32 %v5638_v41, %v2705_v33  ;;  %v3079_v48 = vmul.f32 %v3077_v36, %v5394_v9  ;;  %v3256_v34 = vmul.f32 %v5597_v29, %v2889_v42 }
 0x874   :  { %v4489_v57 = vpop.eup %4488 }
 0x875   :  { %v4491_v38 = vpop.eup %4490  ;;  %v3080_v27 = vadd.f32 %v3079_v48, %v3073_v44  ;;  %v3629_v20 = vmul.f32 %v4489_v57, %v5600_v58  ;;  %v3264_v7 = vadd.f32 %v3263_v45, %v3256_v34 }
 0x876   :  { %v3354_v43 = vpop.permute.xlu0 %3353  ;;  %v3628_v41 = vmul.f32 %v4491_v38, %v3626_v22 }
 0x877   :  { %vm3355_vm13 = vcmp.eq.s32.totalorder %v3354_v43, 1  ;;  %v3448_v24 = vmul.f32 %v5641_v52, %v3080_v27  ;;  %v3631_v29 = vmul.f32 %v4489_v57, %v3264_v7  ;;  %v1107_v52 = vadd.f32 %v4938_v50, %v4865_v54 }
 0x878   :  { %v3356_v35 = vsel %vm3355_vm13, %v5556_v21, %v2981_v32  ;;  %v3536_v40 = vsel %vm3355_vm13, %v5574_v63, %v3161_v11  ;;  %3634 = vperm.xlu0 %4358, %v3628_v41   ;;  %v3630_v2 = vadd.f32 %v3629_v20, %v3628_v41 }
 0x879   :  { %3656 = vst.msk [vmem:[#allocation11] sm:$0x1] %vm887_vm15, %v3356_v35  ;;  %v1482_v21 = vadd.f32 %v5034_v56, %v1107_v52  ;;  %vm3667_vm15 = vcmask 778752  }
 0x87a   :  { %3685 = vst.msk [vmem:[#allocation11] sm:$0x2] %vm3684_vm12, %v3536_v40  ;;  %v3676_v58 = vadd.f32 1e-14, %v3630_v2  ;;  %v3665_v50 = vpop.permute.xlu0 %3664 }
 0x87b   :  { %v1857_v63 = vadd.f32 %v5143_v39, %v1482_v21 }
 0x87c   :  { %4492 = vrcp.f32 %v3676_v58 }
 0x87d   :  { %v2232_v12 = vadd.f32 %v5230_v59, %v1857_v63 }
 0x87f   :  { %v2607_v10 = vadd.f32 %v5314_v28, %v2232_v12 }
 0x881   :  { %v2982_v60 = vadd.f32 %v5394_v9, %v2607_v10  ;;  %v5779_v9 = vrot.slane %v5776_v61, 1 }
 0x883   :  { %v3357_v23 = vadd.f32 %v5560_v18, %v2982_v60 }
 0x889   :  { %v4493_v1 = vpop.eup %4492 }
 0x88a   :  { %3680 = vperm.xlu0 %4358, %v4493_v1  }
 0x88e   :  { %3693 = vrot.lane.b32.xlu0 %v5777_v26, %s4623_s6 }
 0x8cf   :  { %v3452_v37 = vpop.permute.xlu1 %3451 }
 0x8d0   :  { %v3454_v54 = vmul.f32 %v3452_v37, %v5560_v18 }
 0x8d2   :  { %v3455_v56 = vadd.f32 %v3454_v54, %v3448_v24 }
 0x8d3   :  { %v3645_v30 = vpop.permute.xlu1 %3644 }
 0x8d4   :  { %v3647_v0 = vmul.f32 %v3645_v30, %v3357_v23  ;;  %v3675_v51 = vmul.f32 %v3645_v30, %v5778_v47 }
 0x8d6   :  { %3658 = vrot.lane.b32.xlu1 %v3647_v0, %s4616_s11 }
 0x8da   :  { %3687 = vrot.lane.b32.xlu1 %v3675_v51, %s4616_s11 }
 0x8e1   :  { %v3653_v39 = vpop.permute.xlu0 %3652 }
 0x8e2   :  { %v3655_v59 = vmul.f32 %v3653_v39, %v3455_v56 }
 0x8e4   :  { %3670 = vrot.lane.b32.xlu1 %v3655_v59, %s4624_s1 }
 0x8f3   :  { %v3635_v28 = vpop.permute.xlu0 %3634 }
 0x8f4   :  { %v3638_v49 = vmul.f32 %v3635_v28, %v5779_v9 }
 0x8f6   :  { %v3639_v14 = vadd.f32 %v3638_v49, %v3631_v29 }
 0x905   :  { %v3681_v15 = vpop.permute.xlu0 %3680 }
 0x906   :  { %v3683_v55 = vmul.f32 %v3681_v15, %v3639_v14 }
 0x908   :  { %3699 = vrot.lane.b32.xlu1 %v3683_v55, %s4624_s1 }
 0x909   :  { %v3694_v5 = vpop.permute.xlu0 %3693 }
 0x948   :  { %v3659_v8 = vpop.permute.xlu1 %3658 }
 0x949   :  { %3662 = vst.msk [vmem:[#allocation11] sm:$0x1] %vm3661_vm14, %v3659_v8 }
 0x94a   :  { %3668 = vst.msk [vmem:[#allocation11] sm:$0x1] %vm3667_vm15, %v3665_v50 }
 0x94c   :  { %v3688_v18 = vpop.permute.xlu1 %3687 }
 0x94d   :  { %3691 = vst.msk [vmem:[#allocation11] sm:$0x2] %vm3690_vm1, %v3688_v18 }
 0x94e   :  { %3697 = vst.msk [vmem:[#allocation11] sm:$0x2] %vm3696_vm2, %v3694_v5 }
 0x956   :  { %v3671_v25 = vpop.permute.xlu1 %3670 }
 0x957   :  { %3674 = vst.msk [vmem:[#allocation11] sm:$0x1] %vm3673_vm3, %v3671_v25 }
 0x97a   :  { %v3700_v62 = vpop.permute.xlu1 %3699 }
 0x97b   :  { %3702 = vst.msk [vmem:[#allocation11 + $0x1] sm:$0x1] %vm3673_vm3, %v3700_v62 }
 0x97c   :  { %4595 = shalt.err (!%p4592_p10)
}
 0x97d   :  { %3712 = dma.vmem_to_hbm [thread:$0]  %s3710_s8, 32, %s5717_s7, [#allocation5]  }
 0x97e   :  { %4610 = dma.done.wait [#allocation5], 32  }
 0x97f   :  { %4611 = vsyncadd [#allocation5], 4294967264 }
 0x980   :  { %3716 = vsyncpa [#allocation4], 1 }
 0x981   :  { %3717 = vsyncpa [#allocation7], 1 }
 0x982   :  { %3718 = vsyncpa [#allocation10], 1 }
 0x983   :  { %3719 = vsyncpa [#allocation5], 1 }

</bundles_post_ra>
